<compile_context>
chip_gen: v7x
topology: tpu7x:2x2x1
jax: 0.10.0
libtpu: 0.0.40
codegen_flags: <defaults>
</compile_context>

<pallas_src>
import numpy as np
import jax
import jax.numpy as jnp
from jax.experimental import pallas as pl
from jax.experimental.pallas import tpu as pltpu


# ----------------------- tiled matmul + bias kernel -------------------------
def matmul_bias_kernel(x_ref, w_ref, b_ref, o_ref, acc_ref):
    # grid = (M/tm, N/tn, K/tk); K axis is the reduction ("arbitrary").
    @pl.when(pl.program_id(2) == 0)
    def _():
        acc_ref[...] = jnp.zeros_like(acc_ref)

    acc_ref[...] += jnp.dot(x_ref[...], w_ref[...],
                            preferred_element_type=jnp.float32)

    @pl.when(pl.program_id(2) == pl.num_programs(2) - 1)
    def _():
        o_ref[...] = (acc_ref[...] + b_ref[...]).astype(o_ref.dtype)


def _pick_tile(dim, prefs):
    for p in prefs:
        if dim % p == 0:
            return p
    return dim


def matmul_bias(x, w_t, b):
    """x: (M, K), w_t: (K, N), b: (1, N) -> (M, N) f32, tiled over (M, N, K)."""
    M, K = x.shape
    N = w_t.shape[1]
    tm = _pick_tile(M, (256, 128, 64, 32, 16, 8))
    tn = _pick_tile(N, (512, 256, 128))          # lane-dense output tiles
    tk = _pick_tile(K, (512, 256, 128))
    grid = (M // tm, N // tn, K // tk)
    return pl.pallas_call(
        matmul_bias_kernel,
        out_shape=jax.ShapeDtypeStruct((M, N), jnp.float32),
        grid=grid,
        in_specs=[
            pl.BlockSpec((tm, tk), lambda i, j, k: (i, k)),
            pl.BlockSpec((tk, tn), lambda i, j, k: (k, j)),
            pl.BlockSpec((1, tn), lambda i, j, k: (0, j)),
        ],
        out_specs=pl.BlockSpec((tm, tn), lambda i, j, k: (i, j)),
        scratch_shapes=[pltpu.VMEM((tm, tn), jnp.float32)],
        compiler_params=pltpu.CompilerParams(
            dimension_semantics=("parallel", "parallel", "arbitrary"),
            vmem_limit_bytes=32 * 1024 * 1024),
    )(x, w_t, b)


# ----------------------------- LSTM kernel ----------------------------------
def lstm_kernel(gx_ref, h0_ref, c0_ref, whh_ref,
                out_ref, hT_ref, cT_ref, h_sc, c_sc):
    # gx_ref : (B, Tc, 4H)  precomputed x@W_ih + (b_ih+b_hh) for this time block
    # h0/c0  : (B, H)       initial state
    # whh    : (H, 4H)      transposed PyTorch weight_hh_l0 (gate order i,f,g,o)
    # out    : (B, Tc, H)   hidden states for this time block (batch-first)
    # hT/cT  : (B, H)       final state (written only on the last grid step)
    # h_sc/c_sc : VMEM (B, H) carried across grid iterations (sequential grid)
    tb = pl.program_id(0)
    Tc = gx_ref.shape[1]
    H = whh_ref.shape[0]

    @pl.when(tb == 0)
    def _():
        h_sc[...] = h0_ref[...]
        c_sc[...] = c0_ref[...]

    h = h_sc[...]
    c = c_sc[...]
    w_hh = whh_ref[...]                       # resident; loaded once per block

    # Statically unrolled inner loop over the Tc timesteps of this block;
    # h/c live in vregs, only the recurrent h @ W_hh matmul is on the
    # sequential critical path (the x-projection was hoisted out).
    for tt in range(Tc):
        gates = gx_ref[:, tt, :] + jnp.dot(h, w_hh,
                                           preferred_element_type=jnp.float32)
        i_g = jax.nn.sigmoid(gates[:, 0 * H:1 * H])
        f_g = jax.nn.sigmoid(gates[:, 1 * H:2 * H])
        g_g = jnp.tanh(gates[:, 2 * H:3 * H])
        o_g = jax.nn.sigmoid(gates[:, 3 * H:4 * H])
        c = f_g * c + i_g * g_g
        h = o_g * jnp.tanh(c)
        out_ref[:, tt, :] = h                  # lane-dense (H multiple of 128)

    h_sc[...] = h
    c_sc[...] = c

    @pl.when(tb == pl.num_programs(0) - 1)
    def _():
        hT_ref[...] = h
        cT_ref[...] = c


def lstm_forward(gx, h0, c0, w_hh_t, *, tc=8):
    """gx: (B, T, 4H) precomputed input gates (batch-first).
    h0/c0: (B, H).  Returns (out (B, T, H), hT (B, H), cT (B, H))."""
    B, T, H4 = gx.shape
    H = H4 // 4
    if T % tc != 0:
        tc = T
    grid = (T // tc,)

    out_shapes = (
        jax.ShapeDtypeStruct((B, T, H), jnp.float32),   # all hidden states
        jax.ShapeDtypeStruct((B, H), jnp.float32),      # h_T
        jax.ShapeDtypeStruct((B, H), jnp.float32),      # c_T
    )
    return pl.pallas_call(
        lstm_kernel,
        out_shape=out_shapes,
        grid=grid,
        in_specs=[
            pl.BlockSpec((B, tc, H4), lambda tb: (0, tb, 0)),   # gates_x block
            pl.BlockSpec((B, H), lambda tb: (0, 0)),            # h0
            pl.BlockSpec((B, H), lambda tb: (0, 0)),            # c0
            pl.BlockSpec((H, H4), lambda tb: (0, 0)),           # W_hh^T
        ],
        out_specs=(
            pl.BlockSpec((B, tc, H), lambda tb: (0, tb, 0)),
            pl.BlockSpec((B, H), lambda tb: (0, 0)),
            pl.BlockSpec((B, H), lambda tb: (0, 0)),
        ),
        scratch_shapes=[
            pltpu.VMEM((B, H), jnp.float32),
            pltpu.VMEM((B, H), jnp.float32),
        ],
        compiler_params=pltpu.CompilerParams(
            dimension_semantics=("arbitrary",),      # recurrence -> sequential
            vmem_limit_bytes=32 * 1024 * 1024),
    )(gx, h0, c0, w_hh_t)


# ----------------------------- Full model -----------------------------------
def rnnlm_forward(tokens, h0, c0, params):
    """tokens: (B, T) int32; h0/c0: (num_layers=1, B, H). Mirrors RNNLM.forward."""
    B, T = tokens.shape
    E = params["embed"].shape[1]
    H = params["w_hh_t"].shape[0]

    # Embedding lookup (index gather) kept as plain-JAX glue.
    x_emb = jnp.take(params["embed"], tokens, axis=0)            # (B, T, E)

    # Hoisted input projection: one big (B*T, E) x (E, 4H) matmul (+ fused
    # LSTM bias), done batch-first so no activation transpose is needed.
    gx = matmul_bias(x_emb.reshape(B * T, E),
                     params["w_ih_t"], params["lstm_b"])         # (B*T, 4H)
    gx = gx.reshape(B, T, 4 * H)

    out_bth, hT, cT = lstm_forward(gx, h0[0], c0[0], params["w_hh_t"])

    out_flat = out_bth.reshape(B * T, H)                         # batch-first flatten
    logits = matmul_bias(out_flat, params["w_lin_t"], params["lin_b"])
    return logits, (hT[None], cT[None])


# ----------------------------- Pure-JAX reference ---------------------------
def rnnlm_ref(tokens, h0, c0, params):
    x_emb = jnp.take(params["embed"], tokens, axis=0)            # (B, T, E)
    H = h0.shape[-1]

    def step(carry, x_t):
        h, c = carry
        gates = (x_t @ params["w_ih_t"] + h @ params["w_hh_t"]
                 + params["lstm_b"][0])
        i = jax.nn.sigmoid(gates[:, 0 * H:1 * H])
        f = jax.nn.sigmoid(gates[:, 1 * H:2 * H])
        g = jnp.tanh(gates[:, 2 * H:3 * H])
        o = jax.nn.sigmoid(gates[:, 3 * H:4 * H])
        c = f * c + i * g
        h = o * jnp.tanh(c)
        return (h, c), h

    (hT, cT), outs = jax.lax.scan(step, (h0[0], c0[0]),
                                  jnp.transpose(x_emb, (1, 0, 2)))
    out_bth = jnp.transpose(outs, (1, 0, 2))
    out_flat = out_bth.reshape(-1, H)
    logits = out_flat @ params["w_lin_t"] + params["lin_b"][0]
    return logits, (hT[None], cT[None])


# ----------------------------------------------------------------------------
if __name__ == "__main__":
    # Small TPU-friendly shapes consistent with the module (scaled down but
    # 128-aligned: lane-dense H, sublane-full batch, B*T a multiple of 128).
    vocab_size, embed_size, hidden_size, num_layers = 256, 128, 128, 1
    batch, seq_len = 8, 16

    key = jax.random.PRNGKey(0)
    ks = jax.random.split(key, 8)
    s = 1.0 / np.sqrt(hidden_size)

    params = {
        # nn.Embedding(vocab_size, embed_size): weight (V, E)
        "embed": jax.random.normal(ks[0], (vocab_size, embed_size), jnp.float32),
        # nn.LSTM weight_ih_l0 (4H, E) / weight_hh_l0 (4H, H) -> stored transposed
        "w_ih_t": jax.random.uniform(ks[1], (embed_size, 4 * hidden_size),
                                     jnp.float32, -s, s),
        "w_hh_t": jax.random.uniform(ks[2], (hidden_size, 4 * hidden_size),
                                     jnp.float32, -s, s),
        # b_ih + b_hh fused, shape (1, 4H)
        "lstm_b": (jax.random.uniform(ks[3], (1, 4 * hidden_size), jnp.float32, -s, s)
                   + jax.random.uniform(ks[4], (1, 4 * hidden_size), jnp.float32, -s, s)),
        # nn.Linear(hidden_size, vocab_size): weight (V, H) -> stored transposed (H, V)
        "w_lin_t": jax.random.uniform(ks[5], (hidden_size, vocab_size),
                                      jnp.float32, -s, s),
        "lin_b": jax.random.uniform(ks[6], (1, vocab_size), jnp.float32, -s, s),
    }

    tokens = jax.random.randint(ks[7], (batch, seq_len), 0, vocab_size, jnp.int32)
    h0 = jnp.zeros((num_layers, batch, hidden_size), jnp.float32)
    c0 = jnp.zeros((num_layers, batch, hidden_size), jnp.float32)

    logits, (hT, cT) = jax.jit(rnnlm_forward)(tokens, h0, c0, params)
    jax.block_until_ready((logits, hT, cT))

    assert logits.shape == (batch * seq_len, vocab_size)
    assert hT.shape == (num_layers, batch, hidden_size)
    assert cT.shape == (num_layers, batch, hidden_size)

    # Correctness check vs pure-JAX reference.
    ref_logits, (ref_h, ref_c) = jax.jit(rnnlm_ref)(tokens, h0, c0, params)
    np.testing.assert_allclose(np.asarray(logits), np.asarray(ref_logits),
                               rtol=2e-3, atol=2e-3)
    np.testing.assert_allclose(np.asarray(hT), np.asarray(ref_h),
                               rtol=2e-3, atol=2e-3)
    np.testing.assert_allclose(np.asarray(cT), np.asarray(ref_c),
                               rtol=2e-3, atol=2e-3)

    print("KERNEL_OK")
</pallas_src>

<mosaic_0001>
module attributes {stable_mosaic.version = 11 : i64} {
  func.func @matmul_bias_kernel(%arg0: i32, %arg1: i32, %arg2: i32, %arg3: memref<128x128xf32, #tpu.memory_space<vmem>>, %arg4: memref<128x512xf32, #tpu.memory_space<vmem>>, %arg5: memref<1x512xf32, #tpu.memory_space<vmem>>, %arg6: memref<128x512xf32, #tpu.memory_space<vmem>>, %arg7: memref<128x512xf32, #tpu.memory_space<vmem>>) attributes {dimension_semantics = [#tpu.dimension_semantics<parallel>, #tpu.dimension_semantics<parallel>, #tpu.dimension_semantics<arbitrary>], iteration_bounds = array<i64: 1, 1, 1>, scalar_prefetch = 0 : i64, scratch_operands = 1 : i64, tpu.core_type = #tpu.core_type<tc>, window_params = [{transform_indices = @transform_0, window_bounds = array<i64: 128, 128>}, {transform_indices = @transform_1, window_bounds = array<i64: 128, 512>}, {transform_indices = @transform_2, window_bounds = array<i64: 1, 512>}, {transform_indices = @transform_3, window_bounds = array<i64: 128, 512>}]} {
    %c0_i32 = arith.constant 0 : i32
    %0 = arith.cmpi eq, %arg2, %c0_i32 : i32
    %1 = arith.extui %0 : i1 to i32
    %c0_i32_0 = arith.constant 0 : i32
    %2 = arith.cmpi ne, %1, %c0_i32_0 : i32
    scf.if %2 {
      %cst_10 = arith.constant 0.000000e+00 : f32
      %12 = vector.broadcast %cst_10 : f32 to vector<128x512xf32>
      %c0_11 = arith.constant 0 : index
      %c0_12 = arith.constant 0 : index
      %13 = vector.load %arg7[%c0_11, %c0_12] : memref<128x512xf32, #tpu.memory_space<vmem>>, vector<128x512xf32>
      tpu.vector_store %arg7[%c0_11, %c0_12], %12 {strides = array<i32>} : memref<128x512xf32, #tpu.memory_space<vmem>>, vector<128x512xf32>,
    } else {
    }
    %c0 = arith.constant 0 : index
    %c0_1 = arith.constant 0 : index
    %3 = vector.load %arg7[%c0, %c0_1] : memref<128x512xf32, #tpu.memory_space<vmem>>, vector<128x512xf32>
    %c0_2 = arith.constant 0 : index
    %c0_3 = arith.constant 0 : index
    %4 = vector.load %arg3[%c0_2, %c0_3] : memref<128x128xf32, #tpu.memory_space<vmem>>, vector<128x128xf32>
    %c0_4 = arith.constant 0 : index
    %c0_5 = arith.constant 0 : index
    %5 = vector.load %arg4[%c0_4, %c0_5] : memref<128x512xf32, #tpu.memory_space<vmem>>, vector<128x512xf32>
    %cst = arith.constant dense<0.000000e+00> : vector<128x512xf32>
    %6 = tpu.matmul %4, %5, %cst {dimension_numbers = #tpu.dot_dimension_numbers<[1], [0], [0], [1], [0, 0, 1, 1], [], []>} : vector<128x128xf32>, vector<128x512xf32>, vector<128x512xf32> -> vector<128x512xf32>
    %7 = arith.addf %3, %6 : vector<128x512xf32>
    %c0_6 = arith.constant 0 : index
    %c0_7 = arith.constant 0 : index
    %8 = vector.load %arg7[%c0_6, %c0_7] : memref<128x512xf32, #tpu.memory_space<vmem>>, vector<128x512xf32>
    tpu.vector_store %arg7[%c0_6, %c0_7], %7 {strides = array<i32>} : memref<128x512xf32, #tpu.memory_space<vmem>>, vector<128x512xf32>,
    %c0_i32_8 = arith.constant 0 : i32
    %9 = arith.cmpi eq, %arg2, %c0_i32_8 : i32
    %10 = arith.extui %9 : i1 to i32
    %c0_i32_9 = arith.constant 0 : i32
    %11 = arith.cmpi ne, %10, %c0_i32_9 : i32
    scf.if %11 {
      %c0_10 = arith.constant 0 : index
      %c0_11 = arith.constant 0 : index
      %12 = vector.load %arg7[%c0_10, %c0_11] : memref<128x512xf32, #tpu.memory_space<vmem>>, vector<128x512xf32>
      %c0_12 = arith.constant 0 : index
      %c0_13 = arith.constant 0 : index
      %13 = vector.load %arg5[%c0_12, %c0_13] : memref<1x512xf32, #tpu.memory_space<vmem>>, vector<1x512xf32>
      %14 = vector.broadcast %13 : vector<1x512xf32> to vector<128x512xf32>
      %15 = arith.addf %12, %14 : vector<128x512xf32>
      %c0_14 = arith.constant 0 : index
      %c0_15 = arith.constant 0 : index
      %16 = vector.load %arg6[%c0_14, %c0_15] : memref<128x512xf32, #tpu.memory_space<vmem>>, vector<128x512xf32>
      tpu.vector_store %arg6[%c0_14, %c0_15], %15 {strides = array<i32>} : memref<128x512xf32, #tpu.memory_space<vmem>>, vector<128x512xf32>,
    } else {
    }
    return
  }
  func.func @transform_0(%arg0: i32, %arg1: i32, %arg2: i32) -> (i32, i32) {
    %c0_i32 = arith.constant 0 : i32
    return %arg0, %arg2 : i32, i32
  }
  func.func @transform_1(%arg0: i32, %arg1: i32, %arg2: i32) -> (i32, i32) {
    %c0_i32 = arith.constant 0 : i32
    return %arg2, %arg1 : i32, i32
  }
  func.func @transform_2(%arg0: i32, %arg1: i32, %arg2: i32) -> (i32, i32) {
    %c0_i32 = arith.constant 0 : i32
    %c0_i32_0 = arith.constant 0 : i32
    return %c0_i32, %arg1 : i32, i32
  }
  func.func @transform_3(%arg0: i32, %arg1: i32, %arg2: i32) -> (i32, i32) {
    %c0_i32 = arith.constant 0 : i32
    return %arg0, %arg1 : i32, i32
  }
}

module attributes {stable_mosaic.version = 11 : i64} {
  func.func @matmul_bias_kernel(%arg0: i32, %arg1: i32, %arg2: i32, %arg3: memref<128x128xf32, #tpu.memory_space<vmem>>, %arg4: memref<128x256xf32, #tpu.memory_space<vmem>>, %arg5: memref<1x256xf32, #tpu.memory_space<vmem>>, %arg6: memref<128x256xf32, #tpu.memory_space<vmem>>, %arg7: memref<128x256xf32, #tpu.memory_space<vmem>>) attributes {dimension_semantics = [#tpu.dimension_semantics<parallel>, #tpu.dimension_semantics<parallel>, #tpu.dimension_semantics<arbitrary>], iteration_bounds = array<i64: 1, 1, 1>, scalar_prefetch = 0 : i64, scratch_operands = 1 : i64, tpu.core_type = #tpu.core_type<tc>, window_params = [{transform_indices = @transform_0, window_bounds = array<i64: 128, 128>}, {transform_indices = @transform_1, window_bounds = array<i64: 128, 256>}, {transform_indices = @transform_2, window_bounds = array<i64: 1, 256>}, {transform_indices = @transform_3, window_bounds = array<i64: 128, 256>}]} {
    %c0_i32 = arith.constant 0 : i32
    %0 = arith.cmpi eq, %arg2, %c0_i32 : i32
    %1 = arith.extui %0 : i1 to i32
    %c0_i32_0 = arith.constant 0 : i32
    %2 = arith.cmpi ne, %1, %c0_i32_0 : i32
    scf.if %2 {
      %cst_10 = arith.constant 0.000000e+00 : f32
      %12 = vector.broadcast %cst_10 : f32 to vector<128x256xf32>
      %c0_11 = arith.constant 0 : index
      %c0_12 = arith.constant 0 : index
      %13 = vector.load %arg7[%c0_11, %c0_12] : memref<128x256xf32, #tpu.memory_space<vmem>>, vector<128x256xf32>
      tpu.vector_store %arg7[%c0_11, %c0_12], %12 {strides = array<i32>} : memref<128x256xf32, #tpu.memory_space<vmem>>, vector<128x256xf32>,
    } else {
    }
    %c0 = arith.constant 0 : index
    %c0_1 = arith.constant 0 : index
    %3 = vector.load %arg7[%c0, %c0_1] : memref<128x256xf32, #tpu.memory_space<vmem>>, vector<128x256xf32>
    %c0_2 = arith.constant 0 : index
    %c0_3 = arith.constant 0 : index
    %4 = vector.load %arg3[%c0_2, %c0_3] : memref<128x128xf32, #tpu.memory_space<vmem>>, vector<128x128xf32>
    %c0_4 = arith.constant 0 : index
    %c0_5 = arith.constant 0 : index
    %5 = vector.load %arg4[%c0_4, %c0_5] : memref<128x256xf32, #tpu.memory_space<vmem>>, vector<128x256xf32>
    %cst = arith.constant dense<0.000000e+00> : vector<128x256xf32>
    %6 = tpu.matmul %4, %5, %cst {dimension_numbers = #tpu.dot_dimension_numbers<[1], [0], [0], [1], [0, 0, 1, 1], [], []>} : vector<128x128xf32>, vector<128x256xf32>, vector<128x256xf32> -> vector<128x256xf32>
    %7 = arith.addf %3, %6 : vector<128x256xf32>
    %c0_6 = arith.constant 0 : index
    %c0_7 = arith.constant 0 : index
    %8 = vector.load %arg7[%c0_6, %c0_7] : memref<128x256xf32, #tpu.memory_space<vmem>>, vector<128x256xf32>
    tpu.vector_store %arg7[%c0_6, %c0_7], %7 {strides = array<i32>} : memref<128x256xf32, #tpu.memory_space<vmem>>, vector<128x256xf32>,
    %c0_i32_8 = arith.constant 0 : i32
    %9 = arith.cmpi eq, %arg2, %c0_i32_8 : i32
    %10 = arith.extui %9 : i1 to i32
    %c0_i32_9 = arith.constant 0 : i32
    %11 = arith.cmpi ne, %10, %c0_i32_9 : i32
    scf.if %11 {
      %c0_10 = arith.constant 0 : index
      %c0_11 = arith.constant 0 : index
      %12 = vector.load %arg7[%c0_10, %c0_11] : memref<128x256xf32, #tpu.memory_space<vmem>>, vector<128x256xf32>
      %c0_12 = arith.constant 0 : index
      %c0_13 = arith.constant 0 : index
      %13 = vector.load %arg5[%c0_12, %c0_13] : memref<1x256xf32, #tpu.memory_space<vmem>>, vector<1x256xf32>
      %14 = vector.broadcast %13 : vector<1x256xf32> to vector<128x256xf32>
      %15 = arith.addf %12, %14 : vector<128x256xf32>
      %c0_14 = arith.constant 0 : index
      %c0_15 = arith.constant 0 : index
      %16 = vector.load %arg6[%c0_14, %c0_15] : memref<128x256xf32, #tpu.memory_space<vmem>>, vector<128x256xf32>
      tpu.vector_store %arg6[%c0_14, %c0_15], %15 {strides = array<i32>} : memref<128x256xf32, #tpu.memory_space<vmem>>, vector<128x256xf32>,
    } else {
    }
    return
  }
  func.func @transform_0(%arg0: i32, %arg1: i32, %arg2: i32) -> (i32, i32) {
    %c0_i32 = arith.constant 0 : i32
    return %arg0, %arg2 : i32, i32
  }
  func.func @transform_1(%arg0: i32, %arg1: i32, %arg2: i32) -> (i32, i32) {
    %c0_i32 = arith.constant 0 : i32
    return %arg2, %arg1 : i32, i32
  }
  func.func @transform_2(%arg0: i32, %arg1: i32, %arg2: i32) -> (i32, i32) {
    %c0_i32 = arith.constant 0 : i32
    %c0_i32_0 = arith.constant 0 : i32
    return %c0_i32, %arg1 : i32, i32
  }
  func.func @transform_3(%arg0: i32, %arg1: i32, %arg2: i32) -> (i32, i32) {
    %c0_i32 = arith.constant 0 : i32
    return %arg0, %arg1 : i32, i32
  }
}

module attributes {stable_mosaic.version = 11 : i64} {
  func.func @lstm_kernel(%arg0: i32, %arg1: memref<8x8x512xf32, #tpu.memory_space<vmem>>, %arg2: memref<8x128xf32, #tpu.memory_space<vmem>>, %arg3: memref<8x128xf32, #tpu.memory_space<vmem>>, %arg4: memref<128x512xf32, #tpu.memory_space<vmem>>, %arg5: memref<8x8x128xf32, #tpu.memory_space<vmem>>, %arg6: memref<8x128xf32, #tpu.memory_space<vmem>>, %arg7: memref<8x128xf32, #tpu.memory_space<vmem>>, %arg8: memref<8x128xf32, #tpu.memory_space<vmem>>, %arg9: memref<8x128xf32, #tpu.memory_space<vmem>>) attributes {dimension_semantics = [#tpu.dimension_semantics<arbitrary>], iteration_bounds = array<i64: 2>, scalar_prefetch = 0 : i64, scratch_operands = 2 : i64, tpu.core_type = #tpu.core_type<tc>, window_params = [{transform_indices = @transform_0, window_bounds = array<i64: 8, 8, 512>}, {pipeline_mode = #tpu.pipeline_mode<synchronous>, transform_indices = @transform_1, window_bounds = array<i64: 8, 128>}, {pipeline_mode = #tpu.pipeline_mode<synchronous>, transform_indices = @transform_2, window_bounds = array<i64: 8, 128>}, {pipeline_mode = #tpu.pipeline_mode<synchronous>, transform_indices = @transform_3, window_bounds = array<i64: 128, 512>}, {transform_indices = @transform_4, window_bounds = array<i64: 8, 8, 128>}, {pipeline_mode = #tpu.pipeline_mode<synchronous>, transform_indices = @transform_5, window_bounds = array<i64: 8, 128>}, {pipeline_mode = #tpu.pipeline_mode<synchronous>, transform_indices = @transform_6, window_bounds = array<i64: 8, 128>}]} {
    %c0_i32 = arith.constant 0 : i32
    %0 = arith.cmpi eq, %arg0, %c0_i32 : i32
    %1 = arith.extui %0 : i1 to i32
    %c0_i32_0 = arith.constant 0 : i32
    %2 = arith.cmpi ne, %1, %c0_i32_0 : i32
    scf.if %2 {
      %c0_83 = arith.constant 0 : index
      %c0_84 = arith.constant 0 : index
      %267 = vector.load %arg2[%c0_83, %c0_84] : memref<8x128xf32, #tpu.memory_space<vmem>>, vector<8x128xf32>
      %c0_85 = arith.constant 0 : index
      %c0_86 = arith.constant 0 : index
      %268 = vector.load %arg8[%c0_85, %c0_86] : memref<8x128xf32, #tpu.memory_space<vmem>>, vector<8x128xf32>
      tpu.vector_store %arg8[%c0_85, %c0_86], %267 {strides = array<i32>} : memref<8x128xf32, #tpu.memory_space<vmem>>, vector<8x128xf32>,
      %c0_87 = arith.constant 0 : index
      %c0_88 = arith.constant 0 : index
      %269 = vector.load %arg3[%c0_87, %c0_88] : memref<8x128xf32, #tpu.memory_space<vmem>>, vector<8x128xf32>
      %c0_89 = arith.constant 0 : index
      %c0_90 = arith.constant 0 : index
      %270 = vector.load %arg9[%c0_89, %c0_90] : memref<8x128xf32, #tpu.memory_space<vmem>>, vector<8x128xf32>
      tpu.vector_store %arg9[%c0_89, %c0_90], %269 {strides = array<i32>} : memref<8x128xf32, #tpu.memory_space<vmem>>, vector<8x128xf32>,
    } else {
    }
    %c0 = arith.constant 0 : index
    %c0_1 = arith.constant 0 : index
    %3 = vector.load %arg8[%c0, %c0_1] : memref<8x128xf32, #tpu.memory_space<vmem>>, vector<8x128xf32>
    %c0_2 = arith.constant 0 : index
    %c0_3 = arith.constant 0 : index
    %4 = vector.load %arg9[%c0_2, %c0_3] : memref<8x128xf32, #tpu.memory_space<vmem>>, vector<8x128xf32>
    %c0_4 = arith.constant 0 : index
    %c0_5 = arith.constant 0 : index
    %5 = vector.load %arg4[%c0_4, %c0_5] : memref<128x512xf32, #tpu.memory_space<vmem>>, vector<128x512xf32>
    %c0_6 = arith.constant 0 : index
    %c0_7 = arith.constant 0 : index
    %c0_8 = arith.constant 0 : index
    %6 = vector.load %arg1[%c0_6, %c0_7, %c0_8] : memref<8x8x512xf32, #tpu.memory_space<vmem>>, vector<8x1x512xf32>
    %7 = vector.shape_cast %6 : vector<8x1x512xf32> to vector<8x512xf32>
    %cst = arith.constant dense<0.000000e+00> : vector<8x512xf32>
    %8 = tpu.matmul %3, %5, %cst {dimension_numbers = #tpu.dot_dimension_numbers<[1], [0], [0], [1], [0, 0, 1, 1], [], []>} : vector<8x128xf32>, vector<128x512xf32>, vector<8x512xf32> -> vector<8x512xf32>
    %9 = arith.addf %7, %8 : vector<8x512xf32>
    %10 = vector.extract_strided_slice %9 {offsets = [0, 0], sizes = [8, 128], strides = [1, 1]} : vector<8x512xf32> to vector<8x128xf32>
    %11 = arith.negf %10 : vector<8x128xf32>
    %12 = math.exp %11 : vector<8x128xf32>
    %cst_9 = arith.constant 1.000000e+00 : f32
    %13 = vector.broadcast %cst_9 : f32 to vector<8x128xf32>
    %14 = arith.addf %13, %12 : vector<8x128xf32>
    %15 = arith.divf %13, %14 : vector<8x128xf32>
    %16 = vector.extract_strided_slice %9 {offsets = [0, 128], sizes = [8, 128], strides = [1, 1]} : vector<8x512xf32> to vector<8x128xf32>
    %17 = arith.negf %16 : vector<8x128xf32>
    %18 = math.exp %17 : vector<8x128xf32>
    %cst_10 = arith.constant 1.000000e+00 : f32
    %19 = vector.broadcast %cst_10 : f32 to vector<8x128xf32>
    %20 = arith.addf %19, %18 : vector<8x128xf32>
    %21 = arith.divf %19, %20 : vector<8x128xf32>
    %22 = vector.extract_strided_slice %9 {offsets = [0, 256], sizes = [8, 128], strides = [1, 1]} : vector<8x512xf32> to vector<8x128xf32>
    %23 = math.tanh %22 : vector<8x128xf32>
    %24 = vector.extract_strided_slice %9 {offsets = [0, 384], sizes = [8, 128], strides = [1, 1]} : vector<8x512xf32> to vector<8x128xf32>
    %25 = arith.negf %24 : vector<8x128xf32>
    %26 = math.exp %25 : vector<8x128xf32>
    %cst_11 = arith.constant 1.000000e+00 : f32
    %27 = vector.broadcast %cst_11 : f32 to vector<8x128xf32>
    %28 = arith.addf %27, %26 : vector<8x128xf32>
    %29 = arith.divf %27, %28 : vector<8x128xf32>
    %30 = arith.mulf %21, %4 : vector<8x128xf32>
    %31 = arith.mulf %15, %23 : vector<8x128xf32>
    %32 = arith.addf %30, %31 : vector<8x128xf32>
    %33 = math.tanh %32 : vector<8x128xf32>
    %34 = arith.mulf %29, %33 : vector<8x128xf32>
    %c0_12 = arith.constant 0 : index
    %c0_13 = arith.constant 0 : index
    %c0_14 = arith.constant 0 : index
    %35 = vector.load %arg5[%c0_12, %c0_13, %c0_14] : memref<8x8x128xf32, #tpu.memory_space<vmem>>, vector<8x1x128xf32>
    %36 = vector.shape_cast %35 : vector<8x1x128xf32> to vector<8x128xf32>
    %37 = vector.shape_cast %34 : vector<8x128xf32> to vector<8x1x128xf32>
    tpu.vector_store %arg5[%c0_12, %c0_13, %c0_14], %37 {strides = array<i32>} : memref<8x8x128xf32, #tpu.memory_space<vmem>>, vector<8x1x128xf32>,
    %c0_15 = arith.constant 0 : index
    %c1 = arith.constant 1 : index
    %c0_16 = arith.constant 0 : index
    %38 = vector.load %arg1[%c0_15, %c1, %c0_16] : memref<8x8x512xf32, #tpu.memory_space<vmem>>, vector<8x1x512xf32>
    %39 = vector.shape_cast %38 : vector<8x1x512xf32> to vector<8x512xf32>
    %cst_17 = arith.constant dense<0.000000e+00> : vector<8x512xf32>
    %40 = tpu.matmul %34, %5, %cst_17 {dimension_numbers = #tpu.dot_dimension_numbers<[1], [0], [0], [1], [0, 0, 1, 1], [], []>} : vector<8x128xf32>, vector<128x512xf32>, vector<8x512xf32> -> vector<8x512xf32>
    %41 = arith.addf %39, %40 : vector<8x512xf32>
    %42 = vector.extract_strided_slice %41 {offsets = [0, 0], sizes = [8, 128], strides = [1, 1]} : vector<8x512xf32> to vector<8x128xf32>
    %43 = arith.negf %42 : vector<8x128xf32>
    %44 = math.exp %43 : vector<8x128xf32>
    %cst_18 = arith.constant 1.000000e+00 : f32
    %45 = vector.broadcast %cst_18 : f32 to vector<8x128xf32>
    %46 = arith.addf %45, %44 : vector<8x128xf32>
    %47 = arith.divf %45, %46 : vector<8x128xf32>
    %48 = vector.extract_strided_slice %41 {offsets = [0, 128], sizes = [8, 128], strides = [1, 1]} : vector<8x512xf32> to vector<8x128xf32>
    %49 = arith.negf %48 : vector<8x128xf32>
    %50 = math.exp %49 : vector<8x128xf32>
    %cst_19 = arith.constant 1.000000e+00 : f32
    %51 = vector.broadcast %cst_19 : f32 to vector<8x128xf32>
    %52 = arith.addf %51, %50 : vector<8x128xf32>
    %53 = arith.divf %51, %52 : vector<8x128xf32>
    %54 = vector.extract_strided_slice %41 {offsets = [0, 256], sizes = [8, 128], strides = [1, 1]} : vector<8x512xf32> to vector<8x128xf32>
    %55 = math.tanh %54 : vector<8x128xf32>
    %56 = vector.extract_strided_slice %41 {offsets = [0, 384], sizes = [8, 128], strides = [1, 1]} : vector<8x512xf32> to vector<8x128xf32>
    %57 = arith.negf %56 : vector<8x128xf32>
    %58 = math.exp %57 : vector<8x128xf32>
    %cst_20 = arith.constant 1.000000e+00 : f32
    %59 = vector.broadcast %cst_20 : f32 to vector<8x128xf32>
    %60 = arith.addf %59, %58 : vector<8x128xf32>
    %61 = arith.divf %59, %60 : vector<8x128xf32>
    %62 = arith.mulf %53, %32 : vector<8x128xf32>
    %63 = arith.mulf %47, %55 : vector<8x128xf32>
    %64 = arith.addf %62, %63 : vector<8x128xf32>
    %65 = math.tanh %64 : vector<8x128xf32>
    %66 = arith.mulf %61, %65 : vector<8x128xf32>
    %c0_21 = arith.constant 0 : index
    %c1_22 = arith.constant 1 : index
    %c0_23 = arith.constant 0 : index
    %67 = vector.load %arg5[%c0_21, %c1_22, %c0_23] : memref<8x8x128xf32, #tpu.memory_space<vmem>>, vector<8x1x128xf32>
    %68 = vector.shape_cast %67 : vector<8x1x128xf32> to vector<8x128xf32>
    %69 = vector.shape_cast %66 : vector<8x128xf32> to vector<8x1x128xf32>
    tpu.vector_store %arg5[%c0_21, %c1_22, %c0_23], %69 {strides = array<i32>} : memref<8x8x128xf32, #tpu.memory_space<vmem>>, vector<8x1x128xf32>,
    %c0_24 = arith.constant 0 : index
    %c2 = arith.constant 2 : index
    %c0_25 = arith.constant 0 : index
    %70 = vector.load %arg1[%c0_24, %c2, %c0_25] : memref<8x8x512xf32, #tpu.memory_space<vmem>>, vector<8x1x512xf32>
    %71 = vector.shape_cast %70 : vector<8x1x512xf32> to vector<8x512xf32>
    %cst_26 = arith.constant dense<0.000000e+00> : vector<8x512xf32>
    %72 = tpu.matmul %66, %5, %cst_26 {dimension_numbers = #tpu.dot_dimension_numbers<[1], [0], [0], [1], [0, 0, 1, 1], [], []>} : vector<8x128xf32>, vector<128x512xf32>, vector<8x512xf32> -> vector<8x512xf32>
    %73 = arith.addf %71, %72 : vector<8x512xf32>
    %74 = vector.extract_strided_slice %73 {offsets = [0, 0], sizes = [8, 128], strides = [1, 1]} : vector<8x512xf32> to vector<8x128xf32>
    %75 = arith.negf %74 : vector<8x128xf32>
    %76 = math.exp %75 : vector<8x128xf32>
    %cst_27 = arith.constant 1.000000e+00 : f32
    %77 = vector.broadcast %cst_27 : f32 to vector<8x128xf32>
    %78 = arith.addf %77, %76 : vector<8x128xf32>
    %79 = arith.divf %77, %78 : vector<8x128xf32>
    %80 = vector.extract_strided_slice %73 {offsets = [0, 128], sizes = [8, 128], strides = [1, 1]} : vector<8x512xf32> to vector<8x128xf32>
    %81 = arith.negf %80 : vector<8x128xf32>
    %82 = math.exp %81 : vector<8x128xf32>
    %cst_28 = arith.constant 1.000000e+00 : f32
    %83 = vector.broadcast %cst_28 : f32 to vector<8x128xf32>
    %84 = arith.addf %83, %82 : vector<8x128xf32>
    %85 = arith.divf %83, %84 : vector<8x128xf32>
    %86 = vector.extract_strided_slice %73 {offsets = [0, 256], sizes = [8, 128], strides = [1, 1]} : vector<8x512xf32> to vector<8x128xf32>
    %87 = math.tanh %86 : vector<8x128xf32>
    %88 = vector.extract_strided_slice %73 {offsets = [0, 384], sizes = [8, 128], strides = [1, 1]} : vector<8x512xf32> to vector<8x128xf32>
    %89 = arith.negf %88 : vector<8x128xf32>
    %90 = math.exp %89 : vector<8x128xf32>
    %cst_29 = arith.constant 1.000000e+00 : f32
    %91 = vector.broadcast %cst_29 : f32 to vector<8x128xf32>
    %92 = arith.addf %91, %90 : vector<8x128xf32>
    %93 = arith.divf %91, %92 : vector<8x128xf32>
    %94 = arith.mulf %85, %64 : vector<8x128xf32>
    %95 = arith.mulf %79, %87 : vector<8x128xf32>
    %96 = arith.addf %94, %95 : vector<8x128xf32>
    %97 = math.tanh %96 : vector<8x128xf32>
    %98 = arith.mulf %93, %97 : vector<8x128xf32>
    %c0_30 = arith.constant 0 : index
    %c2_31 = arith.constant 2 : index
    %c0_32 = arith.constant 0 : index
    %99 = vector.load %arg5[%c0_30, %c2_31, %c0_32] : memref<8x8x128xf32, #tpu.memory_space<vmem>>, vector<8x1x128xf32>
    %100 = vector.shape_cast %99 : vector<8x1x128xf32> to vector<8x128xf32>
    %101 = vector.shape_cast %98 : vector<8x128xf32> to vector<8x1x128xf32>
    tpu.vector_store %arg5[%c0_30, %c2_31, %c0_32], %101 {strides = array<i32>} : memref<8x8x128xf32, #tpu.memory_space<vmem>>, vector<8x1x128xf32>,
    %c0_33 = arith.constant 0 : index
    %c3 = arith.constant 3 : index
    %c0_34 = arith.constant 0 : index
    %102 = vector.load %arg1[%c0_33, %c3, %c0_34] : memref<8x8x512xf32, #tpu.memory_space<vmem>>, vector<8x1x512xf32>
    %103 = vector.shape_cast %102 : vector<8x1x512xf32> to vector<8x512xf32>
    %cst_35 = arith.constant dense<0.000000e+00> : vector<8x512xf32>
    %104 = tpu.matmul %98, %5, %cst_35 {dimension_numbers = #tpu.dot_dimension_numbers<[1], [0], [0], [1], [0, 0, 1, 1], [], []>} : vector<8x128xf32>, vector<128x512xf32>, vector<8x512xf32> -> vector<8x512xf32>
    %105 = arith.addf %103, %104 : vector<8x512xf32>
    %106 = vector.extract_strided_slice %105 {offsets = [0, 0], sizes = [8, 128], strides = [1, 1]} : vector<8x512xf32> to vector<8x128xf32>
    %107 = arith.negf %106 : vector<8x128xf32>
    %108 = math.exp %107 : vector<8x128xf32>
    %cst_36 = arith.constant 1.000000e+00 : f32
    %109 = vector.broadcast %cst_36 : f32 to vector<8x128xf32>
    %110 = arith.addf %109, %108 : vector<8x128xf32>
    %111 = arith.divf %109, %110 : vector<8x128xf32>
    %112 = vector.extract_strided_slice %105 {offsets = [0, 128], sizes = [8, 128], strides = [1, 1]} : vector<8x512xf32> to vector<8x128xf32>
    %113 = arith.negf %112 : vector<8x128xf32>
    %114 = math.exp %113 : vector<8x128xf32>
    %cst_37 = arith.constant 1.000000e+00 : f32
    %115 = vector.broadcast %cst_37 : f32 to vector<8x128xf32>
    %116 = arith.addf %115, %114 : vector<8x128xf32>
    %117 = arith.divf %115, %116 : vector<8x128xf32>
    %118 = vector.extract_strided_slice %105 {offsets = [0, 256], sizes = [8, 128], strides = [1, 1]} : vector<8x512xf32> to vector<8x128xf32>
    %119 = math.tanh %118 : vector<8x128xf32>
    %120 = vector.extract_strided_slice %105 {offsets = [0, 384], sizes = [8, 128], strides = [1, 1]} : vector<8x512xf32> to vector<8x128xf32>
    %121 = arith.negf %120 : vector<8x128xf32>
    %122 = math.exp %121 : vector<8x128xf32>
    %cst_38 = arith.constant 1.000000e+00 : f32
    %123 = vector.broadcast %cst_38 : f32 to vector<8x128xf32>
    %124 = arith.addf %123, %122 : vector<8x128xf32>
    %125 = arith.divf %123, %124 : vector<8x128xf32>
    %126 = arith.mulf %117, %96 : vector<8x128xf32>
    %127 = arith.mulf %111, %119 : vector<8x128xf32>
    %128 = arith.addf %126, %127 : vector<8x128xf32>
    %129 = math.tanh %128 : vector<8x128xf32>
    %130 = arith.mulf %125, %129 : vector<8x128xf32>
    %c0_39 = arith.constant 0 : index
    %c3_40 = arith.constant 3 : index
    %c0_41 = arith.constant 0 : index
    %131 = vector.load %arg5[%c0_39, %c3_40, %c0_41] : memref<8x8x128xf32, #tpu.memory_space<vmem>>, vector<8x1x128xf32>
    %132 = vector.shape_cast %131 : vector<8x1x128xf32> to vector<8x128xf32>
    %133 = vector.shape_cast %130 : vector<8x128xf32> to vector<8x1x128xf32>
    tpu.vector_store %arg5[%c0_39, %c3_40, %c0_41], %133 {strides = array<i32>} : memref<8x8x128xf32, #tpu.memory_space<vmem>>, vector<8x1x128xf32>,
    %c0_42 = arith.constant 0 : index
    %c4 = arith.constant 4 : index
    %c0_43 = arith.constant 0 : index
    %134 = vector.load %arg1[%c0_42, %c4, %c0_43] : memref<8x8x512xf32, #tpu.memory_space<vmem>>, vector<8x1x512xf32>
    %135 = vector.shape_cast %134 : vector<8x1x512xf32> to vector<8x512xf32>
    %cst_44 = arith.constant dense<0.000000e+00> : vector<8x512xf32>
    %136 = tpu.matmul %130, %5, %cst_44 {dimension_numbers = #tpu.dot_dimension_numbers<[1], [0], [0], [1], [0, 0, 1, 1], [], []>} : vector<8x128xf32>, vector<128x512xf32>, vector<8x512xf32> -> vector<8x512xf32>
    %137 = arith.addf %135, %136 : vector<8x512xf32>
    %138 = vector.extract_strided_slice %137 {offsets = [0, 0], sizes = [8, 128], strides = [1, 1]} : vector<8x512xf32> to vector<8x128xf32>
    %139 = arith.negf %138 : vector<8x128xf32>
    %140 = math.exp %139 : vector<8x128xf32>
    %cst_45 = arith.constant 1.000000e+00 : f32
    %141 = vector.broadcast %cst_45 : f32 to vector<8x128xf32>
    %142 = arith.addf %141, %140 : vector<8x128xf32>
    %143 = arith.divf %141, %142 : vector<8x128xf32>
    %144 = vector.extract_strided_slice %137 {offsets = [0, 128], sizes = [8, 128], strides = [1, 1]} : vector<8x512xf32> to vector<8x128xf32>
    %145 = arith.negf %144 : vector<8x128xf32>
    %146 = math.exp %145 : vector<8x128xf32>
    %cst_46 = arith.constant 1.000000e+00 : f32
    %147 = vector.broadcast %cst_46 : f32 to vector<8x128xf32>
    %148 = arith.addf %147, %146 : vector<8x128xf32>
    %149 = arith.divf %147, %148 : vector<8x128xf32>
    %150 = vector.extract_strided_slice %137 {offsets = [0, 256], sizes = [8, 128], strides = [1, 1]} : vector<8x512xf32> to vector<8x128xf32>
    %151 = math.tanh %150 : vector<8x128xf32>
    %152 = vector.extract_strided_slice %137 {offsets = [0, 384], sizes = [8, 128], strides = [1, 1]} : vector<8x512xf32> to vector<8x128xf32>
    %153 = arith.negf %152 : vector<8x128xf32>
    %154 = math.exp %153 : vector<8x128xf32>
    %cst_47 = arith.constant 1.000000e+00 : f32
    %155 = vector.broadcast %cst_47 : f32 to vector<8x128xf32>
    %156 = arith.addf %155, %154 : vector<8x128xf32>
    %157 = arith.divf %155, %156 : vector<8x128xf32>
    %158 = arith.mulf %149, %128 : vector<8x128xf32>
    %159 = arith.mulf %143, %151 : vector<8x128xf32>
    %160 = arith.addf %158, %159 : vector<8x128xf32>
    %161 = math.tanh %160 : vector<8x128xf32>
    %162 = arith.mulf %157, %161 : vector<8x128xf32>
    %c0_48 = arith.constant 0 : index
    %c4_49 = arith.constant 4 : index
    %c0_50 = arith.constant 0 : index
    %163 = vector.load %arg5[%c0_48, %c4_49, %c0_50] : memref<8x8x128xf32, #tpu.memory_space<vmem>>, vector<8x1x128xf32>
    %164 = vector.shape_cast %163 : vector<8x1x128xf32> to vector<8x128xf32>
    %165 = vector.shape_cast %162 : vector<8x128xf32> to vector<8x1x128xf32>
    tpu.vector_store %arg5[%c0_48, %c4_49, %c0_50], %165 {strides = array<i32>} : memref<8x8x128xf32, #tpu.memory_space<vmem>>, vector<8x1x128xf32>,
    %c0_51 = arith.constant 0 : index
    %c5 = arith.constant 5 : index
    %c0_52 = arith.constant 0 : index
    %166 = vector.load %arg1[%c0_51, %c5, %c0_52] : memref<8x8x512xf32, #tpu.memory_space<vmem>>, vector<8x1x512xf32>
    %167 = vector.shape_cast %166 : vector<8x1x512xf32> to vector<8x512xf32>
    %cst_53 = arith.constant dense<0.000000e+00> : vector<8x512xf32>
    %168 = tpu.matmul %162, %5, %cst_53 {dimension_numbers = #tpu.dot_dimension_numbers<[1], [0], [0], [1], [0, 0, 1, 1], [], []>} : vector<8x128xf32>, vector<128x512xf32>, vector<8x512xf32> -> vector<8x512xf32>
    %169 = arith.addf %167, %168 : vector<8x512xf32>
    %170 = vector.extract_strided_slice %169 {offsets = [0, 0], sizes = [8, 128], strides = [1, 1]} : vector<8x512xf32> to vector<8x128xf32>
    %171 = arith.negf %170 : vector<8x128xf32>
    %172 = math.exp %171 : vector<8x128xf32>
    %cst_54 = arith.constant 1.000000e+00 : f32
    %173 = vector.broadcast %cst_54 : f32 to vector<8x128xf32>
    %174 = arith.addf %173, %172 : vector<8x128xf32>
    %175 = arith.divf %173, %174 : vector<8x128xf32>
    %176 = vector.extract_strided_slice %169 {offsets = [0, 128], sizes = [8, 128], strides = [1, 1]} : vector<8x512xf32> to vector<8x128xf32>
    %177 = arith.negf %176 : vector<8x128xf32>
    %178 = math.exp %177 : vector<8x128xf32>
    %cst_55 = arith.constant 1.000000e+00 : f32
    %179 = vector.broadcast %cst_55 : f32 to vector<8x128xf32>
    %180 = arith.addf %179, %178 : vector<8x128xf32>
    %181 = arith.divf %179, %180 : vector<8x128xf32>
    %182 = vector.extract_strided_slice %169 {offsets = [0, 256], sizes = [8, 128], strides = [1, 1]} : vector<8x512xf32> to vector<8x128xf32>
    %183 = math.tanh %182 : vector<8x128xf32>
    %184 = vector.extract_strided_slice %169 {offsets = [0, 384], sizes = [8, 128], strides = [1, 1]} : vector<8x512xf32> to vector<8x128xf32>
    %185 = arith.negf %184 : vector<8x128xf32>
    %186 = math.exp %185 : vector<8x128xf32>
    %cst_56 = arith.constant 1.000000e+00 : f32
    %187 = vector.broadcast %cst_56 : f32 to vector<8x128xf32>
    %188 = arith.addf %187, %186 : vector<8x128xf32>
    %189 = arith.divf %187, %188 : vector<8x128xf32>
    %190 = arith.mulf %181, %160 : vector<8x128xf32>
    %191 = arith.mulf %175, %183 : vector<8x128xf32>
    %192 = arith.addf %190, %191 : vector<8x128xf32>
    %193 = math.tanh %192 : vector<8x128xf32>
    %194 = arith.mulf %189, %193 : vector<8x128xf32>
    %c0_57 = arith.constant 0 : index
    %c5_58 = arith.constant 5 : index
    %c0_59 = arith.constant 0 : index
    %195 = vector.load %arg5[%c0_57, %c5_58, %c0_59] : memref<8x8x128xf32, #tpu.memory_space<vmem>>, vector<8x1x128xf32>
    %196 = vector.shape_cast %195 : vector<8x1x128xf32> to vector<8x128xf32>
    %197 = vector.shape_cast %194 : vector<8x128xf32> to vector<8x1x128xf32>
    tpu.vector_store %arg5[%c0_57, %c5_58, %c0_59], %197 {strides = array<i32>} : memref<8x8x128xf32, #tpu.memory_space<vmem>>, vector<8x1x128xf32>,
    %c0_60 = arith.constant 0 : index
    %c6 = arith.constant 6 : index
    %c0_61 = arith.constant 0 : index
    %198 = vector.load %arg1[%c0_60, %c6, %c0_61] : memref<8x8x512xf32, #tpu.memory_space<vmem>>, vector<8x1x512xf32>
    %199 = vector.shape_cast %198 : vector<8x1x512xf32> to vector<8x512xf32>
    %cst_62 = arith.constant dense<0.000000e+00> : vector<8x512xf32>
    %200 = tpu.matmul %194, %5, %cst_62 {dimension_numbers = #tpu.dot_dimension_numbers<[1], [0], [0], [1], [0, 0, 1, 1], [], []>} : vector<8x128xf32>, vector<128x512xf32>, vector<8x512xf32> -> vector<8x512xf32>
    %201 = arith.addf %199, %200 : vector<8x512xf32>
    %202 = vector.extract_strided_slice %201 {offsets = [0, 0], sizes = [8, 128], strides = [1, 1]} : vector<8x512xf32> to vector<8x128xf32>
    %203 = arith.negf %202 : vector<8x128xf32>
    %204 = math.exp %203 : vector<8x128xf32>
    %cst_63 = arith.constant 1.000000e+00 : f32
    %205 = vector.broadcast %cst_63 : f32 to vector<8x128xf32>
    %206 = arith.addf %205, %204 : vector<8x128xf32>
    %207 = arith.divf %205, %206 : vector<8x128xf32>
    %208 = vector.extract_strided_slice %201 {offsets = [0, 128], sizes = [8, 128], strides = [1, 1]} : vector<8x512xf32> to vector<8x128xf32>
    %209 = arith.negf %208 : vector<8x128xf32>
    %210 = math.exp %209 : vector<8x128xf32>
    %cst_64 = arith.constant 1.000000e+00 : f32
    %211 = vector.broadcast %cst_64 : f32 to vector<8x128xf32>
    %212 = arith.addf %211, %210 : vector<8x128xf32>
    %213 = arith.divf %211, %212 : vector<8x128xf32>
    %214 = vector.extract_strided_slice %201 {offsets = [0, 256], sizes = [8, 128], strides = [1, 1]} : vector<8x512xf32> to vector<8x128xf32>
    %215 = math.tanh %214 : vector<8x128xf32>
    %216 = vector.extract_strided_slice %201 {offsets = [0, 384], sizes = [8, 128], strides = [1, 1]} : vector<8x512xf32> to vector<8x128xf32>
    %217 = arith.negf %216 : vector<8x128xf32>
    %218 = math.exp %217 : vector<8x128xf32>
    %cst_65 = arith.constant 1.000000e+00 : f32
    %219 = vector.broadcast %cst_65 : f32 to vector<8x128xf32>
    %220 = arith.addf %219, %218 : vector<8x128xf32>
    %221 = arith.divf %219, %220 : vector<8x128xf32>
    %222 = arith.mulf %213, %192 : vector<8x128xf32>
    %223 = arith.mulf %207, %215 : vector<8x128xf32>
    %224 = arith.addf %222, %223 : vector<8x128xf32>
    %225 = math.tanh %224 : vector<8x128xf32>
    %226 = arith.mulf %221, %225 : vector<8x128xf32>
    %c0_66 = arith.constant 0 : index
    %c6_67 = arith.constant 6 : index
    %c0_68 = arith.constant 0 : index
    %227 = vector.load %arg5[%c0_66, %c6_67, %c0_68] : memref<8x8x128xf32, #tpu.memory_space<vmem>>, vector<8x1x128xf32>
    %228 = vector.shape_cast %227 : vector<8x1x128xf32> to vector<8x128xf32>
    %229 = vector.shape_cast %226 : vector<8x128xf32> to vector<8x1x128xf32>
    tpu.vector_store %arg5[%c0_66, %c6_67, %c0_68], %229 {strides = array<i32>} : memref<8x8x128xf32, #tpu.memory_space<vmem>>, vector<8x1x128xf32>,
    %c0_69 = arith.constant 0 : index
    %c7 = arith.constant 7 : index
    %c0_70 = arith.constant 0 : index
    %230 = vector.load %arg1[%c0_69, %c7, %c0_70] : memref<8x8x512xf32, #tpu.memory_space<vmem>>, vector<8x1x512xf32>
    %231 = vector.shape_cast %230 : vector<8x1x512xf32> to vector<8x512xf32>
    %cst_71 = arith.constant dense<0.000000e+00> : vector<8x512xf32>
    %232 = tpu.matmul %226, %5, %cst_71 {dimension_numbers = #tpu.dot_dimension_numbers<[1], [0], [0], [1], [0, 0, 1, 1], [], []>} : vector<8x128xf32>, vector<128x512xf32>, vector<8x512xf32> -> vector<8x512xf32>
    %233 = arith.addf %231, %232 : vector<8x512xf32>
    %234 = vector.extract_strided_slice %233 {offsets = [0, 0], sizes = [8, 128], strides = [1, 1]} : vector<8x512xf32> to vector<8x128xf32>
    %235 = arith.negf %234 : vector<8x128xf32>
    %236 = math.exp %235 : vector<8x128xf32>
    %cst_72 = arith.constant 1.000000e+00 : f32
    %237 = vector.broadcast %cst_72 : f32 to vector<8x128xf32>
    %238 = arith.addf %237, %236 : vector<8x128xf32>
    %239 = arith.divf %237, %238 : vector<8x128xf32>
    %240 = vector.extract_strided_slice %233 {offsets = [0, 128], sizes = [8, 128], strides = [1, 1]} : vector<8x512xf32> to vector<8x128xf32>
    %241 = arith.negf %240 : vector<8x128xf32>
    %242 = math.exp %241 : vector<8x128xf32>
    %cst_73 = arith.constant 1.000000e+00 : f32
    %243 = vector.broadcast %cst_73 : f32 to vector<8x128xf32>
    %244 = arith.addf %243, %242 : vector<8x128xf32>
    %245 = arith.divf %243, %244 : vector<8x128xf32>
    %246 = vector.extract_strided_slice %233 {offsets = [0, 256], sizes = [8, 128], strides = [1, 1]} : vector<8x512xf32> to vector<8x128xf32>
    %247 = math.tanh %246 : vector<8x128xf32>
    %248 = vector.extract_strided_slice %233 {offsets = [0, 384], sizes = [8, 128], strides = [1, 1]} : vector<8x512xf32> to vector<8x128xf32>
    %249 = arith.negf %248 : vector<8x128xf32>
    %250 = math.exp %249 : vector<8x128xf32>
    %cst_74 = arith.constant 1.000000e+00 : f32
    %251 = vector.broadcast %cst_74 : f32 to vector<8x128xf32>
    %252 = arith.addf %251, %250 : vector<8x128xf32>
    %253 = arith.divf %251, %252 : vector<8x128xf32>
    %254 = arith.mulf %245, %224 : vector<8x128xf32>
    %255 = arith.mulf %239, %247 : vector<8x128xf32>
    %256 = arith.addf %254, %255 : vector<8x128xf32>
    %257 = math.tanh %256 : vector<8x128xf32>
    %258 = arith.mulf %253, %257 : vector<8x128xf32>
    %c0_75 = arith.constant 0 : index
    %c7_76 = arith.constant 7 : index
    %c0_77 = arith.constant 0 : index
    %259 = vector.load %arg5[%c0_75, %c7_76, %c0_77] : memref<8x8x128xf32, #tpu.memory_space<vmem>>, vector<8x1x128xf32>
    %260 = vector.shape_cast %259 : vector<8x1x128xf32> to vector<8x128xf32>
    %261 = vector.shape_cast %258 : vector<8x128xf32> to vector<8x1x128xf32>
    tpu.vector_store %arg5[%c0_75, %c7_76, %c0_77], %261 {strides = array<i32>} : memref<8x8x128xf32, #tpu.memory_space<vmem>>, vector<8x1x128xf32>,
    %c0_78 = arith.constant 0 : index
    %c0_79 = arith.constant 0 : index
    %262 = vector.load %arg8[%c0_78, %c0_79] : memref<8x128xf32, #tpu.memory_space<vmem>>, vector<8x128xf32>
    tpu.vector_store %arg8[%c0_78, %c0_79], %258 {strides = array<i32>} : memref<8x128xf32, #tpu.memory_space<vmem>>, vector<8x128xf32>,
    %c0_80 = arith.constant 0 : index
    %c0_81 = arith.constant 0 : index
    %263 = vector.load %arg9[%c0_80, %c0_81] : memref<8x128xf32, #tpu.memory_space<vmem>>, vector<8x128xf32>
    tpu.vector_store %arg9[%c0_80, %c0_81], %256 {strides = array<i32>} : memref<8x128xf32, #tpu.memory_space<vmem>>, vector<8x128xf32>,
    %c1_i32 = arith.constant 1 : i32
    %264 = arith.cmpi eq, %arg0, %c1_i32 : i32
    %265 = arith.extui %264 : i1 to i32
    %c0_i32_82 = arith.constant 0 : i32
    %266 = arith.cmpi ne, %265, %c0_i32_82 : i32
    scf.if %266 {
      %c0_83 = arith.constant 0 : index
      %c0_84 = arith.constant 0 : index
      %267 = vector.load %arg6[%c0_83, %c0_84] : memref<8x128xf32, #tpu.memory_space<vmem>>, vector<8x128xf32>
      tpu.vector_store %arg6[%c0_83, %c0_84], %258 {strides = array<i32>} : memref<8x128xf32, #tpu.memory_space<vmem>>, vector<8x128xf32>,
      %c0_85 = arith.constant 0 : index
      %c0_86 = arith.constant 0 : index
      %268 = vector.load %arg7[%c0_85, %c0_86] : memref<8x128xf32, #tpu.memory_space<vmem>>, vector<8x128xf32>
      tpu.vector_store %arg7[%c0_85, %c0_86], %256 {strides = array<i32>} : memref<8x128xf32, #tpu.memory_space<vmem>>, vector<8x128xf32>,
    } else {
    }
    return
  }
  func.func @transform_0(%arg0: i32) -> (i32, i32, i32) {
    %c0_i32 = arith.constant 0 : i32
    %c0_i32_0 = arith.constant 0 : i32
    %c0_i32_1 = arith.constant 0 : i32
    return %c0_i32, %arg0, %c0_i32_0 : i32, i32, i32
  }
  func.func @transform_1(%arg0: i32) -> (i32, i32) {
    %c0_i32 = arith.constant 0 : i32
    %c0_i32_0 = arith.constant 0 : i32
    %c0_i32_1 = arith.constant 0 : i32
    return %c0_i32, %c0_i32_0 : i32, i32
  }
  func.func @transform_2(%arg0: i32) -> (i32, i32) {
    %c0_i32 = arith.constant 0 : i32
    %c0_i32_0 = arith.constant 0 : i32
    %c0_i32_1 = arith.constant 0 : i32
    return %c0_i32, %c0_i32_0 : i32, i32
  }
  func.func @transform_3(%arg0: i32) -> (i32, i32) {
    %c0_i32 = arith.constant 0 : i32
    %c0_i32_0 = arith.constant 0 : i32
    %c0_i32_1 = arith.constant 0 : i32
    return %c0_i32, %c0_i32_0 : i32, i32
  }
  func.func @transform_4(%arg0: i32) -> (i32, i32, i32) {
    %c0_i32 = arith.constant 0 : i32
    %c0_i32_0 = arith.constant 0 : i32
    %c0_i32_1 = arith.constant 0 : i32
    return %c0_i32, %arg0, %c0_i32_0 : i32, i32, i32
  }
  func.func @transform_5(%arg0: i32) -> (i32, i32) {
    %c0_i32 = arith.constant 0 : i32
    %c0_i32_0 = arith.constant 0 : i32
    %c0_i32_1 = arith.constant 0 : i32
    return %c0_i32, %c0_i32_0 : i32, i32
  }
  func.func @transform_6(%arg0: i32) -> (i32, i32) {
    %c0_i32 = arith.constant 0 : i32
    %c0_i32_0 = arith.constant 0 : i32
    %c0_i32_1 = arith.constant 0 : i32
    return %c0_i32, %c0_i32_0 : i32, i32
  }
}

</mosaic_0001>

<bundles_post_ra>
// kernel: rnnlm_forward.5
= control target key start
LH: loop header
LB: loop body
LE: loop exit
PB: predicated region body
PF: predicated region fallthrough
CT: control target
= control target key end

     0   :  { %v559_v7 = vmov 0.0   ;;  %s794_s0 = inlined_call_operand.vmem [shape: f32[128,128], index: 0, kind: input, shape index: {}]   ;;  %s795_s1 = inlined_call_operand.vmem [shape: f32[128,256], index: 1, kind: input, shape index: {}]   ;;  %s796_s2 = inlined_call_operand.vmem [shape: f32[1,256], index: 2, kind: input, shape index: {}]   ;;  %s797_s3 = inlined_call_operand.hbm [shape: f32[128,256], index: 3, kind: output, shape index: {}]  }
   0x1   :  { %v100_v0 = vld [vmem:[%s795_s1 + $0x8] sm:$0xff]  ;;  %v102_v1 = vld [vmem:[%s795_s1 + $0x18] sm:$0xff]  ;;  %v99_v2 = vld [vmem:[%s795_s1] sm:$0xff]  ;;  %195 = vmatprep.mubr.f32.mxu0 %v559_v7  ;;  %243 = vmatprep.mubr.f32.mxu1 %v559_v7 }
   0x2   :  { %v483_v3 = vpack.c.bf16 %v102_v1, %v100_v0  ;;  %v101_v4 = vld [vmem:[%s795_s1 + $0x10] sm:$0xff]  ;;  %v104_v5 = vld [vmem:[%s795_s1 + $0x28] sm:$0xff]  ;;  %v106_v6 = vld [vmem:[%s795_s1 + $0x38] sm:$0xff] }
   0x3   :  { %v485_v8 = vpack.c.bf16 %v101_v4, %v99_v2  ;;  %v487_v9 = vpack.c.bf16 %v106_v6, %v104_v5  ;;  %v103_v10 = vld [vmem:[%s795_s1 + $0x20] sm:$0xff]  ;;  %v105_v11 = vld [vmem:[%s795_s1 + $0x30] sm:$0xff]  ;;  %v108_v12 = vld [vmem:[%s795_s1 + $0x48] sm:$0xff] }
   0x4   :  { %484 = vmatprep.subr.bf16.mxu0 %v483_v3  ;;  %515 = vmatprep.subr.bf16.mxu1 %v483_v3  ;;  %v110_v13 = vld [vmem:[%s795_s1 + $0x58] sm:$0xff]  ;;  %v489_v14 = vpack.c.bf16 %v105_v11, %v103_v10  ;;  %v107_v16 = vld [vmem:[%s795_s1 + $0x40] sm:$0xff]  ;;  %v109_v17 = vld [vmem:[%s795_s1 + $0x50] sm:$0xff] }
   0x5   :  { %486 = vmatpush1.bf16.msra.mxu0 %v485_v8  ;;  %523 = vmatpush1.bf16.msra.mxu1 %v485_v8  ;;  %v491_v15 = vpack.c.bf16 %v110_v13, %v108_v12  ;;  %v112_v18 = vld [vmem:[%s795_s1 + $0x68] sm:$0xff]  ;;  %v114_v19 = vld [vmem:[%s795_s1 + $0x78] sm:$0xff]  ;;  %v493_v20 = vpack.c.bf16 %v109_v17, %v107_v16  ;;  %v111_v22 = vld [vmem:[%s795_s1 + $0x60] sm:$0xff] }
   0x6   :  { %488 = vmatprep.subr.bf16.mxu0 %v487_v9  ;;  %516 = vmatprep.subr.bf16.mxu1 %v487_v9  ;;  %v495_v21 = vpack.c.bf16 %v114_v19, %v112_v18  ;;  %v113_v23 = vld [vmem:[%s795_s1 + $0x70] sm:$0xff]  ;;  %v116_v24 = vld [vmem:[%s795_s1 + $0x88] sm:$0xff]  ;;  %v118_v25 = vld [vmem:[%s795_s1 + $0x98] sm:$0xff] }
   0x7   :  { %v497_v26 = vpack.c.bf16 %v113_v23, %v111_v22  ;;  %v499_v27 = vpack.c.bf16 %v118_v25, %v116_v24  ;;  %v115_v28 = vld [vmem:[%s795_s1 + $0x80] sm:$0xff]  ;;  %v117_v29 = vld [vmem:[%s795_s1 + $0x90] sm:$0xff]  ;;  %v120_v30 = vld [vmem:[%s795_s1 + $0xa8] sm:$0xff] }
   0x8   :  { %v122_v31 = vld [vmem:[%s795_s1 + $0xb8] sm:$0xff]  ;;  %v501_v32 = vpack.c.bf16 %v117_v29, %v115_v28 }
   0x9   :  { %490 = vmatpush1.bf16.msra.mxu0 %v489_v14  ;;  %524 = vmatpush1.bf16.msra.mxu1 %v489_v14 }
   0xa   :  { %492 = vmatprep.subr.bf16.mxu0 %v491_v15  ;;  %517 = vmatprep.subr.bf16.mxu1 %v491_v15 }
   0xd   :  { %494 = vmatpush1.bf16.msra.mxu0 %v493_v20  ;;  %525 = vmatpush1.bf16.msra.mxu1 %v493_v20 }
   0xe   :  { %496 = vmatprep.subr.bf16.mxu0 %v495_v21  ;;  %518 = vmatprep.subr.bf16.mxu1 %v495_v21 }
  0x11   :  { %498 = vmatpush1.bf16.msra.mxu0 %v497_v26  ;;  %526 = vmatpush1.bf16.msra.mxu1 %v497_v26 }
  0x12   :  { %8 = vsyncpa [#allocation4], 0  ;;  %500 = vmatprep.subr.bf16.mxu0 %v499_v27  ;;  %519 = vmatprep.subr.bf16.mxu1 %v499_v27  ;;  %v503_v33 = vpack.c.bf16 %v122_v31, %v120_v30  ;;  %v119_v34 = vld [vmem:[%s795_s1 + $0xa0] sm:$0xff]  ;;  %v121_v35 = vld [vmem:[%s795_s1 + $0xb0] sm:$0xff]  ;;  %v393_v1 = vlaneseq }
  0x13   :  { %v124_v36 = vld [vmem:[%s795_s1 + $0xc8] sm:$0xff]  ;;  %v126_v37 = vld [vmem:[%s795_s1 + $0xd8] sm:$0xff]  ;;  %v505_v38 = vpack.c.bf16 %v121_v35, %v119_v34  ;;  %v123_v40 = vld [vmem:[%s795_s1 + $0xc0] sm:$0xff] }
  0x14   :  { %v507_v39 = vpack.c.bf16 %v126_v37, %v124_v36  ;;  %v125_v41 = vld [vmem:[%s795_s1 + $0xd0] sm:$0xff]  ;;  %v128_v42 = vld [vmem:[%s795_s1 + $0xe8] sm:$0xff]  ;;  %v130_v43 = vld [vmem:[%s795_s1 + $0xf8] sm:$0xff]  ;;  %v394_v2 = vshrl.u32 %v393_v1, 7 }
  0x15   :  { %502 = vmatpush1.bf16.msra.mxu0 %v501_v32  ;;  %527 = vmatpush1.bf16.msra.mxu1 %v501_v32  ;;  %v509_v44 = vpack.c.bf16 %v125_v41, %v123_v40  ;;  %v511_v45 = vpack.c.bf16 %v130_v43, %v128_v42  ;;  %v127_v46 = vld [vmem:[%s795_s1 + $0xe0] sm:$0xff]  ;;  %v129_v47 = vld [vmem:[%s795_s1 + $0xf0] sm:$0xff]  ;;  %v84_v51 = vld [vmem:[%s794_s0 + $0x8] sm:$0xff] }
  0x16   :  { %504 = vmatprep.subr.bf16.mxu0 %v503_v33  ;;  %520 = vmatprep.subr.bf16.mxu1 %v503_v33  ;;  %v513_v48 = vpack.c.bf16 %v129_v47, %v127_v46  ;;  %v83_v49 = vld [vmem:[%s794_s0] sm:$0xff]  ;;  %v92_v52 = vld [vmem:[%s794_s0 + $0x48] sm:$0xff]  ;;  %v85_v53 = vld [vmem:[%s794_s0 + $0x10] sm:$0xff]  ;;  %v395_v3 = vsub.s32 0, %v394_v2  ;;  %v399_v5 = vsub.s32 1, %v394_v2 }
  0x17   :  { %v91_v50 = vld [vmem:[%s794_s0 + $0x40] sm:$0xff]  ;;  %v93_v54 = vld [vmem:[%s794_s0 + $0x50] sm:$0xff]  ;;  %v86_v55 = vld [vmem:[%s794_s0 + $0x18] sm:$0xff] }
  0x18   :  { %v94_v56 = vld [vmem:[%s794_s0 + $0x58] sm:$0xff]  ;;  %v87_v57 = vld [vmem:[%s794_s0 + $0x20] sm:$0xff]  ;;  %v88_v59 = vld [vmem:[%s794_s0 + $0x28] sm:$0xff] }
  0x19   :  { %506 = vmatpush1.bf16.msra.mxu0 %v505_v38  ;;  %528 = vmatpush1.bf16.msra.mxu1 %v505_v38  ;;  %v95_v58 = vld [vmem:[%s794_s0 + $0x60] sm:$0xff]  ;;  %v96_v60 = vld [vmem:[%s794_s0 + $0x68] sm:$0xff]  ;;  %v89_v61 = vld [vmem:[%s794_s0 + $0x30] sm:$0xff] }
  0x1a   :  { %508 = vmatprep.subr.bf16.mxu0 %v507_v39  ;;  %521 = vmatprep.subr.bf16.mxu1 %v507_v39  ;;  %v97_v62 = vld [vmem:[%s794_s0 + $0x70] sm:$0xff]  ;;  %v90_v63 = vld [vmem:[%s794_s0 + $0x38] sm:$0xff]  ;;  %v391_v4 = vld [vmem:[%s796_s2] sm:$0x3] }
  0x1b   :  { %v98_v0 = vld [vmem:[%s794_s0 + $0x78] sm:$0xff]  ;;  %v746_v6 = vrot.slane %v391_v4, %v395_v3  ;;  %s560_s0 = smov [#allocation3]  }
  0x1c   :  { %s472_s2 = sshll.u32 %s560_s0, 4  ;;  %s473_s2 = int_to_ptr.vmem [resolvable:$true] %s472_s2 }
  0x1d   :  { %510 = vmatpush1.bf16.msra.mxu0 %v509_v44  ;;  %529 = vmatpush1.bf16.msra.mxu1 %v509_v44  ;;  %s535_s27 = scalar_lea.vmem %s473_s2, 4096  ;;  %p540_p1 = scmp.lt.s32.totalorder %s473_s2, %s473_s2 }
  0x1e   :  { %512 = vmatprep.subr.bf16.mxu0 %v511_v45  ;;  %522 = vmatprep.subr.bf16.mxu1 %v511_v45  ;;  %p536_p0 = scmp.ne.s32.totalorder %s473_s2, %s535_s27  ;;  %p541_p2 = scmp.lt.s32.totalorder %s535_s27, %s535_s27 }
  0x20   :  { %p542_p3 = por %p541_p2, %p540_p1 }
  0x21   :  { %514 = vmatpush1.bf16.msra.mxu0 %v513_v48  ;;  %530 = vmatpush1.bf16.msra.mxu1 %v513_v48 }
  0x22   :  { %p543_p4 = pnand %p542_p3, %p536_p0 }
  0x24   :  { %196 = vmatmul.mubr.f32.vlgmr.msra.gmra.mrb[0].mxu0 %v83_v49  ;;  %244 = vmatmul.mubr.f32.vlgmr.msra.gmra.mrb[0].mxu1 %v91_v50 }
  0x25   :  { %201 = vmatprep.mubr.f32.mxu0 %v559_v7  ;;  %249 = vmatprep.mubr.f32.mxu1 %v559_v7 }
  0x28   :  { %202 = vmatmul.mubr.f32.gmra.mrb[2].mxu0 %v84_v51  ;;  %250 = vmatmul.mubr.f32.gmra.mrb[2].mxu1 %v92_v52 }
  0x29   :  { %207 = vmatprep.mubr.f32.mxu0 %v559_v7  ;;  %255 = vmatprep.mubr.f32.mxu1 %v559_v7 }
  0x2c   :  { %208 = vmatmul.mubr.f32.gmra.mrb[4].mxu0 %v85_v53  ;;  %256 = vmatmul.mubr.f32.gmra.mrb[4].mxu1 %v93_v54 }
  0x2d   :  { %213 = vmatprep.mubr.f32.mxu0 %v559_v7  ;;  %261 = vmatprep.mubr.f32.mxu1 %v559_v7 }
  0x30   :  { %214 = vmatmul.mubr.f32.gmra.mrb[6].mxu0 %v86_v55  ;;  %262 = vmatmul.mubr.f32.gmra.mrb[6].mxu1 %v94_v56 }
  0x31   :  { %219 = vmatprep.mubr.f32.mxu0 %v559_v7  ;;  %267 = vmatprep.mubr.f32.mxu1 %v559_v7 }
  0x34   :  { %220 = vmatmul.mubr.f32.gmra.mrb[8].mxu0 %v87_v57  ;;  %268 = vmatmul.mubr.f32.gmra.mrb[8].mxu1 %v95_v58 }
  0x35   :  { %225 = vmatprep.mubr.f32.mxu0 %v559_v7  ;;  %273 = vmatprep.mubr.f32.mxu1 %v559_v7 }
  0x38   :  { %226 = vmatmul.mubr.f32.gmra.mrb[10].mxu0 %v88_v59  ;;  %274 = vmatmul.mubr.f32.gmra.mrb[10].mxu1 %v96_v60 }
  0x39   :  { %231 = vmatprep.mubr.f32.mxu0 %v559_v7  ;;  %279 = vmatprep.mubr.f32.mxu1 %v559_v7 }
  0x3c   :  { %232 = vmatmul.mubr.f32.gmra.mrb[12].mxu0 %v89_v61  ;;  %280 = vmatmul.mubr.f32.gmra.mrb[12].mxu1 %v97_v62 }
  0x3d   :  { %237 = vmatprep.mubr.f32.mxu0 %v559_v7  ;;  %285 = vmatprep.mubr.f32.mxu1 %v559_v7  ;;  %v748_v7 = vrot.slane %v391_v4, %v399_v5 }
  0x40   :  { %238 = vmatmul.mubr.f32.gmra.mrb[14].mxu0 %v90_v63  ;;  %286 = vmatmul.mubr.f32.gmra.mrb[14].mxu1 %v98_v0 }
  0xf7   :  { %v197_v8 = vpop.f32.mrb[0].mxu0  ;;  %v245_v9 = vpop.f32.mrb[0].mxu1 }
  0xf8   :  { %v403_v10 = vadd.f32 %v746_v6, %v197_v8  ;;  %v419_v11 = vadd.f32 %v746_v6, %v245_v9  ;;  %v199_v12 = vpop.f32.mrb[1].mxu0  ;;  %v247_v13 = vpop.f32.mrb[1].mxu1 }
  0xf9   :  { %v404_v14 = vadd.f32 %v748_v7, %v199_v12  ;;  %v420_v15 = vadd.f32 %v748_v7, %v247_v13 }
  0xfa   :  { %435 = vst [vmem:[#allocation3] sm:$0xff] %v403_v10  ;;  %451 = vst [vmem:[#allocation3 + $0x80] sm:$0xff] %v419_v11 }
  0xfb   :  { %436 = vst [vmem:[#allocation3 + $0x8] sm:$0xff] %v404_v14  ;;  %452 = vst [vmem:[#allocation3 + $0x88] sm:$0xff] %v420_v15  ;;  %v203_v16 = vpop.f32.mrb[2].mxu0  ;;  %v251_v17 = vpop.f32.mrb[2].mxu1 }
  0xfc   :  { %v405_v18 = vadd.f32 %v746_v6, %v203_v16  ;;  %v421_v19 = vadd.f32 %v746_v6, %v251_v17  ;;  %v205_v20 = vpop.f32.mrb[3].mxu0  ;;  %v253_v21 = vpop.f32.mrb[3].mxu1 }
  0xfd   :  { %v406_v22 = vadd.f32 %v748_v7, %v205_v20  ;;  %v422_v23 = vadd.f32 %v748_v7, %v253_v21 }
  0xfe   :  { %437 = vst [vmem:[#allocation3 + $0x10] sm:$0xff] %v405_v18  ;;  %453 = vst [vmem:[#allocation3 + $0x90] sm:$0xff] %v421_v19 }
  0xff   :  { %438 = vst [vmem:[#allocation3 + $0x18] sm:$0xff] %v406_v22  ;;  %454 = vst [vmem:[#allocation3 + $0x98] sm:$0xff] %v422_v23  ;;  %v209_v24 = vpop.f32.mrb[4].mxu0  ;;  %v257_v25 = vpop.f32.mrb[4].mxu1 }
 0x100   :  { %v407_v26 = vadd.f32 %v746_v6, %v209_v24  ;;  %v423_v27 = vadd.f32 %v746_v6, %v257_v25  ;;  %v211_v28 = vpop.f32.mrb[5].mxu0  ;;  %v259_v29 = vpop.f32.mrb[5].mxu1 }
 0x101   :  { %v408_v30 = vadd.f32 %v748_v7, %v211_v28  ;;  %v424_v31 = vadd.f32 %v748_v7, %v259_v29 }
 0x102   :  { %439 = vst [vmem:[#allocation3 + $0x20] sm:$0xff] %v407_v26  ;;  %455 = vst [vmem:[#allocation3 + $0xa0] sm:$0xff] %v423_v27 }
 0x103   :  { %440 = vst [vmem:[#allocation3 + $0x28] sm:$0xff] %v408_v30  ;;  %456 = vst [vmem:[#allocation3 + $0xa8] sm:$0xff] %v424_v31  ;;  %v215_v32 = vpop.f32.mrb[6].mxu0  ;;  %v263_v33 = vpop.f32.mrb[6].mxu1 }
 0x104   :  { %v409_v34 = vadd.f32 %v746_v6, %v215_v32  ;;  %v425_v35 = vadd.f32 %v746_v6, %v263_v33  ;;  %v217_v36 = vpop.f32.mrb[7].mxu0  ;;  %v265_v37 = vpop.f32.mrb[7].mxu1 }
 0x105   :  { %v410_v38 = vadd.f32 %v748_v7, %v217_v36  ;;  %v426_v39 = vadd.f32 %v748_v7, %v265_v37 }
 0x106   :  { %441 = vst [vmem:[#allocation3 + $0x30] sm:$0xff] %v409_v34  ;;  %457 = vst [vmem:[#allocation3 + $0xb0] sm:$0xff] %v425_v35 }
 0x107   :  { %442 = vst [vmem:[#allocation3 + $0x38] sm:$0xff] %v410_v38  ;;  %458 = vst [vmem:[#allocation3 + $0xb8] sm:$0xff] %v426_v39  ;;  %v221_v40 = vpop.f32.mrb[8].mxu0  ;;  %v269_v41 = vpop.f32.mrb[8].mxu1 }
 0x108   :  { %v411_v42 = vadd.f32 %v746_v6, %v221_v40  ;;  %v427_v43 = vadd.f32 %v746_v6, %v269_v41  ;;  %v223_v44 = vpop.f32.mrb[9].mxu0  ;;  %v271_v45 = vpop.f32.mrb[9].mxu1 }
 0x109   :  { %v412_v46 = vadd.f32 %v748_v7, %v223_v44  ;;  %v428_v47 = vadd.f32 %v748_v7, %v271_v45 }
 0x10a   :  { %443 = vst [vmem:[#allocation3 + $0x40] sm:$0xff] %v411_v42  ;;  %459 = vst [vmem:[#allocation3 + $0xc0] sm:$0xff] %v427_v43 }
 0x10b   :  { %444 = vst [vmem:[#allocation3 + $0x48] sm:$0xff] %v412_v46  ;;  %460 = vst [vmem:[#allocation3 + $0xc8] sm:$0xff] %v428_v47  ;;  %v227_v48 = vpop.f32.mrb[10].mxu0  ;;  %v275_v49 = vpop.f32.mrb[10].mxu1 }
 0x10c   :  { %v413_v50 = vadd.f32 %v746_v6, %v227_v48  ;;  %v429_v51 = vadd.f32 %v746_v6, %v275_v49  ;;  %v229_v52 = vpop.f32.mrb[11].mxu0  ;;  %v277_v53 = vpop.f32.mrb[11].mxu1 }
 0x10d   :  { %v414_v54 = vadd.f32 %v748_v7, %v229_v52  ;;  %v430_v55 = vadd.f32 %v748_v7, %v277_v53 }
 0x10e   :  { %445 = vst [vmem:[#allocation3 + $0x50] sm:$0xff] %v413_v50  ;;  %461 = vst [vmem:[#allocation3 + $0xd0] sm:$0xff] %v429_v51 }
 0x10f   :  { %446 = vst [vmem:[#allocation3 + $0x58] sm:$0xff] %v414_v54  ;;  %462 = vst [vmem:[#allocation3 + $0xd8] sm:$0xff] %v430_v55  ;;  %v233_v56 = vpop.f32.mrb[12].mxu0  ;;  %v281_v57 = vpop.f32.mrb[12].mxu1 }
 0x110   :  { %v415_v58 = vadd.f32 %v746_v6, %v233_v56  ;;  %v431_v59 = vadd.f32 %v746_v6, %v281_v57  ;;  %v235_v60 = vpop.f32.mrb[13].mxu0  ;;  %v283_v61 = vpop.f32.mrb[13].mxu1 }
 0x111   :  { %v416_v62 = vadd.f32 %v748_v7, %v235_v60  ;;  %v432_v63 = vadd.f32 %v748_v7, %v283_v61 }
 0x112   :  { %447 = vst [vmem:[#allocation3 + $0x60] sm:$0xff] %v415_v58  ;;  %463 = vst [vmem:[#allocation3 + $0xe0] sm:$0xff] %v431_v59 }
 0x113   :  { %448 = vst [vmem:[#allocation3 + $0x68] sm:$0xff] %v416_v62  ;;  %464 = vst [vmem:[#allocation3 + $0xe8] sm:$0xff] %v432_v63  ;;  %v239_v0 = vpop.f32.mrb[14].mxu0  ;;  %v287_v1 = vpop.f32.mrb[14].mxu1 }
 0x114   :  { %v417_v2 = vadd.f32 %v746_v6, %v239_v0  ;;  %v433_v3 = vadd.f32 %v746_v6, %v287_v1  ;;  %v241_v4 = vpop.f32.mrb[15].mxu0  ;;  %v289_v5 = vpop.f32.mrb[15].mxu1 }
 0x115   :  { %v418_v8 = vadd.f32 %v748_v7, %v241_v4  ;;  %v434_v9 = vadd.f32 %v748_v7, %v289_v5 }
 0x116   :  { %449 = vst [vmem:[#allocation3 + $0x70] sm:$0xff] %v417_v2  ;;  %465 = vst [vmem:[#allocation3 + $0xf0] sm:$0xff] %v433_v3 }
 0x117   :  { %450 = vst [vmem:[#allocation3 + $0x78] sm:$0xff] %v418_v8  ;;  %466 = vst [vmem:[#allocation3 + $0xf8] sm:$0xff] %v434_v9 }
 0x118   :  { %546 = shalt.err (!%p543_p4)
}
 0x119   :  { %s547_s30 = scalar_lea.hbm %s797_s3, 4096 }
 0x11a   :  { %p548_p5 = scmp.ne.s32.totalorder %s797_s3, %s547_s30  ;;  %p551_p6 = scmp.lt.u32.totalorder %s547_s30, %s797_s3 }
 0x11c   :  { %p553_p7 = pnand %p551_p6, %p548_p5 }
 0x11e   :  { %556 = shalt.err (!%p553_p7)
}
 0x11f   :  { %s561_s8 = smov 256   ;;  %s562_s9 = smov 16  }
 0x120   :  { %478 = dma.vmem_to_hbm [thread:$0]  %s473_s2, 4096, %s797_s3, [#allocation4], %s561_s8, %s561_s8, %s562_s9  }
 0x121   :  { %557 = dma.done.wait [#allocation4], 4096  }
 0x122   :  { %558 = vsyncadd [#allocation4], 4294963200 }
 0x123   :  { %482 = vsyncpa [#allocation4], 1 }

// kernel: rnnlm_forward.3
= control target key start
LH: loop header
LB: loop body
LE: loop exit
PB: predicated region body
PF: predicated region fallthrough
CT: control target
= control target key end

     0   :  { %v962_v3 = vmov 0.0   ;;  %s1522_s1 = inlined_call_operand.vmem [shape: f32[128,512], index: 1, kind: input, shape index: {}]   ;;  %s1523_s0 = inlined_call_operand.vmem [shape: f32[128,128], index: 0, kind: input, shape index: {}]   ;;  %s1524_s2 = inlined_call_operand.vmem [shape: f32[1,512], index: 2, kind: input, shape index: {}]   ;;  %s1525_s3 = inlined_call_operand.vmem [shape: f32[128,512], index: 3, kind: output, shape index: {}]  }
   0x1   :  { %v163_v0 = vld [vmem:[%s1522_s1 + $0x8] sm:$0xff]  ;;  %v165_v2 = vld [vmem:[%s1522_s1 + $0x18] sm:$0xff]  ;;  %290 = vmatprep.mubr.f32.mxu0 %v962_v3  ;;  %451 = vmatprep.mubr.f32.mxu1 %v962_v3  ;;  %v162_v6 = vld [vmem:[%s1522_s1] sm:$0xff] }
   0x2   :  { %v167_v1 = vld [vmem:[%s1522_s1 + $0x28] sm:$0xff]  ;;  %v169_v5 = vld [vmem:[%s1522_s1 + $0x38] sm:$0xff]  ;;  %v166_v7 = vld [vmem:[%s1522_s1 + $0x20] sm:$0xff] }
   0x3   :  { %v897_v4 = vpack.c.bf16 %v167_v1, %v163_v0  ;;  %v929_v8 = vpack.c.bf16 %v169_v5, %v165_v2  ;;  %v899_v9 = vpack.c.bf16 %v166_v7, %v162_v6  ;;  %v164_v10 = vld [vmem:[%s1522_s1 + $0x10] sm:$0xff]  ;;  %v171_v12 = vld [vmem:[%s1522_s1 + $0x48] sm:$0xff]  ;;  %v173_v15 = vld [vmem:[%s1522_s1 + $0x58] sm:$0xff] }
   0x4   :  { %v168_v11 = vld [vmem:[%s1522_s1 + $0x30] sm:$0xff]  ;;  %v175_v14 = vld [vmem:[%s1522_s1 + $0x68] sm:$0xff]  ;;  %v177_v16 = vld [vmem:[%s1522_s1 + $0x78] sm:$0xff] }
   0x5   :  { %898 = vmatprep.subr.bf16.mxu0 %v897_v4  ;;  %v931_v13 = vpack.c.bf16 %v168_v11, %v164_v10  ;;  %930 = vmatprep.subr.bf16.mxu1 %v929_v8  ;;  %v901_v17 = vpack.c.bf16 %v175_v14, %v171_v12  ;;  %v933_v18 = vpack.c.bf16 %v177_v16, %v173_v15  ;;  %v170_v19 = vld [vmem:[%s1522_s1 + $0x40] sm:$0xff]  ;;  %v172_v21 = vld [vmem:[%s1522_s1 + $0x50] sm:$0xff]  ;;  %v179_v24 = vld [vmem:[%s1522_s1 + $0x88] sm:$0xff] }
   0x6   :  { %900 = vmatpush1.bf16.msra.mxu0 %v899_v9  ;;  %v174_v20 = vld [vmem:[%s1522_s1 + $0x60] sm:$0xff]  ;;  %v176_v23 = vld [vmem:[%s1522_s1 + $0x70] sm:$0xff]  ;;  %v183_v25 = vld [vmem:[%s1522_s1 + $0xa8] sm:$0xff] }
   0x7   :  { %932 = vmatpush1.bf16.msra.mxu1 %v931_v13  ;;  %v903_v22 = vpack.c.bf16 %v174_v20, %v170_v19  ;;  %902 = vmatprep.subr.bf16.mxu0 %v901_v17  ;;  %v935_v26 = vpack.c.bf16 %v176_v23, %v172_v21  ;;  %v905_v27 = vpack.c.bf16 %v183_v25, %v179_v24  ;;  %v181_v28 = vld [vmem:[%s1522_s1 + $0x98] sm:$0xff]  ;;  %v178_v30 = vld [vmem:[%s1522_s1 + $0x80] sm:$0xff]  ;;  %v180_v33 = vld [vmem:[%s1522_s1 + $0x90] sm:$0xff] }
   0x8   :  { %934 = vmatprep.subr.bf16.mxu1 %v933_v18  ;;  %v185_v29 = vld [vmem:[%s1522_s1 + $0xb8] sm:$0xff]  ;;  %v182_v32 = vld [vmem:[%s1522_s1 + $0xa0] sm:$0xff]  ;;  %v184_v34 = vld [vmem:[%s1522_s1 + $0xb0] sm:$0xff] }
   0x9   :  { %v937_v31 = vpack.c.bf16 %v185_v29, %v181_v28  ;;  %v907_v35 = vpack.c.bf16 %v182_v32, %v178_v30  ;;  %v187_v36 = vld [vmem:[%s1522_s1 + $0xc8] sm:$0xff]  ;;  %v189_v38 = vld [vmem:[%s1522_s1 + $0xd8] sm:$0xff]  ;;  %v939_v39 = vpack.c.bf16 %v184_v34, %v180_v33  ;;  %v186_v42 = vld [vmem:[%s1522_s1 + $0xc0] sm:$0xff] }
   0xa   :  { %904 = vmatpush1.bf16.msra.mxu0 %v903_v22  ;;  %v191_v37 = vld [vmem:[%s1522_s1 + $0xe8] sm:$0xff]  ;;  %v193_v41 = vld [vmem:[%s1522_s1 + $0xf8] sm:$0xff]  ;;  %v190_v43 = vld [vmem:[%s1522_s1 + $0xe0] sm:$0xff] }
   0xb   :  { %936 = vmatpush1.bf16.msra.mxu1 %v935_v26  ;;  %906 = vmatprep.subr.bf16.mxu0 %v905_v27  ;;  %v909_v40 = vpack.c.bf16 %v191_v37, %v187_v36  ;;  %v941_v44 = vpack.c.bf16 %v193_v41, %v189_v38  ;;  %v188_v45 = vld [vmem:[%s1522_s1 + $0xd0] sm:$0xff]  ;;  %v195_v47 = vld [vmem:[%s1522_s1 + $0x108] sm:$0xff]  ;;  %v197_v49 = vld [vmem:[%s1522_s1 + $0x118] sm:$0xff]  ;;  %v911_v51 = vpack.c.bf16 %v190_v43, %v186_v42 }
   0xc   :  { %938 = vmatprep.subr.bf16.mxu1 %v937_v31  ;;  %v192_v46 = vld [vmem:[%s1522_s1 + $0xf0] sm:$0xff]  ;;  %v199_v48 = vld [vmem:[%s1522_s1 + $0x128] sm:$0xff]  ;;  %v201_v50 = vld [vmem:[%s1522_s1 + $0x138] sm:$0xff] }
   0xd   :  { %v943_v52 = vpack.c.bf16 %v192_v46, %v188_v45  ;;  %v913_v53 = vpack.c.bf16 %v199_v48, %v195_v47  ;;  %v194_v54 = vld [vmem:[%s1522_s1 + $0x100] sm:$0xff]  ;;  %v196_v56 = vld [vmem:[%s1522_s1 + $0x110] sm:$0xff]  ;;  %v945_v57 = vpack.c.bf16 %v201_v50, %v197_v49  ;;  %v203_v59 = vld [vmem:[%s1522_s1 + $0x148] sm:$0xff]  ;;  %v745_v50 = vlaneseq }
   0xe   :  { %908 = vmatpush1.bf16.msra.mxu0 %v907_v35  ;;  %v198_v55 = vld [vmem:[%s1522_s1 + $0x120] sm:$0xff]  ;;  %v200_v58 = vld [vmem:[%s1522_s1 + $0x130] sm:$0xff]  ;;  %v207_v60 = vld [vmem:[%s1522_s1 + $0x168] sm:$0xff] }
   0xf   :  { %940 = vmatpush1.bf16.msra.mxu1 %v939_v39  ;;  %910 = vmatprep.subr.bf16.mxu0 %v909_v40  ;;  %v205_v61 = vld [vmem:[%s1522_s1 + $0x158] sm:$0xff]  ;;  %v915_v63 = vpack.c.bf16 %v198_v55, %v194_v54  ;;  %v947_v0 = vpack.c.bf16 %v200_v58, %v196_v56  ;;  %v917_v1 = vpack.c.bf16 %v207_v60, %v203_v59  ;;  %v202_v2 = vld [vmem:[%s1522_s1 + $0x140] sm:$0xff]  ;;  %v204_v5 = vld [vmem:[%s1522_s1 + $0x150] sm:$0xff] }
  0x10   :  { %942 = vmatprep.subr.bf16.mxu1 %v941_v44  ;;  %v209_v62 = vld [vmem:[%s1522_s1 + $0x178] sm:$0xff]  ;;  %v206_v4 = vld [vmem:[%s1522_s1 + $0x160] sm:$0xff]  ;;  %v208_v7 = vld [vmem:[%s1522_s1 + $0x170] sm:$0xff] }
  0x11   :  { %v949_v6 = vpack.c.bf16 %v209_v62, %v205_v61  ;;  %v211_v8 = vld [vmem:[%s1522_s1 + $0x188] sm:$0xff]  ;;  %v213_v10 = vld [vmem:[%s1522_s1 + $0x198] sm:$0xff]  ;;  %v919_v12 = vpack.c.bf16 %v206_v4, %v202_v2  ;;  %v951_v13 = vpack.c.bf16 %v208_v7, %v204_v5  ;;  %v210_v15 = vld [vmem:[%s1522_s1 + $0x180] sm:$0xff] }
  0x12   :  { %912 = vmatpush1.bf16.msra.mxu0 %v911_v51  ;;  %v215_v9 = vld [vmem:[%s1522_s1 + $0x1a8] sm:$0xff]  ;;  %v217_v11 = vld [vmem:[%s1522_s1 + $0x1b8] sm:$0xff]  ;;  %v214_v16 = vld [vmem:[%s1522_s1 + $0x1a0] sm:$0xff]  ;;  %v746_v51 = vshrl.u32 %v745_v50, 7 }
  0x13   :  { %944 = vmatpush1.bf16.msra.mxu1 %v943_v52  ;;  %914 = vmatprep.subr.bf16.mxu0 %v913_v53  ;;  %v921_v14 = vpack.c.bf16 %v215_v9, %v211_v8  ;;  %v212_v17 = vld [vmem:[%s1522_s1 + $0x190] sm:$0xff]  ;;  %v953_v18 = vpack.c.bf16 %v217_v11, %v213_v10  ;;  %v219_v20 = vld [vmem:[%s1522_s1 + $0x1c8] sm:$0xff]  ;;  %v221_v22 = vld [vmem:[%s1522_s1 + $0x1d8] sm:$0xff]  ;;  %v923_v24 = vpack.c.bf16 %v214_v16, %v210_v15 }
  0x14   :  { %946 = vmatprep.subr.bf16.mxu1 %v945_v57  ;;  %v216_v19 = vld [vmem:[%s1522_s1 + $0x1b0] sm:$0xff]  ;;  %v223_v21 = vld [vmem:[%s1522_s1 + $0x1e8] sm:$0xff]  ;;  %v225_v23 = vld [vmem:[%s1522_s1 + $0x1f8] sm:$0xff]  ;;  %v747_v52 = vsub.s32 0, %v746_v51  ;;  %v755_v54 = vsub.s32 2, %v746_v51  ;;  %v751_v55 = vsub.s32 1, %v746_v51 }
  0x15   :  { %v955_v25 = vpack.c.bf16 %v216_v19, %v212_v17  ;;  %v925_v26 = vpack.c.bf16 %v223_v21, %v219_v20  ;;  %v218_v27 = vld [vmem:[%s1522_s1 + $0x1c0] sm:$0xff]  ;;  %v957_v29 = vpack.c.bf16 %v225_v23, %v221_v22  ;;  %v220_v30 = vld [vmem:[%s1522_s1 + $0x1d0] sm:$0xff]  ;;  %v147_v35 = vld [vmem:[%s1523_s0 + $0x8] sm:$0xff]  ;;  %v759_v56 = vsub.s32 3, %v746_v51 }
  0x16   :  { %916 = vmatpush1.bf16.msra.mxu0 %v915_v63  ;;  %v222_v28 = vld [vmem:[%s1522_s1 + $0x1e0] sm:$0xff]  ;;  %v224_v31 = vld [vmem:[%s1522_s1 + $0x1f0] sm:$0xff]  ;;  %v149_v37 = vld [vmem:[%s1523_s0 + $0x18] sm:$0xff] }
  0x17   :  { %948 = vmatpush1.bf16.msra.mxu1 %v947_v0  ;;  %918 = vmatprep.subr.bf16.mxu0 %v917_v1  ;;  %v927_v32 = vpack.c.bf16 %v222_v28, %v218_v27  ;;  %v959_v33 = vpack.c.bf16 %v224_v31, %v220_v30  ;;  %v146_v34 = vld [vmem:[%s1523_s0] sm:$0xff]  ;;  %v148_v36 = vld [vmem:[%s1523_s0 + $0x10] sm:$0xff]  ;;  %v151_v39 = vld [vmem:[%s1523_s0 + $0x28] sm:$0xff] }
  0x18   :  { %950 = vmatprep.subr.bf16.mxu1 %v949_v6  ;;  %v150_v38 = vld [vmem:[%s1523_s0 + $0x20] sm:$0xff]  ;;  %v152_v40 = vld [vmem:[%s1523_s0 + $0x30] sm:$0xff]  ;;  %v153_v41 = vld [vmem:[%s1523_s0 + $0x38] sm:$0xff] }
  0x19   :  { %v154_v42 = vld [vmem:[%s1523_s0 + $0x40] sm:$0xff]  ;;  %v155_v43 = vld [vmem:[%s1523_s0 + $0x48] sm:$0xff]  ;;  %v156_v44 = vld [vmem:[%s1523_s0 + $0x50] sm:$0xff] }
  0x1a   :  { %920 = vmatpush1.bf16.msra.mxu0 %v919_v12  ;;  %v157_v45 = vld [vmem:[%s1523_s0 + $0x58] sm:$0xff]  ;;  %v158_v46 = vld [vmem:[%s1523_s0 + $0x60] sm:$0xff]  ;;  %v159_v47 = vld [vmem:[%s1523_s0 + $0x68] sm:$0xff] }
  0x1b   :  { %952 = vmatpush1.bf16.msra.mxu1 %v951_v13  ;;  %922 = vmatprep.subr.bf16.mxu0 %v921_v14  ;;  %v160_v48 = vld [vmem:[%s1523_s0 + $0x70] sm:$0xff]  ;;  %v161_v49 = vld [vmem:[%s1523_s0 + $0x78] sm:$0xff]  ;;  %v743_v53 = vld [vmem:[%s1524_s2] sm:$0xf] }
  0x1c   :  { %954 = vmatprep.subr.bf16.mxu1 %v953_v18  ;;  %v1258_v57 = vrot.slane %v743_v53, %v747_v52  ;;  %v1260_v58 = vrot.slane %v743_v53, %v755_v54  ;;  %v1262_v59 = vrot.slane %v743_v53, %v751_v55  ;;  %v1264_v60 = vrot.slane %v743_v53, %v759_v56 }
  0x1e   :  { %924 = vmatpush1.bf16.msra.mxu0 %v923_v24 }
  0x1f   :  { %956 = vmatpush1.bf16.msra.mxu1 %v955_v25  ;;  %926 = vmatprep.subr.bf16.mxu0 %v925_v26 }
  0x20   :  { %958 = vmatprep.subr.bf16.mxu1 %v957_v29 }
  0x22   :  { %928 = vmatpush1.bf16.msra.mxu0 %v927_v32 }
  0x23   :  { %960 = vmatpush1.bf16.msra.mxu1 %v959_v33 }
  0x25   :  { %291 = vmatmul.mubr.f32.vlgmr.msra.gmra.mrb[0].mxu0 %v146_v34 }
  0x26   :  { %452 = vmatmul.mubr.f32.vlgmr.msra.gmra.mrb[0].mxu1 %v146_v34  ;;  %296 = vmatprep.mubr.f32.mxu0 %v962_v3 }
  0x27   :  { %457 = vmatprep.mubr.f32.mxu1 %v962_v3 }
  0x29   :  { %297 = vmatmul.mubr.f32.gmra.mrb[2].mxu0 %v147_v35 }
  0x2a   :  { %458 = vmatmul.mubr.f32.gmra.mrb[2].mxu1 %v147_v35  ;;  %302 = vmatprep.mubr.f32.mxu0 %v962_v3 }
  0x2b   :  { %463 = vmatprep.mubr.f32.mxu1 %v962_v3 }
  0x2d   :  { %303 = vmatmul.mubr.f32.gmra.mrb[4].mxu0 %v148_v36 }
  0x2e   :  { %464 = vmatmul.mubr.f32.gmra.mrb[4].mxu1 %v148_v36  ;;  %308 = vmatprep.mubr.f32.mxu0 %v962_v3 }
  0x2f   :  { %469 = vmatprep.mubr.f32.mxu1 %v962_v3 }
  0x31   :  { %309 = vmatmul.mubr.f32.gmra.mrb[6].mxu0 %v149_v37 }
  0x32   :  { %470 = vmatmul.mubr.f32.gmra.mrb[6].mxu1 %v149_v37  ;;  %314 = vmatprep.mubr.f32.mxu0 %v962_v3 }
  0x33   :  { %475 = vmatprep.mubr.f32.mxu1 %v962_v3 }
  0x35   :  { %315 = vmatmul.mubr.f32.gmra.mrb[8].mxu0 %v150_v38 }
  0x36   :  { %476 = vmatmul.mubr.f32.gmra.mrb[8].mxu1 %v150_v38  ;;  %320 = vmatprep.mubr.f32.mxu0 %v962_v3 }
  0x37   :  { %481 = vmatprep.mubr.f32.mxu1 %v962_v3 }
  0x39   :  { %321 = vmatmul.mubr.f32.gmra.mrb[10].mxu0 %v151_v39 }
  0x3a   :  { %482 = vmatmul.mubr.f32.gmra.mrb[10].mxu1 %v151_v39  ;;  %326 = vmatprep.mubr.f32.mxu0 %v962_v3 }
  0x3b   :  { %487 = vmatprep.mubr.f32.mxu1 %v962_v3 }
  0x3d   :  { %327 = vmatmul.mubr.f32.gmra.mrb[12].mxu0 %v152_v40 }
  0x3e   :  { %488 = vmatmul.mubr.f32.gmra.mrb[12].mxu1 %v152_v40  ;;  %332 = vmatprep.mubr.f32.mxu0 %v962_v3 }
  0x3f   :  { %493 = vmatprep.mubr.f32.mxu1 %v962_v3 }
  0x41   :  { %333 = vmatmul.mubr.f32.gmra.mrb[14].mxu0 %v153_v41 }
  0x42   :  { %494 = vmatmul.mubr.f32.gmra.mrb[14].mxu1 %v153_v41  ;;  %338 = vmatprep.mubr.f32.mxu0 %v962_v3 }
  0x43   :  { %499 = vmatprep.mubr.f32.mxu1 %v962_v3 }
  0x45   :  { %339 = vmatmul.mubr.f32.gmra.mrb[16].mxu0 %v154_v42 }
  0x46   :  { %500 = vmatmul.mubr.f32.gmra.mrb[16].mxu1 %v154_v42  ;;  %344 = vmatprep.mubr.f32.mxu0 %v962_v3 }
  0x47   :  { %505 = vmatprep.mubr.f32.mxu1 %v962_v3 }
  0x49   :  { %345 = vmatmul.mubr.f32.gmra.mrb[18].mxu0 %v155_v43 }
  0x4a   :  { %506 = vmatmul.mubr.f32.gmra.mrb[18].mxu1 %v155_v43  ;;  %350 = vmatprep.mubr.f32.mxu0 %v962_v3 }
  0x4b   :  { %511 = vmatprep.mubr.f32.mxu1 %v962_v3 }
  0x4d   :  { %351 = vmatmul.mubr.f32.gmra.mrb[20].mxu0 %v156_v44 }
  0x4e   :  { %512 = vmatmul.mubr.f32.gmra.mrb[20].mxu1 %v156_v44  ;;  %356 = vmatprep.mubr.f32.mxu0 %v962_v3 }
  0x4f   :  { %517 = vmatprep.mubr.f32.mxu1 %v962_v3 }
  0x51   :  { %357 = vmatmul.mubr.f32.gmra.mrb[22].mxu0 %v157_v45 }
  0x52   :  { %518 = vmatmul.mubr.f32.gmra.mrb[22].mxu1 %v157_v45  ;;  %362 = vmatprep.mubr.f32.mxu0 %v962_v3 }
  0x53   :  { %523 = vmatprep.mubr.f32.mxu1 %v962_v3 }
  0x55   :  { %363 = vmatmul.mubr.f32.gmra.mrb[24].mxu0 %v158_v46 }
  0x56   :  { %524 = vmatmul.mubr.f32.gmra.mrb[24].mxu1 %v158_v46  ;;  %368 = vmatprep.mubr.f32.mxu0 %v962_v3 }
  0x57   :  { %529 = vmatprep.mubr.f32.mxu1 %v962_v3 }
  0x59   :  { %369 = vmatmul.mubr.f32.gmra.mrb[26].mxu0 %v159_v47 }
  0x5a   :  { %530 = vmatmul.mubr.f32.gmra.mrb[26].mxu1 %v159_v47  ;;  %374 = vmatprep.mubr.f32.mxu0 %v962_v3 }
  0x5b   :  { %535 = vmatprep.mubr.f32.mxu1 %v962_v3 }
  0x5d   :  { %375 = vmatmul.mubr.f32.gmra.mrb[28].mxu0 %v160_v48 }
  0x5e   :  { %536 = vmatmul.mubr.f32.gmra.mrb[28].mxu1 %v160_v48  ;;  %380 = vmatprep.mubr.f32.mxu0 %v962_v3 }
  0x5f   :  { %541 = vmatprep.mubr.f32.mxu1 %v962_v3 }
  0x61   :  { %381 = vmatmul.mubr.f32.gmra.mrb[30].mxu0 %v161_v49 }
  0x62   :  { %542 = vmatmul.mubr.f32.gmra.mrb[30].mxu1 %v161_v49 }
  0xf8   :  { %v292_v3 = vpop.f32.mrb[0].mxu0 }
  0xf9   :  { %v765_v61 = vadd.f32 %v1258_v57, %v292_v3  ;;  %v453_v62 = vpop.f32.mrb[0].mxu1  ;;  %v294_v63 = vpop.f32.mrb[1].mxu0 }
  0xfa   :  { %v767_v0 = vadd.f32 %v1260_v58, %v453_v62  ;;  %v766_v1 = vadd.f32 %v1262_v59, %v294_v63  ;;  %v455_v2 = vpop.f32.mrb[1].mxu1 }
  0xfb   :  { %829 = vst [vmem:[%s1525_s3] sm:$0xff] %v765_v61  ;;  %v768_v4 = vadd.f32 %v1264_v60, %v455_v2 }
  0xfc   :  { %831 = vst [vmem:[%s1525_s3 + $0x10] sm:$0xff] %v767_v0  ;;  %830 = vst [vmem:[%s1525_s3 + $0x8] sm:$0xff] %v766_v1  ;;  %v298_v5 = vpop.f32.mrb[2].mxu0 }
  0xfd   :  { %832 = vst [vmem:[%s1525_s3 + $0x18] sm:$0xff] %v768_v4  ;;  %v769_v6 = vadd.f32 %v1258_v57, %v298_v5  ;;  %v459_v7 = vpop.f32.mrb[2].mxu1  ;;  %v300_v8 = vpop.f32.mrb[3].mxu0 }
  0xfe   :  { %v771_v9 = vadd.f32 %v1260_v58, %v459_v7  ;;  %v770_v10 = vadd.f32 %v1262_v59, %v300_v8  ;;  %v461_v11 = vpop.f32.mrb[3].mxu1 }
  0xff   :  { %833 = vst [vmem:[%s1525_s3 + $0x20] sm:$0xff] %v769_v6  ;;  %v772_v12 = vadd.f32 %v1264_v60, %v461_v11 }
 0x100   :  { %835 = vst [vmem:[%s1525_s3 + $0x30] sm:$0xff] %v771_v9  ;;  %834 = vst [vmem:[%s1525_s3 + $0x28] sm:$0xff] %v770_v10  ;;  %v304_v13 = vpop.f32.mrb[4].mxu0 }
 0x101   :  { %836 = vst [vmem:[%s1525_s3 + $0x38] sm:$0xff] %v772_v12  ;;  %v773_v14 = vadd.f32 %v1258_v57, %v304_v13  ;;  %v465_v15 = vpop.f32.mrb[4].mxu1  ;;  %v306_v16 = vpop.f32.mrb[5].mxu0 }
 0x102   :  { %v775_v17 = vadd.f32 %v1260_v58, %v465_v15  ;;  %v774_v18 = vadd.f32 %v1262_v59, %v306_v16  ;;  %v467_v19 = vpop.f32.mrb[5].mxu1 }
 0x103   :  { %837 = vst [vmem:[%s1525_s3 + $0x40] sm:$0xff] %v773_v14  ;;  %v776_v20 = vadd.f32 %v1264_v60, %v467_v19 }
 0x104   :  { %839 = vst [vmem:[%s1525_s3 + $0x50] sm:$0xff] %v775_v17  ;;  %838 = vst [vmem:[%s1525_s3 + $0x48] sm:$0xff] %v774_v18  ;;  %v310_v21 = vpop.f32.mrb[6].mxu0 }
 0x105   :  { %840 = vst [vmem:[%s1525_s3 + $0x58] sm:$0xff] %v776_v20  ;;  %v777_v22 = vadd.f32 %v1258_v57, %v310_v21  ;;  %v471_v23 = vpop.f32.mrb[6].mxu1  ;;  %v312_v24 = vpop.f32.mrb[7].mxu0 }
 0x106   :  { %v779_v25 = vadd.f32 %v1260_v58, %v471_v23  ;;  %v778_v26 = vadd.f32 %v1262_v59, %v312_v24  ;;  %v473_v27 = vpop.f32.mrb[7].mxu1 }
 0x107   :  { %841 = vst [vmem:[%s1525_s3 + $0x60] sm:$0xff] %v777_v22  ;;  %v780_v28 = vadd.f32 %v1264_v60, %v473_v27 }
 0x108   :  { %843 = vst [vmem:[%s1525_s3 + $0x70] sm:$0xff] %v779_v25  ;;  %842 = vst [vmem:[%s1525_s3 + $0x68] sm:$0xff] %v778_v26  ;;  %v316_v29 = vpop.f32.mrb[8].mxu0 }
 0x109   :  { %844 = vst [vmem:[%s1525_s3 + $0x78] sm:$0xff] %v780_v28  ;;  %v781_v30 = vadd.f32 %v1258_v57, %v316_v29  ;;  %v477_v31 = vpop.f32.mrb[8].mxu1  ;;  %v318_v32 = vpop.f32.mrb[9].mxu0 }
 0x10a   :  { %v783_v33 = vadd.f32 %v1260_v58, %v477_v31  ;;  %v782_v34 = vadd.f32 %v1262_v59, %v318_v32  ;;  %v479_v35 = vpop.f32.mrb[9].mxu1 }
 0x10b   :  { %845 = vst [vmem:[%s1525_s3 + $0x80] sm:$0xff] %v781_v30  ;;  %v784_v36 = vadd.f32 %v1264_v60, %v479_v35 }
 0x10c   :  { %847 = vst [vmem:[%s1525_s3 + $0x90] sm:$0xff] %v783_v33  ;;  %846 = vst [vmem:[%s1525_s3 + $0x88] sm:$0xff] %v782_v34  ;;  %v322_v37 = vpop.f32.mrb[10].mxu0 }
 0x10d   :  { %848 = vst [vmem:[%s1525_s3 + $0x98] sm:$0xff] %v784_v36  ;;  %v785_v38 = vadd.f32 %v1258_v57, %v322_v37  ;;  %v483_v39 = vpop.f32.mrb[10].mxu1  ;;  %v324_v40 = vpop.f32.mrb[11].mxu0 }
 0x10e   :  { %v787_v41 = vadd.f32 %v1260_v58, %v483_v39  ;;  %v786_v42 = vadd.f32 %v1262_v59, %v324_v40  ;;  %v485_v43 = vpop.f32.mrb[11].mxu1 }
 0x10f   :  { %849 = vst [vmem:[%s1525_s3 + $0xa0] sm:$0xff] %v785_v38  ;;  %v788_v44 = vadd.f32 %v1264_v60, %v485_v43 }
 0x110   :  { %851 = vst [vmem:[%s1525_s3 + $0xb0] sm:$0xff] %v787_v41  ;;  %850 = vst [vmem:[%s1525_s3 + $0xa8] sm:$0xff] %v786_v42  ;;  %v328_v45 = vpop.f32.mrb[12].mxu0 }
 0x111   :  { %852 = vst [vmem:[%s1525_s3 + $0xb8] sm:$0xff] %v788_v44  ;;  %v789_v46 = vadd.f32 %v1258_v57, %v328_v45  ;;  %v489_v47 = vpop.f32.mrb[12].mxu1  ;;  %v330_v48 = vpop.f32.mrb[13].mxu0 }
 0x112   :  { %v791_v49 = vadd.f32 %v1260_v58, %v489_v47  ;;  %v790_v50 = vadd.f32 %v1262_v59, %v330_v48  ;;  %v491_v51 = vpop.f32.mrb[13].mxu1 }
 0x113   :  { %853 = vst [vmem:[%s1525_s3 + $0xc0] sm:$0xff] %v789_v46  ;;  %v792_v52 = vadd.f32 %v1264_v60, %v491_v51 }
 0x114   :  { %855 = vst [vmem:[%s1525_s3 + $0xd0] sm:$0xff] %v791_v49  ;;  %854 = vst [vmem:[%s1525_s3 + $0xc8] sm:$0xff] %v790_v50  ;;  %v334_v53 = vpop.f32.mrb[14].mxu0 }
 0x115   :  { %856 = vst [vmem:[%s1525_s3 + $0xd8] sm:$0xff] %v792_v52  ;;  %v793_v54 = vadd.f32 %v1258_v57, %v334_v53  ;;  %v495_v55 = vpop.f32.mrb[14].mxu1  ;;  %v336_v56 = vpop.f32.mrb[15].mxu0 }
 0x116   :  { %v795_v3 = vadd.f32 %v1260_v58, %v495_v55  ;;  %v794_v61 = vadd.f32 %v1262_v59, %v336_v56  ;;  %v497_v62 = vpop.f32.mrb[15].mxu1 }
 0x117   :  { %857 = vst [vmem:[%s1525_s3 + $0xe0] sm:$0xff] %v793_v54  ;;  %v796_v63 = vadd.f32 %v1264_v60, %v497_v62 }
 0x118   :  { %859 = vst [vmem:[%s1525_s3 + $0xf0] sm:$0xff] %v795_v3  ;;  %858 = vst [vmem:[%s1525_s3 + $0xe8] sm:$0xff] %v794_v61  ;;  %v340_v0 = vpop.f32.mrb[16].mxu0 }
 0x119   :  { %860 = vst [vmem:[%s1525_s3 + $0xf8] sm:$0xff] %v796_v63  ;;  %v797_v1 = vadd.f32 %v1258_v57, %v340_v0  ;;  %v501_v2 = vpop.f32.mrb[16].mxu1  ;;  %v342_v4 = vpop.f32.mrb[17].mxu0 }
 0x11a   :  { %v799_v5 = vadd.f32 %v1260_v58, %v501_v2  ;;  %v798_v6 = vadd.f32 %v1262_v59, %v342_v4  ;;  %v503_v7 = vpop.f32.mrb[17].mxu1 }
 0x11b   :  { %861 = vst [vmem:[%s1525_s3 + $0x100] sm:$0xff] %v797_v1  ;;  %v800_v8 = vadd.f32 %v1264_v60, %v503_v7 }
 0x11c   :  { %863 = vst [vmem:[%s1525_s3 + $0x110] sm:$0xff] %v799_v5  ;;  %862 = vst [vmem:[%s1525_s3 + $0x108] sm:$0xff] %v798_v6  ;;  %v346_v9 = vpop.f32.mrb[18].mxu0 }
 0x11d   :  { %864 = vst [vmem:[%s1525_s3 + $0x118] sm:$0xff] %v800_v8  ;;  %v801_v10 = vadd.f32 %v1258_v57, %v346_v9  ;;  %v507_v11 = vpop.f32.mrb[18].mxu1  ;;  %v348_v12 = vpop.f32.mrb[19].mxu0 }
 0x11e   :  { %v803_v13 = vadd.f32 %v1260_v58, %v507_v11  ;;  %v802_v14 = vadd.f32 %v1262_v59, %v348_v12  ;;  %v509_v15 = vpop.f32.mrb[19].mxu1 }
 0x11f   :  { %865 = vst [vmem:[%s1525_s3 + $0x120] sm:$0xff] %v801_v10  ;;  %v804_v16 = vadd.f32 %v1264_v60, %v509_v15 }
 0x120   :  { %867 = vst [vmem:[%s1525_s3 + $0x130] sm:$0xff] %v803_v13  ;;  %866 = vst [vmem:[%s1525_s3 + $0x128] sm:$0xff] %v802_v14  ;;  %v352_v17 = vpop.f32.mrb[20].mxu0 }
 0x121   :  { %868 = vst [vmem:[%s1525_s3 + $0x138] sm:$0xff] %v804_v16  ;;  %v805_v18 = vadd.f32 %v1258_v57, %v352_v17  ;;  %v513_v19 = vpop.f32.mrb[20].mxu1  ;;  %v354_v20 = vpop.f32.mrb[21].mxu0 }
 0x122   :  { %v807_v21 = vadd.f32 %v1260_v58, %v513_v19  ;;  %v806_v22 = vadd.f32 %v1262_v59, %v354_v20  ;;  %v515_v23 = vpop.f32.mrb[21].mxu1 }
 0x123   :  { %869 = vst [vmem:[%s1525_s3 + $0x140] sm:$0xff] %v805_v18  ;;  %v808_v24 = vadd.f32 %v1264_v60, %v515_v23 }
 0x124   :  { %871 = vst [vmem:[%s1525_s3 + $0x150] sm:$0xff] %v807_v21  ;;  %870 = vst [vmem:[%s1525_s3 + $0x148] sm:$0xff] %v806_v22  ;;  %v358_v25 = vpop.f32.mrb[22].mxu0 }
 0x125   :  { %872 = vst [vmem:[%s1525_s3 + $0x158] sm:$0xff] %v808_v24  ;;  %v809_v26 = vadd.f32 %v1258_v57, %v358_v25  ;;  %v519_v27 = vpop.f32.mrb[22].mxu1  ;;  %v360_v28 = vpop.f32.mrb[23].mxu0 }
 0x126   :  { %v811_v29 = vadd.f32 %v1260_v58, %v519_v27  ;;  %v810_v30 = vadd.f32 %v1262_v59, %v360_v28  ;;  %v521_v31 = vpop.f32.mrb[23].mxu1 }
 0x127   :  { %873 = vst [vmem:[%s1525_s3 + $0x160] sm:$0xff] %v809_v26  ;;  %v812_v32 = vadd.f32 %v1264_v60, %v521_v31 }
 0x128   :  { %875 = vst [vmem:[%s1525_s3 + $0x170] sm:$0xff] %v811_v29  ;;  %874 = vst [vmem:[%s1525_s3 + $0x168] sm:$0xff] %v810_v30  ;;  %v364_v33 = vpop.f32.mrb[24].mxu0 }
 0x129   :  { %876 = vst [vmem:[%s1525_s3 + $0x178] sm:$0xff] %v812_v32  ;;  %v813_v34 = vadd.f32 %v1258_v57, %v364_v33  ;;  %v525_v35 = vpop.f32.mrb[24].mxu1  ;;  %v366_v36 = vpop.f32.mrb[25].mxu0 }
 0x12a   :  { %v815_v37 = vadd.f32 %v1260_v58, %v525_v35  ;;  %v814_v38 = vadd.f32 %v1262_v59, %v366_v36  ;;  %v527_v39 = vpop.f32.mrb[25].mxu1 }
 0x12b   :  { %877 = vst [vmem:[%s1525_s3 + $0x180] sm:$0xff] %v813_v34  ;;  %v816_v40 = vadd.f32 %v1264_v60, %v527_v39 }
 0x12c   :  { %879 = vst [vmem:[%s1525_s3 + $0x190] sm:$0xff] %v815_v37  ;;  %878 = vst [vmem:[%s1525_s3 + $0x188] sm:$0xff] %v814_v38  ;;  %v370_v41 = vpop.f32.mrb[26].mxu0 }
 0x12d   :  { %880 = vst [vmem:[%s1525_s3 + $0x198] sm:$0xff] %v816_v40  ;;  %v817_v42 = vadd.f32 %v1258_v57, %v370_v41  ;;  %v531_v43 = vpop.f32.mrb[26].mxu1  ;;  %v372_v44 = vpop.f32.mrb[27].mxu0 }
 0x12e   :  { %v819_v45 = vadd.f32 %v1260_v58, %v531_v43  ;;  %v818_v46 = vadd.f32 %v1262_v59, %v372_v44  ;;  %v533_v47 = vpop.f32.mrb[27].mxu1 }
 0x12f   :  { %881 = vst [vmem:[%s1525_s3 + $0x1a0] sm:$0xff] %v817_v42  ;;  %v820_v48 = vadd.f32 %v1264_v60, %v533_v47 }
 0x130   :  { %883 = vst [vmem:[%s1525_s3 + $0x1b0] sm:$0xff] %v819_v45  ;;  %882 = vst [vmem:[%s1525_s3 + $0x1a8] sm:$0xff] %v818_v46  ;;  %v376_v49 = vpop.f32.mrb[28].mxu0 }
 0x131   :  { %884 = vst [vmem:[%s1525_s3 + $0x1b8] sm:$0xff] %v820_v48  ;;  %v821_v50 = vadd.f32 %v1258_v57, %v376_v49  ;;  %v537_v51 = vpop.f32.mrb[28].mxu1  ;;  %v378_v52 = vpop.f32.mrb[29].mxu0 }
 0x132   :  { %v823_v53 = vadd.f32 %v1260_v58, %v537_v51  ;;  %v822_v54 = vadd.f32 %v1262_v59, %v378_v52  ;;  %v539_v55 = vpop.f32.mrb[29].mxu1 }
 0x133   :  { %885 = vst [vmem:[%s1525_s3 + $0x1c0] sm:$0xff] %v821_v50  ;;  %v824_v56 = vadd.f32 %v1264_v60, %v539_v55 }
 0x134   :  { %887 = vst [vmem:[%s1525_s3 + $0x1d0] sm:$0xff] %v823_v53  ;;  %886 = vst [vmem:[%s1525_s3 + $0x1c8] sm:$0xff] %v822_v54  ;;  %v382_v3 = vpop.f32.mrb[30].mxu0 }
 0x135   :  { %888 = vst [vmem:[%s1525_s3 + $0x1d8] sm:$0xff] %v824_v56  ;;  %v825_v61 = vadd.f32 %v1258_v57, %v382_v3  ;;  %v543_v62 = vpop.f32.mrb[30].mxu1  ;;  %v384_v63 = vpop.f32.mrb[31].mxu0 }
 0x136   :  { %v827_v0 = vadd.f32 %v1260_v58, %v543_v62  ;;  %v826_v1 = vadd.f32 %v1262_v59, %v384_v63  ;;  %v545_v2 = vpop.f32.mrb[31].mxu1 }
 0x137   :  { %889 = vst [vmem:[%s1525_s3 + $0x1e0] sm:$0xff] %v825_v61  ;;  %v828_v4 = vadd.f32 %v1264_v60, %v545_v2 }
 0x138   :  { %891 = vst [vmem:[%s1525_s3 + $0x1f0] sm:$0xff] %v827_v0  ;;  %890 = vst [vmem:[%s1525_s3 + $0x1e8] sm:$0xff] %v826_v1 }
 0x139   :  { %892 = vst [vmem:[%s1525_s3 + $0x1f8] sm:$0xff] %v828_v4 }

// kernel: rnnlm_forward.4
= control target key start
LH: loop header
LB: loop body
LE: loop exit
PB: predicated region body
PF: predicated region fallthrough
CT: control target
= control target key end

     0   :  { %12 = vsyncpa [#allocation7], 0  ;;  %s8932_s0 = inlined_call_operand.vmem [shape: f32[8,16,512], index: 0, kind: input, shape index: {}]   ;;  %s8933_s1 = inlined_call_operand.vmem [shape: f32[8,128], index: 1, kind: input, shape index: {}]   ;;  %s8934_s2 = inlined_call_operand.vmem [shape: f32[8,128], index: 2, kind: input, shape index: {}]   ;;  %s8935_s3 = inlined_call_operand.vmem [shape: f32[128,512], index: 3, kind: input, shape index: {}]   ;;  %s8936_s4 = inlined_call_operand.vmem [shape: f32[8,16,128], index: 4, kind: output, shape index: {0}]   ;;  %s8937_s5 = inlined_call_operand.hbm [shape: f32[8,128], index: 5, kind: output, shape index: {1}]   ;;  %s8938_s6 = inlined_call_operand.hbm [shape: f32[8,128], index: 6, kind: output, shape index: {2}]  }
   0x1   :  { %13 = vsyncpa [#allocation9], 0  ;;  %s7149_s21 = smov 0   ;;  %s7151_s22 = smov 0  }
   0x2   :  { %s7153_s23 = smov 0  }
   0x3 LB: > { %s7165_s24 = sadd.s32 4294967295, %s7108_s23   ;;  %s7168_s25 = sadd.s32 1, %s7108_s23   ;;  %s7108_s23 = sphi %s7153_s23, %s9058_s23   ;;  %s7104_s22 = sphi %s7151_s22, %s9057_s22   ;;  %s7100_s21 = sphi %s7149_s21, %s9056_s21  }
   0x4   : > { %s23_s26 = ssub.s32 %s7108_s23, %s7168_s25  ;;  %s26_s27 = sadd.s32 1, %s7104_s22 }
   0x5   : > { %p24_p0 = scmp.eq.s32.totalorder %s23_s26, 0  ;;  %p33_p1 = scmp.ne.s32.totalorder %s7104_s22, %s7100_s21 }
   0x6   : > { %p34_p2 = scmp.eq.s32.totalorder %s7108_s23, 0  ;;  %p126_p3 = scmp.eq.s32.totalorder %s7165_s24, 1 }
   0x7   : > { %s7178_s28 = scalar_select %p24_p0, %s7104_s22, %s26_s27  }
   0x8   : > { %p35_p4 = por %p34_p2, %p33_p1  ;;  %p7182_p5 = por %p126_p3, %p33_p1 }
   0x9   : > { %p5176_p6 = scmp.ge.s32.totalorder %s7108_s23, 2 }
   0xb   : > { %199 = sbr.rel (%p5176_p6) target bundleno = 38 (0x26), region = 28 }
  0x12   : > { %202 = sbr.rel (!%p35_p4) target bundleno = 38 (0x26), region = 32  ;;  %s204_s30 = sand.u32 (%p35_p4), 1, %s7104_s22  }
  0x13   : > { %s5448_s7 = sshll.u32 (%p35_p4), %s7108_s23, 5  ;;  %s5177_s8 = sshll.u32 (%p35_p4), %s204_s30, 8 }
  0x14   : > { %s7192_s11 = scalar_lea.vmem (%p35_p4), %s8932_s0, %s5448_s7  ;;  %s7197_s12 = scalar_lea.vmem (%p35_p4), [#allocation4], %s5177_s8 }
  0x15   : > { %v222_v0 = vld [vmem:[%s7192_s11] sm:$0xff] (%p35_p4)  ;;  %v224_v1 = vld [vmem:[%s7192_s11 + $0x8] sm:$0xff] (%p35_p4)  ;;  %v226_v2 = vld [vmem:[%s7192_s11 + $0x10] sm:$0xff] (%p35_p4) }
  0x16   : > { %223 = vst [vmem:[%s7197_s12] sm:$0xff] (%p35_p4), %v222_v0  ;;  %225 = vst [vmem:[%s7197_s12 + $0x8] sm:$0xff] (%p35_p4), %v224_v1  ;;  %v228_v3 = vld [vmem:[%s7192_s11 + $0x18] sm:$0xff] (%p35_p4)  ;;  %v230_v4 = vld [vmem:[%s7192_s11 + $0x40] sm:$0xff] (%p35_p4) }
  0x17   : > { %227 = vst [vmem:[%s7197_s12 + $0x10] sm:$0xff] (%p35_p4), %v226_v2  ;;  %v232_v5 = vld [vmem:[%s7192_s11 + $0x48] sm:$0xff] (%p35_p4)  ;;  %229 = vst [vmem:[%s7197_s12 + $0x18] sm:$0xff] (%p35_p4), %v228_v3  ;;  %v234_v6 = vld [vmem:[%s7192_s11 + $0x50] sm:$0xff] (%p35_p4) }
  0x18   : > { %231 = vst [vmem:[%s7197_s12 + $0x20] sm:$0xff] (%p35_p4), %v230_v4  ;;  %233 = vst [vmem:[%s7197_s12 + $0x28] sm:$0xff] (%p35_p4), %v232_v5  ;;  %v236_v7 = vld [vmem:[%s7192_s11 + $0x58] sm:$0xff] (%p35_p4)  ;;  %v238_v8 = vld [vmem:[%s7192_s11 + $0x80] sm:$0xff] (%p35_p4) }
  0x19   : > { %235 = vst [vmem:[%s7197_s12 + $0x30] sm:$0xff] %v234_v6  ;;  %237 = vst [vmem:[%s7197_s12 + $0x38] sm:$0xff] %v236_v7  ;;  %v240_v9 = vld [vmem:[%s7192_s11 + $0x88] sm:$0xff]  ;;  %v242_v10 = vld [vmem:[%s7192_s11 + $0x90] sm:$0xff] }
  0x1a   : > { %239 = vst [vmem:[%s7197_s12 + $0x40] sm:$0xff] %v238_v8  ;;  %v244_v11 = vld [vmem:[%s7192_s11 + $0x98] sm:$0xff]  ;;  %241 = vst [vmem:[%s7197_s12 + $0x48] sm:$0xff] %v240_v9  ;;  %v246_v12 = vld [vmem:[%s7192_s11 + $0xc0] sm:$0xff] }
  0x1b   : > { %243 = vst [vmem:[%s7197_s12 + $0x50] sm:$0xff] %v242_v10  ;;  %245 = vst [vmem:[%s7197_s12 + $0x58] sm:$0xff] %v244_v11  ;;  %v248_v13 = vld [vmem:[%s7192_s11 + $0xc8] sm:$0xff]  ;;  %v250_v14 = vld [vmem:[%s7192_s11 + $0xd0] sm:$0xff] }
  0x1c   : > { %247 = vst [vmem:[%s7197_s12 + $0x60] sm:$0xff] %v246_v12  ;;  %249 = vst [vmem:[%s7197_s12 + $0x68] sm:$0xff] %v248_v13  ;;  %v252_v15 = vld [vmem:[%s7192_s11 + $0xd8] sm:$0xff]  ;;  %v254_v16 = vld [vmem:[%s7192_s11 + $0x100] sm:$0xff] }
  0x1d   : > { %251 = vst [vmem:[%s7197_s12 + $0x70] sm:$0xff] %v250_v14  ;;  %v256_v17 = vld [vmem:[%s7192_s11 + $0x108] sm:$0xff]  ;;  %253 = vst [vmem:[%s7197_s12 + $0x78] sm:$0xff] %v252_v15  ;;  %v258_v18 = vld [vmem:[%s7192_s11 + $0x110] sm:$0xff] }
  0x1e   : > { %255 = vst [vmem:[%s7197_s12 + $0x80] sm:$0xff] %v254_v16  ;;  %257 = vst [vmem:[%s7197_s12 + $0x88] sm:$0xff] %v256_v17  ;;  %v260_v19 = vld [vmem:[%s7192_s11 + $0x118] sm:$0xff]  ;;  %v262_v20 = vld [vmem:[%s7192_s11 + $0x140] sm:$0xff] }
  0x1f   : > { %259 = vst [vmem:[%s7197_s12 + $0x90] sm:$0xff] %v258_v18  ;;  %261 = vst [vmem:[%s7197_s12 + $0x98] sm:$0xff] %v260_v19  ;;  %v264_v21 = vld [vmem:[%s7192_s11 + $0x148] sm:$0xff]  ;;  %v266_v22 = vld [vmem:[%s7192_s11 + $0x150] sm:$0xff] }
  0x20   : > { %263 = vst [vmem:[%s7197_s12 + $0xa0] sm:$0xff] %v262_v20  ;;  %v268_v23 = vld [vmem:[%s7192_s11 + $0x158] sm:$0xff]  ;;  %265 = vst [vmem:[%s7197_s12 + $0xa8] sm:$0xff] %v264_v21  ;;  %v270_v24 = vld [vmem:[%s7192_s11 + $0x180] sm:$0xff] }
  0x21   : > { %267 = vst [vmem:[%s7197_s12 + $0xb0] sm:$0xff] %v266_v22  ;;  %269 = vst [vmem:[%s7197_s12 + $0xb8] sm:$0xff] %v268_v23  ;;  %v272_v25 = vld [vmem:[%s7192_s11 + $0x188] sm:$0xff]  ;;  %v274_v26 = vld [vmem:[%s7192_s11 + $0x190] sm:$0xff] }
  0x22   : > { %271 = vst [vmem:[%s7197_s12 + $0xc0] sm:$0xff] %v270_v24  ;;  %273 = vst [vmem:[%s7197_s12 + $0xc8] sm:$0xff] %v272_v25  ;;  %v276_v27 = vld [vmem:[%s7192_s11 + $0x198] sm:$0xff]  ;;  %v278_v28 = vld [vmem:[%s7192_s11 + $0x1c0] sm:$0xff] }
  0x23   : > { %275 = vst [vmem:[%s7197_s12 + $0xd0] sm:$0xff] %v274_v26  ;;  %v280_v29 = vld [vmem:[%s7192_s11 + $0x1c8] sm:$0xff]  ;;  %277 = vst [vmem:[%s7197_s12 + $0xd8] sm:$0xff] %v276_v27  ;;  %v282_v30 = vld [vmem:[%s7192_s11 + $0x1d0] sm:$0xff] }
  0x24   : > { %279 = vst [vmem:[%s7197_s12 + $0xe0] sm:$0xff] %v278_v28  ;;  %281 = vst [vmem:[%s7197_s12 + $0xe8] sm:$0xff] %v280_v29  ;;  %v284_v31 = vld [vmem:[%s7192_s11 + $0x1d8] sm:$0xff] }
  0x25   : > { %283 = vst [vmem:[%s7197_s12 + $0xf0] sm:$0xff] %v282_v30  ;;  %285 = vst [vmem:[%s7197_s12 + $0xf8] sm:$0xff] %v284_v31 }
  0x26 PF: > { %p5180_p7 = scmp.ge.s32.totalorder %s7108_s23, 1  ;;  %p290_p8 = scmp.lt.s32.totalorder %s7108_s23, 3 }
  0x28   : > { %p291_p9 = pnand %p5180_p7, %p290_p8 }
  0x2a   : > { %294 = sbr.rel (%p291_p9) target bundleno = 2648 (0xa58), region = 55 }
  0x31   : > { %s297_s13 = sand.u32 1, %s7100_s21   ;;  %p5183_p10 = scmp.ne.s32.totalorder %s7165_s24, 0 }
  0x32   : > { %s5181_s14 = sshll.u32 %s297_s13, 8  ;;  %s5182_s15 = sshll.u32 %s297_s13, 6  ;;  %v329_v32 = vld [vmem:[%s8933_s1] sm:$0xff] (!%p5183_p10) }
  0x33   : > { %s7263_s16 = scalar_lea.vmem [#allocation4], %s5181_s14  ;;  %s7265_s17 = scalar_lea.vmem [#allocation5], %s5182_s15  ;;  %v331_v33 = vld [vmem:[%s8934_s2] sm:$0xff] (!%p5183_p10)  ;;  %330 = vst [vmem:[#allocation2] sm:$0xff] (!%p5183_p10), %v329_v32 }
  0x34   : > { %328 = sbr.rel (%p5183_p10) target bundleno = 59 (0x3b), region = 63  ;;  %332 = vst [vmem:[#allocation3] sm:$0xff] (!%p5183_p10), %v331_v33 }
  0x3b PF: > { %v336_v34 = vld [vmem:[%s8935_s3 + $0x8] sm:$0xff]  ;;  %v338_v36 = vld [vmem:[%s8935_s3 + $0x18] sm:$0xff]  ;;  %v335_v39 = vld [vmem:[%s8935_s3] sm:$0xff]  ;;  %v8939_v41 = vmov 0.0   ;;  %p5439_p11 = scmp.ne.s32.totalorder %s7165_s24, 1 }
  0x3c   : > { %v340_v35 = vld [vmem:[%s8935_s3 + $0x28] sm:$0xff]  ;;  %v342_v38 = vld [vmem:[%s8935_s3 + $0x38] sm:$0xff]  ;;  %v339_v40 = vld [vmem:[%s8935_s3 + $0x20] sm:$0xff]  ;;  %478 = vmatprep.mubr.f32.mxu0 %v8939_v41  ;;  %549 = vmatprep.mubr.f32.mxu1 %v8939_v41 }
  0x3d   : > { %v7283_v37 = vpack.c.bf16 %v340_v35, %v336_v34  ;;  %v7296_v42 = vpack.c.bf16 %v342_v38, %v338_v36  ;;  %v7298_v43 = vpack.c.bf16 %v339_v40, %v335_v39  ;;  %v337_v44 = vld [vmem:[%s8935_s3 + $0x10] sm:$0xff]  ;;  %v344_v46 = vld [vmem:[%s8935_s3 + $0x48] sm:$0xff]  ;;  %v346_v49 = vld [vmem:[%s8935_s3 + $0x58] sm:$0xff] }
  0x3e   : > { %v341_v45 = vld [vmem:[%s8935_s3 + $0x30] sm:$0xff]  ;;  %v348_v48 = vld [vmem:[%s8935_s3 + $0x68] sm:$0xff]  ;;  %v350_v50 = vld [vmem:[%s8935_s3 + $0x78] sm:$0xff] }
  0x3f   : > { %8968 = vst [vmem:[#allocation12_spill] sm:$0xff] %v7283_v37  ;;  %8969 = vst [vmem:[#allocation13_spill] sm:$0xff] %v7296_v42  ;;  %5450 = vmatprep.subr.bf16.mxu0 %v7283_v37  ;;  %v7310_v47 = vpack.c.bf16 %v341_v45, %v337_v44  ;;  %5482 = vmatprep.subr.bf16.mxu1 %v7296_v42  ;;  %v7323_v51 = vpack.c.bf16 %v348_v48, %v344_v46  ;;  %v343_v53 = vld [vmem:[%s8935_s3 + $0x40] sm:$0xff]  ;;  %v345_v55 = vld [vmem:[%s8935_s3 + $0x50] sm:$0xff] }
  0x40   : > { %5452 = vmatpush1.bf16.msra.mxu0 %v7298_v43  ;;  %v7325_v52 = vpack.c.bf16 %v350_v50, %v346_v49  ;;  %v347_v54 = vld [vmem:[%s8935_s3 + $0x60] sm:$0xff]  ;;  %v349_v57 = vld [vmem:[%s8935_s3 + $0x70] sm:$0xff]  ;;  %v352_v58 = vld [vmem:[%s8935_s3 + $0x88] sm:$0xff] }
  0x41   : > { %5484 = vmatpush1.bf16.msra.mxu1 %v7310_v47  ;;  %v7337_v56 = vpack.c.bf16 %v347_v54, %v343_v53  ;;  %v356_v59 = vld [vmem:[%s8935_s3 + $0xa8] sm:$0xff]  ;;  %5454 = vmatprep.subr.bf16.mxu0 %v7323_v51  ;;  %v7350_v60 = vpack.c.bf16 %v349_v57, %v345_v55  ;;  %v354_v62 = vld [vmem:[%s8935_s3 + $0x98] sm:$0xff]  ;;  %v351_v0 = vld [vmem:[%s8935_s3 + $0x80] sm:$0xff] }
  0x42   : > { %5486 = vmatprep.subr.bf16.mxu1 %v7325_v52  ;;  %v7352_v61 = vpack.c.bf16 %v356_v59, %v352_v58  ;;  %v358_v63 = vld [vmem:[%s8935_s3 + $0xb8] sm:$0xff]  ;;  %v355_v2 = vld [vmem:[%s8935_s3 + $0xa0] sm:$0xff]  ;;  %v353_v3 = vld [vmem:[%s8935_s3 + $0x90] sm:$0xff] }
  0x43   : > { %v7363_v1 = vpack.c.bf16 %v358_v63, %v354_v62  ;;  %v357_v4 = vld [vmem:[%s8935_s3 + $0xb0] sm:$0xff]  ;;  %v7375_v5 = vpack.c.bf16 %v355_v2, %v351_v0  ;;  %v360_v6 = vld [vmem:[%s8935_s3 + $0xc8] sm:$0xff]  ;;  %v362_v8 = vld [vmem:[%s8935_s3 + $0xd8] sm:$0xff] }
  0x44   : > { %5456 = vmatpush1.bf16.msra.mxu0 %v7337_v56  ;;  %v364_v7 = vld [vmem:[%s8935_s3 + $0xe8] sm:$0xff]  ;;  %v7388_v9 = vpack.c.bf16 %v357_v4, %v353_v3  ;;  %v366_v11 = vld [vmem:[%s8935_s3 + $0xf8] sm:$0xff]  ;;  %v359_v12 = vld [vmem:[%s8935_s3 + $0xc0] sm:$0xff] }
  0x45   : > { %5488 = vmatpush1.bf16.msra.mxu1 %v7350_v60  ;;  %5458 = vmatprep.subr.bf16.mxu0 %v7352_v61  ;;  %v7390_v10 = vpack.c.bf16 %v364_v7, %v360_v6  ;;  %v363_v13 = vld [vmem:[%s8935_s3 + $0xe0] sm:$0xff]  ;;  %v7402_v14 = vpack.c.bf16 %v366_v11, %v362_v8  ;;  %v361_v15 = vld [vmem:[%s8935_s3 + $0xd0] sm:$0xff]  ;;  %v368_v17 = vld [vmem:[%s8935_s3 + $0x108] sm:$0xff] }
  0x46   : > { %5490 = vmatprep.subr.bf16.mxu1 %v7363_v1  ;;  %v365_v16 = vld [vmem:[%s8935_s3 + $0xf0] sm:$0xff]  ;;  %v372_v18 = vld [vmem:[%s8935_s3 + $0x128] sm:$0xff]  ;;  %v370_v19 = vld [vmem:[%s8935_s3 + $0x118] sm:$0xff]  ;;  %v7423_v21 = vpack.c.bf16 %v363_v13, %v359_v12 }
  0x47   : > { %v374_v20 = vld [vmem:[%s8935_s3 + $0x138] sm:$0xff]  ;;  %v7427_v22 = vpack.c.bf16 %v365_v16, %v361_v15  ;;  %v7429_v23 = vpack.c.bf16 %v372_v18, %v368_v17  ;;  %v367_v24 = vld [vmem:[%s8935_s3 + $0x100] sm:$0xff]  ;;  %v369_v26 = vld [vmem:[%s8935_s3 + $0x110] sm:$0xff] }
  0x48   : > { %5460 = vmatpush1.bf16.msra.mxu0 %v7375_v5  ;;  %v371_v25 = vld [vmem:[%s8935_s3 + $0x120] sm:$0xff]  ;;  %v7441_v27 = vpack.c.bf16 %v374_v20, %v370_v19  ;;  %v373_v28 = vld [vmem:[%s8935_s3 + $0x130] sm:$0xff]  ;;  %v376_v29 = vld [vmem:[%s8935_s3 + $0x148] sm:$0xff]  ;;  %v7111_v19 = vmov 1966171168  }
  0x49   : > { %5492 = vmatpush1.bf16.msra.mxu1 %v7388_v9  ;;  %5462 = vmatprep.subr.bf16.mxu0 %v7390_v10  ;;  %v380_v30 = vld [vmem:[%s8935_s3 + $0x168] sm:$0xff]  ;;  %v378_v31 = vld [vmem:[%s8935_s3 + $0x158] sm:$0xff]  ;;  %v7459_v33 = vpack.c.bf16 %v371_v25, %v367_v24  ;;  %v7463_v34 = vpack.c.bf16 %v373_v28, %v369_v26  ;;  %v375_v36 = vld [vmem:[%s8935_s3 + $0x140] sm:$0xff]  ;;  %v565_v20 = vunpack.c.l.s4 %v7111_v19  ;;  %v567_v24 = vlaneseq }
  0x4a   : > { %5494 = vmatprep.subr.bf16.mxu1 %v7402_v14  ;;  %v382_v32 = vld [vmem:[%s8935_s3 + $0x178] sm:$0xff]  ;;  %v7465_v35 = vpack.c.bf16 %v380_v30, %v376_v29  ;;  %v379_v38 = vld [vmem:[%s8935_s3 + $0x160] sm:$0xff]  ;;  %v377_v39 = vld [vmem:[%s8935_s3 + $0x150] sm:$0xff] }
  0x4b   : > { %v7477_v40 = vpack.c.bf16 %v382_v32, %v378_v31  ;;  %v381_v44 = vld [vmem:[%s8935_s3 + $0x170] sm:$0xff]  ;;  %v384_v45 = vld [vmem:[%s8935_s3 + $0x188] sm:$0xff]  ;;  %v386_v48 = vld [vmem:[%s8935_s3 + $0x198] sm:$0xff]  ;;  %v7495_v50 = vpack.c.bf16 %v379_v38, %v375_v36  ;;  %v566_v25 = vunpack.c.0.s8 %v565_v20  ;;  %v568_v26 = vshrl.u32 %v567_v24, 7 }
  0x4c   : > { %5464 = vmatpush1.bf16.msra.mxu0 %v7423_v21  ;;  %v388_v46 = vld [vmem:[%s8935_s3 + $0x1a8] sm:$0xff]  ;;  %v390_v49 = vld [vmem:[%s8935_s3 + $0x1b8] sm:$0xff]  ;;  %v7499_v53 = vpack.c.bf16 %v381_v44, %v377_v39  ;;  %v383_v55 = vld [vmem:[%s8935_s3 + $0x180] sm:$0xff] }
  0x4d   : > { %5496 = vmatpush1.bf16.msra.mxu1 %v7427_v22  ;;  %5466 = vmatprep.subr.bf16.mxu0 %v7429_v23  ;;  %8970 = vst [vmem:[#allocation14_spill] sm:$0xff] %v7477_v40  ;;  %8971 = vst [vmem:[#allocation15_spill] sm:$0xff] %v7495_v50  ;;  %v7501_v54 = vpack.c.bf16 %v388_v46, %v384_v45  ;;  %v387_v57 = vld [vmem:[%s8935_s3 + $0x1a0] sm:$0xff]  ;;  %v385_v58 = vld [vmem:[%s8935_s3 + $0x190] sm:$0xff]  ;;  %v7513_v59 = vpack.c.bf16 %v390_v49, %v386_v48 }
  0x4e   : > { %5498 = vmatprep.subr.bf16.mxu1 %v7441_v27  ;;  %8972 = vst [vmem:[#allocation16_spill] sm:$0xff] %v7499_v53  ;;  %v389_v62 = vld [vmem:[%s8935_s3 + $0x1b0] sm:$0xff]  ;;  %v392_v63 = vld [vmem:[%s8935_s3 + $0x1c8] sm:$0xff]  ;;  %v394_v2 = vld [vmem:[%s8935_s3 + $0x1d8] sm:$0xff]  ;;  %v7531_v4 = vpack.c.bf16 %v387_v57, %v383_v55  ;;  %v7600_v29 = vsub.s32 %v566_v25, %v568_v26 }
  0x4f   : > { %8973 = vst [vmem:[#allocation17_spill] sm:$0xff] %v7501_v54  ;;  %8974 = vst [vmem:[#allocation18_spill] sm:$0xff] %v7513_v59  ;;  %v396_v0 = vld [vmem:[%s8935_s3 + $0x1e8] sm:$0xff]  ;;  %v398_v3 = vld [vmem:[%s8935_s3 + $0x1f8] sm:$0xff]  ;;  %v7535_v6 = vpack.c.bf16 %v389_v62, %v385_v58 }
  0x50   : > { %5468 = vmatpush1.bf16.msra.mxu0 %v7459_v33  ;;  %8975 = vst [vmem:[#allocation19_spill] sm:$0xff] %v7531_v4  ;;  %v7537_v7 = vpack.c.bf16 %v396_v0, %v392_v63  ;;  %v391_v8 = vld [vmem:[%s8935_s3 + $0x1c0] sm:$0xff]  ;;  %v7546_v12 = vpack.c.bf16 %v398_v3, %v394_v2  ;;  %v393_v13 = vld [vmem:[%s8935_s3 + $0x1d0] sm:$0xff] }
  0x51   : > { %5500 = vmatpush1.bf16.msra.mxu1 %v7463_v34  ;;  %5470 = vmatprep.subr.bf16.mxu0 %v7465_v35  ;;  %8976 = vst [vmem:[#allocation20_spill] sm:$0xff] %v7535_v6  ;;  %v395_v11 = vld [vmem:[%s8935_s3 + $0x1e0] sm:$0xff]  ;;  %v397_v15 = vld [vmem:[%s8935_s3 + $0x1f0] sm:$0xff] }
  0x52   : > { %5502 = vmatprep.subr.bf16.mxu1 %v7477_v40  ;;  %8977 = vst [vmem:[#allocation21_spill] sm:$0xff] %v7537_v7  ;;  %8978 = vst [vmem:[#allocation22_spill] sm:$0xff] %v7546_v12  ;;  %v7555_v16 = vpack.c.bf16 %v395_v11, %v391_v8  ;;  %v7559_v17 = vpack.c.bf16 %v397_v15, %v393_v13  ;;  %v333_v18 = vld [vmem:[#allocation2] sm:$0xff] }
  0x53   : > { %v399_v63 = vld [vmem:[%s7263_s16] ss:$8 sm:$0xf] }
  0x54   : > { %5472 = vmatpush1.bf16.msra.mxu0 %v7495_v50  ;;  %8979 = vst [vmem:[#allocation23_spill] sm:$0xff] %v7555_v16  ;;  %8980 = vst [vmem:[#allocation24_spill] sm:$0xff] %v7559_v17  ;;  %v5184_v0 = vld [vmem:[%s7263_s16 + $0x20] ss:$8 sm:$0xf] }
  0x55   : > { %5504 = vmatpush1.bf16.msra.mxu1 %v7499_v53  ;;  %5474 = vmatprep.subr.bf16.mxu0 %v7501_v54  ;;  %v5185_v2 = vld [vmem:[%s7263_s16 + $0x40] ss:$8 sm:$0xf] }
  0x56   : > { %5506 = vmatprep.subr.bf16.mxu1 %v7513_v59  ;;  %v5187_v3 = vld [vmem:[%s7263_s16 + $0x80] ss:$8 sm:$0xf] }
  0x57   : > { %v5188_v19 = vld [vmem:[%s7263_s16 + $0xa0] ss:$8 sm:$0xf] }
  0x58   : > { %5476 = vmatpush1.bf16.msra.mxu0 %v7531_v4  ;;  %v5189_v20 = vld [vmem:[%s7263_s16 + $0xc0] ss:$8 sm:$0xf] }
  0x59   : > { %5508 = vmatpush1.bf16.msra.mxu1 %v7535_v6  ;;  %5478 = vmatprep.subr.bf16.mxu0 %v7537_v7 }
  0x5a   : > { %5510 = vmatprep.subr.bf16.mxu1 %v7546_v12 }
  0x5c   : > { %5480 = vmatpush1.bf16.msra.mxu0 %v7555_v16 }
  0x5d   : > { %5512 = vmatpush1.bf16.msra.mxu1 %v7559_v17  ;;  %5514 = vmatprep.subr.bf16.mxu0 %v7283_v37 }
  0x5e   : > { %5546 = vmatprep.subr.bf16.mxu1 %v7296_v42 }
  0x5f   : > { %479 = vmatmul.mubr.f32.vlgmr.msra.gmra.mrb[0].mxu0 %v333_v18 }
  0x60   : > { %550 = vmatmul.mubr.f32.vlgmr.msra.gmra.mrb[0].mxu1 %v333_v18  ;;  %5516 = vmatpush1.bf16.msra.mxu0 %v7298_v43  ;;  %v5186_v18 = vld [vmem:[%s7263_s16 + $0x60] ss:$8 sm:$0xf] }
  0x61   : > { %5548 = vmatpush1.bf16.msra.mxu1 %v7310_v47  ;;  %5518 = vmatprep.subr.bf16.mxu0 %v7323_v51 }
  0x62   : > { %5550 = vmatprep.subr.bf16.mxu1 %v7325_v52  ;;  %1096 = vmatprep.mubr.f32.mxu0 %v8939_v41 }
  0x63   : > { %1167 = vmatprep.mubr.f32.mxu1 %v8939_v41 }
  0x64   : > { %5520 = vmatpush1.bf16.msra.mxu0 %v7337_v56 }
  0x65   : > { %5552 = vmatpush1.bf16.msra.mxu1 %v7350_v60  ;;  %5522 = vmatprep.subr.bf16.mxu0 %v7352_v61 }
  0x66   : > { %5554 = vmatprep.subr.bf16.mxu1 %v7363_v1 }
  0x68   : > { %5524 = vmatpush1.bf16.msra.mxu0 %v7375_v5 }
  0x69   : > { %5556 = vmatpush1.bf16.msra.mxu1 %v7388_v9  ;;  %5526 = vmatprep.subr.bf16.mxu0 %v7390_v10 }
  0x6a   : > { %5558 = vmatprep.subr.bf16.mxu1 %v7402_v14 }
  0x6c   : > { %5528 = vmatpush1.bf16.msra.mxu0 %v7423_v21 }
  0x6d   : > { %5560 = vmatpush1.bf16.msra.mxu1 %v7427_v22  ;;  %5530 = vmatprep.subr.bf16.mxu0 %v7429_v23 }
  0x6e   : > { %5562 = vmatprep.subr.bf16.mxu1 %v7441_v27 }
  0x70   : > { %5532 = vmatpush1.bf16.msra.mxu0 %v7459_v33 }
  0x71   : > { %5564 = vmatpush1.bf16.msra.mxu1 %v7463_v34  ;;  %5534 = vmatprep.subr.bf16.mxu0 %v7465_v35 }
  0x72   : > { %5566 = vmatprep.subr.bf16.mxu1 %v7477_v40 }
  0x74   : > { %5536 = vmatpush1.bf16.msra.mxu0 %v7495_v50 }
  0x75   : > { %5568 = vmatpush1.bf16.msra.mxu1 %v7499_v53  ;;  %5538 = vmatprep.subr.bf16.mxu0 %v7501_v54 }
  0x76   : > { %5570 = vmatprep.subr.bf16.mxu1 %v7513_v59 }
  0x78   : > { %5540 = vmatpush1.bf16.msra.mxu0 %v7531_v4 }
  0x79   : > { %5572 = vmatpush1.bf16.msra.mxu1 %v7535_v6  ;;  %5542 = vmatprep.subr.bf16.mxu0 %v7537_v7 }
  0x7a   : > { %5574 = vmatprep.subr.bf16.mxu1 %v7546_v12 }
  0x7c   : > { %5544 = vmatpush1.bf16.msra.mxu0 %v7555_v16 }
  0x7d   : > { %5576 = vmatpush1.bf16.msra.mxu1 %v7559_v17  ;;  %5578 = vmatprep.subr.bf16.mxu0 %v7283_v37 }
  0x7e   : > { %5610 = vmatprep.subr.bf16.mxu1 %v7296_v42 }
 0x132   : > { %v480_v28 = vpop.f32.mrb[0].mxu0 }
 0x133   : > { %v551_v30 = vpop.f32.mrb[0].mxu1  ;;  %v482_v31 = vpop.f32.mrb[1].mxu0 }
 0x134   : > { %v560_v32 = vcombine.low %v480_v28, %v482_v31  ;;  %v561_v36 = vcombine.high %v480_v28, %v482_v31  ;;  %v553_v38 = vpop.f32.mrb[1].mxu1 }
 0x135   : > { %v562_v39 = vcombine.low %v551_v30, %v553_v38  ;;  %v563_v44 = vcombine.high %v551_v30, %v553_v38  ;;  %v5190_v30 = vld [vmem:[%s7263_s16 + $0xe0] ss:$8 sm:$0xf] }
 0x136   : > { %v570_v45 = vrot.slane %v560_v32, %v7600_v29  ;;  %v577_v46 = vrot.slane %v561_v36, %v7600_v29 }
 0x137   : > { %v584_v48 = vrot.slane %v562_v39, %v7600_v29  ;;  %v591_v49 = vrot.slane %v563_v44, %v7600_v29 }
 0x139   : > { %v592_v55 = vcombine.low %v570_v45, %v584_v48  ;;  %v593_v57 = vcombine.high %v570_v45, %v584_v48  ;;  %v594_v58 = vcombine.low %v577_v46, %v591_v49  ;;  %v595_v62 = vcombine.high %v577_v46, %v591_v49 }
 0x13b   : > { %v602_v8 = vrot.slane %v592_v55, %v7600_v29  ;;  %v609_v11 = vrot.slane %v594_v58, %v7600_v29  ;;  %v616_v13 = vrot.slane %v593_v57, %v7600_v29  ;;  %v623_v15 = vrot.slane %v595_v62, %v7600_v29 }
 0x13d   : > { %v624_v24 = vcombine.high %v602_v8, %v602_v8  ;;  %v625_v25 = vcombine.high %v609_v11, %v609_v11  ;;  %v626_v26 = vcombine.high %v616_v13, %v616_v13  ;;  %v627_v28 = vcombine.high %v623_v15, %v623_v15 }
 0x13e   : > { %v7618_v31 = vadd.f32 %v602_v8, %v399_v63  ;;  %v7620_v32 = vadd.f32 %v5184_v0, %v616_v13  ;;  %v7622_v36 = vadd.f32 %v5187_v3, %v609_v11  ;;  %v7628_v44 = vadd.f32 %v5188_v19, %v623_v15 }
 0x13f   : > { %v7624_v38 = vadd.f32 %v5185_v2, %v624_v24  ;;  %v7626_v39 = vadd.f32 %v5186_v18, %v626_v26  ;;  %v7630_v45 = vadd.f32 %v5189_v20, %v625_v25  ;;  %v7634_v49 = vadd.f32 %v5190_v30, %v627_v28 }
 0x140   : > { %v5191_v46 = vmul.f32 -1.442695, %v7618_v31  ;;  %v5192_v48 = vmul.f32 -1.442695, %v7620_v32  ;;  %v5195_v58 = vmul.f32 -1.442695, %v7622_v36 }
 0x141   : > { %v5193_v55 = vmul.f32 -1.442695, %v7624_v38  ;;  %v5194_v57 = vmul.f32 -1.442695, %v7626_v39  ;;  %v700_v62 = vrot.slane %v7618_v31, 1  ;;  %v701_v0 = vrot.slane %v7620_v32, 1 }
 0x142   : > { %6002 = vpow2.f32 %v5191_v46  ;;  %v5196_v63 = vmul.f32 -1.442695, %v7628_v44  ;;  %v5197_v2 = vmul.f32 -1.442695, %v7630_v45  ;;  %v702_v3 = vrot.slane %v7624_v38, 1 }
 0x143   : > { %6004 = vpow2.f32 %v5192_v48  ;;  %v5198_v8 = vmul.f32 -1.442695, %v7634_v49  ;;  %v703_v11 = vrot.slane %v7626_v39, 1  ;;  %v704_v13 = vrot.slane %v7622_v36, 1 }
 0x144   : > { %6006 = vpow2.f32 %v5193_v55  ;;  %v5199_v15 = vmul.f32 -1.442695, %v700_v62  ;;  %v5200_v18 = vmul.f32 -1.442695, %v701_v0  ;;  %v5201_v19 = vmul.f32 -1.442695, %v702_v3 }
 0x145   : > { %6008 = vpow2.f32 %v5194_v57  ;;  %v5202_v20 = vmul.f32 -1.442695, %v703_v11  ;;  %v5203_v24 = vmul.f32 -1.442695, %v704_v13  ;;  %v705_v57 = vrot.slane %v7628_v44, 1 }
 0x146   : > { %6010 = vpow2.f32 %v5195_v58  ;;  %v707_v3 = vrot.slane %v7634_v49, 1  ;;  %v769_v37 = vrot.slane %v7628_v44, 2 }
 0x147   : > { %6012 = vpow2.f32 %v5196_v63  ;;  %v706_v63 = vrot.slane %v7630_v45, 1 }
 0x148   : > { %6014 = vpow2.f32 %v5197_v2 }
 0x149   : > { %6016 = vpow2.f32 %v5198_v8 }
 0x14a   : > { %6018 = vpow2.f32 %v5199_v15 }
 0x14b   : > { %6020 = vpow2.f32 %v5200_v18  ;;  %v5204_v18 = vmul.f32 -1.442695, %v705_v57 }
 0x14c   : > { %v6003_v25 = vpop.eup %6002  ;;  %6022 = vpow2.f32 %v5201_v19 }
 0x14d   : > { %v6005_v26 = vpop.eup %6004  ;;  %v668_v28 = vadd.f32 1.0, %v6003_v25  ;;  %6024 = vpow2.f32 %v5202_v20 }
 0x14e   : > { %v6007_v30 = vpop.eup %6006  ;;  %v669_v46 = vadd.f32 1.0, %v6005_v26  ;;  %6026 = vpow2.f32 %v5203_v24  ;;  %v5205_v24 = vmul.f32 -1.442695, %v706_v63  ;;  %v5206_v26 = vmul.f32 -1.442695, %v707_v3 }
 0x14f   : > { %v6009_v48 = vpop.eup %6008  ;;  %v670_v55 = vadd.f32 1.0, %v6007_v30  ;;  %6028 = vrcp.f32 %v668_v28  ;;  %v764_v3 = vrot.slane %v7618_v31, 2 }
 0x150   : > { %v6011_v58 = vpop.eup %6010  ;;  %v671_v62 = vadd.f32 1.0, %v6009_v48  ;;  %6030 = vrcp.f32 %v669_v46 }
 0x151   : > { %v6013_v0 = vpop.eup %6012  ;;  %v672_v2 = vadd.f32 1.0, %v6011_v58  ;;  %6032 = vrcp.f32 %v670_v55 }
 0x152   : > { %v6015_v8 = vpop.eup %6014  ;;  %v673_v11 = vadd.f32 1.0, %v6013_v0  ;;  %6034 = vrcp.f32 %v671_v62 }
 0x153   : > { %v6017_v13 = vpop.eup %6016  ;;  %v674_v15 = vadd.f32 1.0, %v6015_v8  ;;  %6036 = vrcp.f32 %v672_v2 }
 0x154   : > { %v6019_v19 = vpop.eup %6018  ;;  %v675_v20 = vadd.f32 1.0, %v6017_v13  ;;  %6038 = vrcp.f32 %v673_v11  ;;  %v765_v11 = vrot.slane %v7620_v32, 2  ;;  %v334_v13 = vld [vmem:[#allocation3] sm:$0xff] }
 0x155   : > { %v6021_v25 = vpop.eup %6020  ;;  %6040 = vrcp.f32 %v674_v15  ;;  %v740_v30 = vadd.f32 1.0, %v6019_v19  ;;  %v860_v19 = vrot.slane %v334_v13, %v7600_v29 }
 0x156   : > { %v6023_v28 = vpop.eup %6022  ;;  %6042 = vrcp.f32 %v675_v20  ;;  %v741_v48 = vadd.f32 1.0, %v6021_v25 }
 0x157   : > { %v6025_v46 = vpop.eup %6024  ;;  %6044 = vpow2.f32 %v5204_v18  ;;  %v742_v58 = vadd.f32 1.0, %v6023_v28  ;;  %v766_v18 = vrot.slane %v7624_v38, 2 }
 0x158   : > { %v6027_v55 = vpop.eup %6026  ;;  %6046 = vpow2.f32 %v5205_v24  ;;  %v743_v57 = vadd.f32 1.0, %v6025_v46  ;;  %v767_v24 = vrot.slane %v7626_v39, 2  ;;  %v853_v46 = vcombine.high %v334_v13, %v334_v13 }
 0x159   : > { %v7650_v62 = vpop.eup %6028  ;;  %6048 = vpow2.f32 %v5206_v26  ;;  %v744_v2 = vadd.f32 1.0, %v6027_v55  ;;  %v768_v26 = vrot.slane %v7622_v36, 2  ;;  %v770_v13 = vrot.slane %v7630_v45, 2 }
 0x15a   : > { %v7652_v0 = vpop.eup %6030  ;;  %6050 = vrcp.f32 %v740_v30 }
 0x15b   : > { %v7654_v63 = vpop.eup %6032  ;;  %6052 = vrcp.f32 %v741_v48  ;;  %v868_v48 = vcombine.high %v860_v19, %v860_v19 }
 0x15c   : > { %v7657_v8 = vpop.eup %6034  ;;  %6054 = vrcp.f32 %v742_v58 }
 0x15d   : > { %v7660_v15 = vpop.eup %6036  ;;  %6056 = vrcp.f32 %v743_v57  ;;  %v788_v57 = vrot.slane %v7618_v31, 3  ;;  %v771_v31 = vrot.slane %v7634_v49, 2 }
 0x15e   : > { %v7664_v20 = vpop.eup %6038  ;;  %6058 = vrcp.f32 %v744_v2  ;;  %v876_v2 = vrot.slane %v860_v19, %v7600_v29  ;;  %v791_v19 = vrot.slane %v7626_v39, 3 }
 0x15f   : > { %v7667_v25 = vpop.eup %6040  ;;  %6060 = vtanh.f32 %v764_v3  ;;  %v789_v3 = vrot.slane %v7620_v32, 3  ;;  %v5207_v32 = vmul.f32 -1.442695, %v788_v57 }
 0x160   : > { %v7670_v28 = vpop.eup %6042  ;;  %6062 = vtanh.f32 %v765_v11  ;;  %v898_v39 = vcombine.high %v876_v2, %v876_v2 }
 0x161   : > { %v6045_v30 = vpop.eup %6044  ;;  %6064 = vtanh.f32 %v766_v18  ;;  %v790_v18 = vrot.slane %v7624_v38, 3  ;;  %v867_v38 = vrot.slane %v853_v46, %v7600_v29 }
 0x162   : > { %v6047_v55 = vpop.eup %6046  ;;  %v745_v58 = vadd.f32 1.0, %v6045_v30  ;;  %6066 = vtanh.f32 %v767_v24  ;;  %v890_v24 = vrot.slane %v868_v48, %v7600_v29  ;;  %v795_v48 = vrot.slane %v7634_v49, 3 }
 0x163   : > { %v6049_v41 = vpop.eup %6048  ;;  %v746_v42 = vadd.f32 1.0, %v6047_v55  ;;  %6068 = vtanh.f32 %v768_v26  ;;  %v792_v26 = vrot.slane %v7622_v36, 3  ;;  %v5209_v7 = vmul.f32 -1.442695, %v790_v18 }
 0x164   : > { %v6051_v17 = vpop.eup %6050  ;;  %v747_v11 = vadd.f32 1.0, %v6049_v41  ;;  %6070 = vrcp.f32 %v745_v58  ;;  %v793_v41 = vrot.slane %v7628_v44, 3  ;;  %v5208_v58 = vmul.f32 -1.442695, %v789_v3 }
 0x165   : > { %v6053_v30 = vpop.eup %6052  ;;  %6072 = vrcp.f32 %v746_v42  ;;  %v794_v42 = vrot.slane %v7630_v45, 3  ;;  %v900_v36 = vcombine.high %v890_v24, %v890_v24  ;;  %v883_v44 = vrot.slane %v867_v38, %v7600_v29 }
 0x166   : > { %v6055_v55 = vpop.eup %6054  ;;  %6074 = vrcp.f32 %v747_v11  ;;  %v5210_v11 = vmul.f32 -1.442695, %v791_v19  ;;  %v910_v3 = vmul.f32 %v6051_v17, %v876_v2  ;;  %v5212_v46 = vmul.f32 -1.442695, %v793_v41 }
 0x167   : > { %v6057_v16 = vpop.eup %6056  ;;  %6076 = vtanh.f32 %v769_v37  ;;  %v5211_v37 = vmul.f32 -1.442695, %v792_v26  ;;  %v911_v59 = vmul.f32 %v6053_v30, %v890_v24  ;;  %v5213_v18 = vmul.f32 -1.442695, %v794_v42 }
 0x168   : > { %v6059_v12 = vpop.eup %6058  ;;  %6078 = vtanh.f32 %v770_v13  ;;  %v869_v13 = vcombine.high %v867_v38, %v867_v38  ;;  %v912_v54 = vmul.f32 %v6055_v55, %v898_v39  ;;  %v5214_v19 = vmul.f32 -1.442695, %v795_v48 }
 0x169   : > { %v6061_v6 = vpop.eup %6060  ;;  %6080 = vtanh.f32 %v771_v31  ;;  %v913_v26 = vmul.f32 %v6057_v16, %v900_v36  ;;  %v914_v2 = vmul.f32 %v6059_v12, %v883_v44 }
 0x16a   : > { %v6063_v57 = vpop.eup %6062  ;;  %6082 = vpow2.f32 %v5207_v32  ;;  %v918_v31 = vmul.f32 %v6061_v6, %v7650_v62 }
 0x16b   : > { %v6065_v4 = vpop.eup %6064  ;;  %6084 = vpow2.f32 %v5208_v58  ;;  %v919_v32 = vmul.f32 %v6063_v57, %v7652_v0  ;;  %v897_v0 = vrot.slane %v869_v13, %v7600_v29  ;;  %v899_v58 = vcombine.high %v883_v44, %v883_v44 }
 0x16c   : > { %v6067_v45 = vpop.eup %6066  ;;  %6086 = vpow2.f32 %v5209_v7  ;;  %v920_v17 = vmul.f32 %v6065_v4, %v7654_v63  ;;  %v7690_v41 = vadd.f32 %v918_v31, %v910_v3 }
 0x16d   : > { %v6069_v49 = vpop.eup %6068  ;;  %6088 = vpow2.f32 %v5210_v11  ;;  %v921_v7 = vmul.f32 %v6067_v45, %v7657_v8  ;;  %v7693_v24 = vadd.f32 %v919_v32, %v911_v59  ;;  %v901_v38 = vcombine.high %v897_v0, %v897_v0 }
 0x16e   : > { %v6071_v53 = vpop.eup %6070  ;;  %6090 = vpow2.f32 %v5211_v37  ;;  %v922_v62 = vmul.f32 %v6069_v49, %v7660_v15  ;;  %v7696_v55 = vadd.f32 %v920_v17, %v912_v54 }
 0x16f   : > { %v6073_v30 = vpop.eup %6072  ;;  %6092 = vpow2.f32 %v5212_v46  ;;  %v7699_v4 = vadd.f32 %v921_v7, %v913_v26  ;;  %v915_v36 = vmul.f32 %v6071_v53, %v897_v0 }
 0x170   : > { %v6075_v6 = vpop.eup %6074  ;;  %6094 = vpow2.f32 %v5213_v18  ;;  %v7701_v63 = vadd.f32 %v922_v62, %v914_v2  ;;  %v916_v3 = vmul.f32 %v6073_v30, %v899_v58 }
 0x171   : > { %v6077_v16 = vpop.eup %6076  ;;  %6096 = vpow2.f32 %v5214_v19  ;;  %v917_v45 = vmul.f32 %v6075_v6, %v901_v38 }
 0x172   : > { %v6079_v12 = vpop.eup %6078  ;;  %6098 = vtanh.f32 %v7690_v41  ;;  %v923_v13 = vmul.f32 %v6077_v16, %v7664_v20 }
 0x173   : > { %v6081_v8 = vpop.eup %6080  ;;  %6100 = vtanh.f32 %v7693_v24  ;;  %v924_v49 = vmul.f32 %v6079_v12, %v7667_v25 }
 0x174   : > { %v6083_v59 = vpop.eup %6082  ;;  %6102 = vtanh.f32 %v7696_v55  ;;  %v925_v53 = vmul.f32 %v6081_v8, %v7670_v28  ;;  %v7711_v26 = vadd.f32 %v923_v13, %v915_v36 }
 0x175   : > { %v6085_v54 = vpop.eup %6084  ;;  %v828_v15 = vadd.f32 1.0, %v6083_v59  ;;  %6104 = vtanh.f32 %v7699_v4  ;;  %v7713_v30 = vadd.f32 %v924_v49, %v916_v3 }
 0x176   : > { %v6087_v42 = vpop.eup %6086  ;;  %v829_v39 = vadd.f32 1.0, %v6085_v54  ;;  %6106 = vtanh.f32 %v7701_v63  ;;  %v7715_v20 = vadd.f32 %v925_v53, %v917_v45 }
 0x177   : > { %v6089_v48 = vpop.eup %6088  ;;  %v830_v11 = vadd.f32 1.0, %v6087_v42  ;;  %6108 = vrcp.f32 %v828_v15 }
 0x178   : > { %v6091_v57 = vpop.eup %6090  ;;  %v831_v37 = vadd.f32 1.0, %v6089_v48  ;;  %6110 = vrcp.f32 %v829_v39 }
 0x179   : > { %v6093_v44 = vpop.eup %6092  ;;  %v832_v46 = vadd.f32 1.0, %v6091_v57  ;;  %6112 = vrcp.f32 %v830_v11 }
 0x17a   : > { %v6095_v18 = vpop.eup %6094  ;;  %v833_v31 = vadd.f32 1.0, %v6093_v44  ;;  %6114 = vrcp.f32 %v831_v37 }
 0x17b   : > { %v6097_v19 = vpop.eup %6096  ;;  %v834_v32 = vadd.f32 1.0, %v6095_v18  ;;  %6116 = vrcp.f32 %v832_v46 }
 0x17c   : > { %v6099_v17 = vpop.eup %6098  ;;  %v835_v2 = vadd.f32 1.0, %v6097_v19  ;;  %6118 = vrcp.f32 %v833_v31 }
 0x17d   : > { %v6101_v7 = vpop.eup %6100  ;;  %6120 = vrcp.f32 %v834_v32 }
 0x17e   : > { %v6103_v6 = vpop.eup %6102  ;;  %6122 = vrcp.f32 %v835_v2 }
 0x17f   : > { %v6105_v25 = vpop.eup %6104  ;;  %6124 = vtanh.f32 %v7711_v26 }
 0x180   : > { %v6107_v62 = vpop.eup %6106  ;;  %6126 = vtanh.f32 %v7713_v30 }
 0x181   : > { %v6109_v28 = vpop.eup %6108  ;;  %6128 = vtanh.f32 %v7715_v20 }
 0x182   : > { %v6111_v16 = vpop.eup %6110  ;;  %v942_v0 = vmul.f32 %v6109_v28, %v6099_v17  ;;  %v8983_v28 = vld [vmem:[#allocation17_spill] sm:$0xff] }
 0x183   : > { %v6113_v12 = vpop.eup %6112  ;;  %v943_v8 = vmul.f32 %v6111_v16, %v6101_v7  ;;  %v8984_v16 = vld [vmem:[#allocation18_spill] sm:$0xff] }
 0x184   : > { %v6115_v59 = vpop.eup %6114  ;;  %v944_v58 = vmul.f32 %v6113_v12, %v6103_v6  ;;  %950 = vst [vmem:[%s7265_s17] sm:$0x1] %v942_v0  ;;  %v8986_v12 = vld [vmem:[#allocation20_spill] sm:$0xff] }
 0x185   : > { %v6117_v54 = vpop.eup %6116  ;;  %v945_v15 = vmul.f32 %v6115_v59, %v6105_v25  ;;  %951 = vst [vmem:[%s7265_s17 + $0x8] sm:$0x1] %v943_v8  ;;  %v982_v38 = vcombine.low %v942_v0, %v943_v8  ;;  %v8981_v25 = vmov 0.0   ;;  %v8985_v0 = vld [vmem:[#allocation19_spill] sm:$0xff]  ;;  %v8987_v8 = vld [vmem:[#allocation21_spill] sm:$0xff]  ;;  %v8988_v59 = vld [vmem:[#allocation22_spill] sm:$0xff] }
 0x186   : > { %v6119_v42 = vpop.eup %6118  ;;  %v946_v39 = vmul.f32 %v6117_v54, %v6107_v62  ;;  %952 = vst [vmem:[%s7265_s17 + $0x10] sm:$0x1] %v944_v58  ;;  %v8982_v62 = vld [vmem:[#allocation16_spill] sm:$0xff] }
 0x187   : > { %v6121_v48 = vpop.eup %6120  ;;  %953 = vst [vmem:[%s7265_s17 + $0x18] sm:$0x1] %v945_v15  ;;  %v983_v11 = vcombine.low %v944_v58, %v945_v15  ;;  %v992_v37 = vrot.slane %v982_v38, %v7600_v29  ;;  %v8989_v58 = vld [vmem:[#allocation23_spill] sm:$0xff]  ;;  %v8990_v54 = vld [vmem:[#allocation24_spill] sm:$0xff]  ;;  %v8992_v38 = vld [vmem:[#allocation13_spill] sm:$0xff] }
 0x188   : > { %v6123_v36 = vpop.eup %6122  ;;  %954 = vst [vmem:[%s7265_s17 + $0x20] sm:$0x1] %v946_v39  ;;  %v8991_v15 = vld [vmem:[#allocation12_spill] sm:$0xff] }
 0x189   : > { %v6125_v57 = vpop.eup %6124  ;;  %v999_v3 = vrot.slane %v983_v11, %v7600_v29 }
 0x18a   : > { %v6127_v44 = vpop.eup %6126  ;;  %v947_v46 = vmul.f32 %v6125_v57, %v6119_v42 }
 0x18b   : > { %v6129_v13 = vpop.eup %6128  ;;  %v948_v45 = vmul.f32 %v6127_v44, %v6121_v48  ;;  %v1014_v18 = vcombine.low %v992_v37, %v999_v3 }
 0x18c   : > { %v949_v31 = vmul.f32 %v6129_v13, %v6123_v36  ;;  %955 = vst [vmem:[%s7265_s17 + $0x28] sm:$0x1] %v947_v46  ;;  %v984_v49 = vcombine.low %v946_v39, %v947_v46 }
 0x18d   : > { %956 = vst [vmem:[%s7265_s17 + $0x30] sm:$0x1] %v948_v45  ;;  %v1022_v2 = vrot.slane %v1014_v18, %v7600_v29 }
 0x18e   : > { %957 = vst [vmem:[%s7265_s17 + $0x38] sm:$0x1] %v949_v31  ;;  %v985_v19 = vcombine.low %v948_v45, %v949_v31  ;;  %v1006_v32 = vrot.slane %v984_v49, %v7600_v29 }
 0x190   : > { %v1013_v53 = vrot.slane %v985_v19, %v7600_v29 }
 0x192   : > { %v1015_v17 = vcombine.low %v1006_v32, %v1013_v53  ;;  %v5215_v32 = vld [vmem:[%s7263_s16 + $0x1] ss:$8 sm:$0xf] }
 0x193   : > { %v5216_v53 = vld [vmem:[%s7263_s16 + $0x21] ss:$8 sm:$0xf] }
 0x194   : > { %v1029_v7 = vrot.slane %v1015_v17, %v7600_v29  ;;  %v5217_v17 = vld [vmem:[%s7263_s16 + $0x41] ss:$8 sm:$0xf] }
 0x196   : > { %v1030_v6 = vcombine.low %v1022_v2, %v1029_v7  ;;  %v5219_v2 = vld [vmem:[%s7263_s16 + $0x81] ss:$8 sm:$0xf] }
 0x198   : > { %1097 = vmatmul.mubr.f32.vlgmr.msra.gmra.mrb[2].mxu0 %v1030_v6  ;;  %1168 = vmatmul.mubr.f32.vlgmr.msra.gmra.mrb[2].mxu1 %v1030_v6 }
 0x199   : > { %5580 = vmatpush1.bf16.msra.mxu0 %v7298_v43  ;;  %5612 = vmatpush1.bf16.msra.mxu1 %v7310_v47 }
 0x19a   : > { %5582 = vmatprep.subr.bf16.mxu0 %v7323_v51  ;;  %5614 = vmatprep.subr.bf16.mxu1 %v7325_v52 }
 0x19b   : > { %1656 = vmatprep.mubr.f32.mxu0 %v8981_v25  ;;  %1727 = vmatprep.mubr.f32.mxu1 %v8981_v25 }
 0x19d   : > { %5584 = vmatpush1.bf16.msra.mxu0 %v7337_v56  ;;  %5616 = vmatpush1.bf16.msra.mxu1 %v7350_v60 }
 0x19e   : > { %5586 = vmatprep.subr.bf16.mxu0 %v7352_v61  ;;  %5618 = vmatprep.subr.bf16.mxu1 %v7363_v1 }
 0x1a1   : > { %5588 = vmatpush1.bf16.msra.mxu0 %v7375_v5  ;;  %5620 = vmatpush1.bf16.msra.mxu1 %v7388_v9 }
 0x1a2   : > { %5590 = vmatprep.subr.bf16.mxu0 %v7390_v10  ;;  %5622 = vmatprep.subr.bf16.mxu1 %v7402_v14 }
 0x1a5   : > { %5592 = vmatpush1.bf16.msra.mxu0 %v7423_v21  ;;  %5624 = vmatpush1.bf16.msra.mxu1 %v7427_v22 }
 0x1a6   : > { %5594 = vmatprep.subr.bf16.mxu0 %v7429_v23  ;;  %5626 = vmatprep.subr.bf16.mxu1 %v7441_v27 }
 0x1a9   : > { %5596 = vmatpush1.bf16.msra.mxu0 %v7459_v33  ;;  %5628 = vmatpush1.bf16.msra.mxu1 %v7463_v34 }
 0x1aa   : > { %5598 = vmatprep.subr.bf16.mxu0 %v7465_v35  ;;  %5630 = vmatprep.subr.bf16.mxu1 %v7477_v40 }
 0x1ad   : > { %5600 = vmatpush1.bf16.msra.mxu0 %v7495_v50  ;;  %5632 = vmatpush1.bf16.msra.mxu1 %v8982_v62 }
 0x1ae   : > { %5602 = vmatprep.subr.bf16.mxu0 %v8983_v28  ;;  %5634 = vmatprep.subr.bf16.mxu1 %v8984_v16 }
 0x1b1   : > { %5604 = vmatpush1.bf16.msra.mxu0 %v8985_v0  ;;  %5636 = vmatpush1.bf16.msra.mxu1 %v8986_v12 }
 0x1b2   : > { %5606 = vmatprep.subr.bf16.mxu0 %v8987_v8  ;;  %5638 = vmatprep.subr.bf16.mxu1 %v8988_v59 }
 0x1b5   : > { %5608 = vmatpush1.bf16.msra.mxu0 %v8989_v58  ;;  %5640 = vmatpush1.bf16.msra.mxu1 %v8990_v54 }
 0x1b6   : > { %5642 = vmatprep.subr.bf16.mxu0 %v8991_v15  ;;  %5674 = vmatprep.subr.bf16.mxu1 %v8992_v38 }
 0x26b   : > { %v1098_v42 = vpop.f32.mrb[2].mxu0  ;;  %v1169_v39 = vpop.f32.mrb[2].mxu1 }
 0x26c   : > { %v1100_v48 = vpop.f32.mrb[3].mxu0  ;;  %v1171_v11 = vpop.f32.mrb[3].mxu1 }
 0x26d   : > { %v1178_v36 = vcombine.low %v1098_v42, %v1100_v48  ;;  %v1179_v57 = vcombine.high %v1098_v42, %v1100_v48  ;;  %v1180_v37 = vcombine.low %v1169_v39, %v1171_v11  ;;  %v1181_v3 = vcombine.high %v1169_v39, %v1171_v11  ;;  %v5218_v48 = vld [vmem:[%s7263_s16 + $0x61] ss:$8 sm:$0xf] }
 0x26e   : > { %v5220_v11 = vld [vmem:[%s7263_s16 + $0xa1] ss:$8 sm:$0xf] }
 0x26f   : > { %v1188_v44 = vrot.slane %v1178_v36, %v7600_v29  ;;  %v1195_v46 = vrot.slane %v1179_v57, %v7600_v29  ;;  %v1202_v13 = vrot.slane %v1180_v37, %v7600_v29  ;;  %v1209_v45 = vrot.slane %v1181_v3, %v7600_v29  ;;  %v5221_v36 = vld [vmem:[%s7263_s16 + $0xc1] ss:$8 sm:$0xf] }
 0x271   : > { %v1210_v18 = vcombine.low %v1188_v44, %v1202_v13  ;;  %v1211_v31 = vcombine.high %v1188_v44, %v1202_v13  ;;  %v1212_v49 = vcombine.low %v1195_v46, %v1209_v45  ;;  %v1213_v19 = vcombine.high %v1195_v46, %v1209_v45  ;;  %v5222_v46 = vld [vmem:[%s7263_s16 + $0xe1] ss:$8 sm:$0xf] }
 0x273   : > { %v1220_v7 = vrot.slane %v1210_v18, %v7600_v29  ;;  %v1227_v6 = vrot.slane %v1212_v49, %v7600_v29  ;;  %v1234_v42 = vrot.slane %v1211_v31, %v7600_v29  ;;  %v1241_v39 = vrot.slane %v1213_v19, %v7600_v29 }
 0x275   : > { %v1242_v57 = vcombine.high %v1220_v7, %v1220_v7  ;;  %v1243_v37 = vcombine.high %v1227_v6, %v1227_v6  ;;  %v1244_v3 = vcombine.high %v1234_v42, %v1234_v42  ;;  %v1245_v44 = vcombine.high %v1241_v39, %v1241_v39 }
 0x276   : > { %v7784_v13 = vadd.f32 %v5215_v32, %v1220_v7  ;;  %v7786_v45 = vadd.f32 %v5216_v53, %v1234_v42  ;;  %v7788_v38 = vadd.f32 %v5219_v2, %v1227_v6  ;;  %v7794_v31 = vadd.f32 %v5220_v11, %v1241_v39 }
 0x277   : > { %v7790_v18 = vadd.f32 %v5217_v17, %v1242_v57  ;;  %v7792_v49 = vadd.f32 %v5218_v48, %v1244_v3  ;;  %v7796_v19 = vadd.f32 %v5221_v36, %v1243_v37  ;;  %v7800_v58 = vadd.f32 %v5222_v46, %v1245_v44 }
 0x278   : > { %v5223_v15 = vmul.f32 -1.442695, %v7784_v13  ;;  %v5224_v54 = vmul.f32 -1.442695, %v7786_v45  ;;  %v5227_v17 = vmul.f32 -1.442695, %v7788_v38 }
 0x279   : > { %v5225_v32 = vmul.f32 -1.442695, %v7790_v18  ;;  %v5226_v53 = vmul.f32 -1.442695, %v7792_v49  ;;  %v1318_v2 = vrot.slane %v7784_v13, 1  ;;  %v1319_v6 = vrot.slane %v7786_v45, 1 }
 0x27a   : > { %6130 = vpow2.f32 %v5223_v15  ;;  %v5228_v7 = vmul.f32 -1.442695, %v7794_v31  ;;  %v5229_v42 = vmul.f32 -1.442695, %v7796_v19  ;;  %v1320_v39 = vrot.slane %v7790_v18, 1 }
 0x27b   : > { %6132 = vpow2.f32 %v5224_v54  ;;  %v5230_v48 = vmul.f32 -1.442695, %v7800_v58  ;;  %v1321_v11 = vrot.slane %v7792_v49, 1  ;;  %v1322_v15 = vrot.slane %v7788_v38, 1 }
 0x27c   : > { %6134 = vpow2.f32 %v5225_v32  ;;  %v5231_v36 = vmul.f32 -1.442695, %v1318_v2  ;;  %v5232_v54 = vmul.f32 -1.442695, %v1319_v6  ;;  %v5233_v57 = vmul.f32 -1.442695, %v1320_v39 }
 0x27d   : > { %6136 = vpow2.f32 %v5226_v53  ;;  %v5234_v37 = vmul.f32 -1.442695, %v1321_v11  ;;  %v5235_v3 = vmul.f32 -1.442695, %v1322_v15  ;;  %v1323_v2 = vrot.slane %v7794_v31, 1 }
 0x27e   : > { %6138 = vpow2.f32 %v5227_v17  ;;  %v1325_v11 = vrot.slane %v7800_v58, 1  ;;  %v1413_v50 = vrot.slane %v7800_v58, 3 }
 0x27f   : > { %6140 = vpow2.f32 %v5228_v7 }
 0x280   : > { %6142 = vpow2.f32 %v5229_v42  ;;  %v1324_v42 = vrot.slane %v7796_v19, 1 }
 0x281   : > { %6144 = vpow2.f32 %v5230_v48 }
 0x282   : > { %6146 = vpow2.f32 %v5231_v36 }
 0x283   : > { %6148 = vpow2.f32 %v5232_v54 }
 0x284   : > { %v6131_v44 = vpop.eup %6130  ;;  %6150 = vpow2.f32 %v5233_v57 }
 0x285   : > { %v6133_v46 = vpop.eup %6132  ;;  %v1286_v32 = vadd.f32 1.0, %v6131_v44  ;;  %6152 = vpow2.f32 %v5234_v37  ;;  %v5236_v37 = vmul.f32 -1.442695, %v1323_v2 }
 0x286   : > { %v6135_v53 = vpop.eup %6134  ;;  %v1287_v59 = vadd.f32 1.0, %v6133_v46  ;;  %6154 = vpow2.f32 %v5235_v3  ;;  %v5237_v46 = vmul.f32 -1.442695, %v1324_v42 }
 0x287   : > { %v6137_v17 = vpop.eup %6136  ;;  %v1288_v8 = vadd.f32 1.0, %v6135_v53  ;;  %6156 = vrcp.f32 %v1286_v32 }
 0x288   : > { %v6139_v7 = vpop.eup %6138  ;;  %v1289_v6 = vadd.f32 1.0, %v6137_v17  ;;  %6158 = vrcp.f32 %v1287_v59  ;;  %v5238_v59 = vmul.f32 -1.442695, %v1325_v11  ;;  %v1382_v11 = vrot.slane %v7784_v13, 2 }
 0x289   : > { %v6141_v39 = vpop.eup %6140  ;;  %v1290_v48 = vadd.f32 1.0, %v6139_v7  ;;  %6160 = vrcp.f32 %v1288_v8 }
 0x28a   : > { %v6143_v15 = vpop.eup %6142  ;;  %v1291_v36 = vadd.f32 1.0, %v6141_v39  ;;  %6162 = vrcp.f32 %v1289_v6 }
 0x28b   : > { %v6145_v54 = vpop.eup %6144  ;;  %v1292_v57 = vadd.f32 1.0, %v6143_v15  ;;  %6164 = vrcp.f32 %v1290_v48 }
 0x28c   : > { %v6147_v3 = vpop.eup %6146  ;;  %v1293_v44 = vadd.f32 1.0, %v6145_v54  ;;  %6166 = vrcp.f32 %v1291_v36  ;;  %v1383_v54 = vrot.slane %v7786_v45, 2 }
 0x28d   : > { %v6149_v32 = vpop.eup %6148  ;;  %6168 = vrcp.f32 %v1292_v57  ;;  %v1358_v17 = vadd.f32 1.0, %v6147_v3 }
 0x28e   : > { %v6151_v53 = vpop.eup %6150  ;;  %6170 = vrcp.f32 %v1293_v44  ;;  %v1359_v7 = vadd.f32 1.0, %v6149_v32 }
 0x28f   : > { %v6153_v8 = vpop.eup %6152  ;;  %6172 = vpow2.f32 %v5236_v37  ;;  %v1360_v6 = vadd.f32 1.0, %v6151_v53  ;;  %v1384_v37 = vrot.slane %v7790_v18, 2 }
 0x290   : > { %v6155_v12 = vpop.eup %6154  ;;  %6174 = vpow2.f32 %v5237_v46  ;;  %v1361_v2 = vadd.f32 1.0, %v6153_v8  ;;  %v1386_v46 = vrot.slane %v7788_v38, 2  ;;  %v1406_v8 = vrot.slane %v7784_v13, 3 }
 0x291   : > { %v7816_v39 = vpop.eup %6156  ;;  %6176 = vpow2.f32 %v5238_v59  ;;  %v1362_v15 = vadd.f32 1.0, %v6155_v12  ;;  %v1385_v12 = vrot.slane %v7792_v49, 2  ;;  %v1409_v13 = vrot.slane %v7792_v49, 3 }
 0x292   : > { %v7818_v48 = vpop.eup %6158  ;;  %6178 = vrcp.f32 %v1358_v17 }
 0x293   : > { %v7820_v42 = vpop.eup %6160  ;;  %6180 = vrcp.f32 %v1359_v7  ;;  %v5242_v49 = vmul.f32 -1.442695, %v1409_v13 }
 0x294   : > { %v7823_v36 = vpop.eup %6162  ;;  %6182 = vrcp.f32 %v1360_v6 }
 0x295   : > { %v7826_v57 = vpop.eup %6164  ;;  %6184 = vrcp.f32 %v1361_v2  ;;  %v1387_v2 = vrot.slane %v7794_v31, 2 }
 0x296   : > { %v7829_v3 = vpop.eup %6166  ;;  %6186 = vrcp.f32 %v1362_v15  ;;  %v1407_v15 = vrot.slane %v7786_v45, 3  ;;  %v1411_v45 = vrot.slane %v7794_v31, 3 }
 0x297   : > { %v7832_v44 = vpop.eup %6168  ;;  %6188 = vtanh.f32 %v1382_v11  ;;  %v1388_v11 = vrot.slane %v7796_v19, 2 }
 0x298   : > { %v7835_v32 = vpop.eup %6170  ;;  %6190 = vtanh.f32 %v1383_v54  ;;  %v1408_v54 = vrot.slane %v7790_v18, 3  ;;  %v1412_v18 = vrot.slane %v7796_v19, 3 }
 0x299   : > { %v6173_v59 = vpop.eup %6172  ;;  %6192 = vtanh.f32 %v1384_v37 }
 0x29a   : > { %v6175_v53 = vpop.eup %6174  ;;  %v1363_v17 = vadd.f32 1.0, %v6173_v59  ;;  %6194 = vtanh.f32 %v1385_v12  ;;  %v1389_v12 = vrot.slane %v7800_v58, 2  ;;  %v5241_v62 = vmul.f32 -1.442695, %v1408_v54 }
 0x29b   : > { %v6177_v7 = vpop.eup %6176  ;;  %v1364_v6 = vadd.f32 1.0, %v6175_v53  ;;  %6196 = vtanh.f32 %v1386_v46  ;;  %v1410_v53 = vrot.slane %v7788_v38, 3  ;;  %v5239_v46 = vmul.f32 -1.442695, %v1406_v8 }
 0x29c   : > { %v6179_v0 = vpop.eup %6178  ;;  %v1365_v16 = vadd.f32 1.0, %v6177_v7  ;;  %6198 = vrcp.f32 %v1363_v17  ;;  %v5240_v17 = vmul.f32 -1.442695, %v1407_v15  ;;  %v5246_v58 = vmul.f32 -1.442695, %v1413_v50 }
 0x29d   : > { %v6181_v37 = vpop.eup %6180  ;;  %6200 = vrcp.f32 %v1364_v6  ;;  %v1470_v38 = vmul.f32 %v6179_v0, %v7690_v41 }
 0x29e   : > { %v6183_v59 = vpop.eup %6182  ;;  %6202 = vrcp.f32 %v1365_v16  ;;  %v5243_v16 = vmul.f32 -1.442695, %v1410_v53  ;;  %v1471_v31 = vmul.f32 %v6181_v37, %v7693_v24 }
 0x29f   : > { %v6185_v28 = vpop.eup %6184  ;;  %6204 = vtanh.f32 %v1387_v2  ;;  %v5244_v2 = vmul.f32 -1.442695, %v1411_v45  ;;  %v1472_v54 = vmul.f32 %v6183_v59, %v7696_v55 }
 0x2a0   : > { %v6187_v7 = vpop.eup %6186  ;;  %6206 = vtanh.f32 %v1388_v11  ;;  %v5245_v11 = vmul.f32 -1.442695, %v1412_v18  ;;  %v1473_v53 = vmul.f32 %v6185_v28, %v7699_v4 }
 0x2a1   : > { %v6189_v6 = vpop.eup %6188  ;;  %6208 = vtanh.f32 %v1389_v12  ;;  %v1474_v24 = vmul.f32 %v6187_v7, %v7701_v63 }
 0x2a2   : > { %v6191_v40 = vpop.eup %6190  ;;  %6210 = vpow2.f32 %v5239_v46  ;;  %v1478_v19 = vmul.f32 %v6189_v6, %v7816_v39 }
 0x2a3   : > { %v6193_v8 = vpop.eup %6192  ;;  %6212 = vpow2.f32 %v5240_v17  ;;  %v1479_v13 = vmul.f32 %v6191_v40, %v7818_v48 }
 0x2a4   : > { %v6195_v15 = vpop.eup %6194  ;;  %6214 = vpow2.f32 %v5241_v62  ;;  %v1480_v0 = vmul.f32 %v6193_v8, %v7820_v42  ;;  %v7856_v37 = vadd.f32 %v1478_v19, %v1470_v38 }
 0x2a5   : > { %v6197_v12 = vpop.eup %6196  ;;  %6216 = vpow2.f32 %v5242_v49  ;;  %v1481_v39 = vmul.f32 %v6195_v15, %v7823_v36  ;;  %v7859_v55 = vadd.f32 %v1479_v13, %v1471_v31 }
 0x2a6   : > { %v6199_v41 = vpop.eup %6198  ;;  %6218 = vpow2.f32 %v5243_v16  ;;  %v1482_v40 = vmul.f32 %v6197_v12, %v7826_v57  ;;  %v7862_v50 = vadd.f32 %v1480_v0, %v1472_v54 }
 0x2a7   : > { %v6201_v62 = vpop.eup %6200  ;;  %6220 = vpow2.f32 %v5244_v2  ;;  %v7864_v28 = vadd.f32 %v1481_v39, %v1473_v53  ;;  %v1475_v6 = vmul.f32 %v6199_v41, %v7711_v26 }
 0x2a8   : > { %v6203_v59 = vpop.eup %6202  ;;  %6222 = vpow2.f32 %v5245_v11  ;;  %v7866_v63 = vadd.f32 %v1482_v40, %v1474_v24  ;;  %v1476_v38 = vmul.f32 %v6201_v62, %v7713_v30 }
 0x2a9   : > { %v6205_v4 = vpop.eup %6204  ;;  %6224 = vpow2.f32 %v5246_v58  ;;  %v1477_v15 = vmul.f32 %v6203_v59, %v7715_v20 }
 0x2aa   : > { %v6207_v48 = vpop.eup %6206  ;;  %6226 = vtanh.f32 %v7856_v37  ;;  %v1483_v31 = vmul.f32 %v6205_v4, %v7829_v3 }
 0x2ab   : > { %v6209_v42 = vpop.eup %6208  ;;  %6228 = vtanh.f32 %v7859_v55  ;;  %v1484_v54 = vmul.f32 %v6207_v48, %v7832_v44 }
 0x2ac   : > { %v6211_v36 = vpop.eup %6210  ;;  %6230 = vtanh.f32 %v7862_v50  ;;  %v1485_v26 = vmul.f32 %v6209_v42, %v7835_v32  ;;  %v7879_v13 = vadd.f32 %v1483_v31, %v1475_v6 }
 0x2ad   : > { %v6213_v46 = vpop.eup %6212  ;;  %v1446_v45 = vadd.f32 1.0, %v6211_v36  ;;  %6232 = vtanh.f32 %v7864_v28  ;;  %v7881_v41 = vadd.f32 %v1484_v54, %v1476_v38 }
 0x2ae   : > { %v6215_v57 = vpop.eup %6214  ;;  %v1447_v17 = vadd.f32 1.0, %v6213_v46  ;;  %6234 = vtanh.f32 %v7866_v63  ;;  %v7883_v20 = vadd.f32 %v1485_v26, %v1477_v15 }
 0x2af   : > { %v6217_v7 = vpop.eup %6216  ;;  %v1448_v18 = vadd.f32 1.0, %v6215_v57  ;;  %6236 = vrcp.f32 %v1446_v45 }
 0x2b0   : > { %v6219_v49 = vpop.eup %6218  ;;  %v1449_v16 = vadd.f32 1.0, %v6217_v7  ;;  %6238 = vrcp.f32 %v1447_v17 }
 0x2b1   : > { %v6221_v8 = vpop.eup %6220  ;;  %v1450_v2 = vadd.f32 1.0, %v6219_v49  ;;  %6240 = vrcp.f32 %v1448_v18 }
 0x2b2   : > { %v6223_v11 = vpop.eup %6222  ;;  %v1451_v19 = vadd.f32 1.0, %v6221_v8  ;;  %6242 = vrcp.f32 %v1449_v16 }
 0x2b3   : > { %v6225_v12 = vpop.eup %6224  ;;  %v1452_v58 = vadd.f32 1.0, %v6223_v11  ;;  %6244 = vrcp.f32 %v1450_v2 }
 0x2b4   : > { %v6227_v30 = vpop.eup %6226  ;;  %v1453_v53 = vadd.f32 1.0, %v6225_v12  ;;  %6246 = vrcp.f32 %v1451_v19 }
 0x2b5   : > { %v6229_v3 = vpop.eup %6228  ;;  %6248 = vrcp.f32 %v1452_v58 }
 0x2b6   : > { %v6231_v0 = vpop.eup %6230  ;;  %6250 = vrcp.f32 %v1453_v53 }
 0x2b7   : > { %v6233_v44 = vpop.eup %6232  ;;  %6252 = vtanh.f32 %v7879_v13 }
 0x2b8   : > { %v6235_v24 = vpop.eup %6234  ;;  %6254 = vtanh.f32 %v7881_v41 }
 0x2b9   : > { %v6237_v32 = vpop.eup %6236  ;;  %6256 = vtanh.f32 %v7883_v20 }
 0x2ba   : > { %v6239_v62 = vpop.eup %6238  ;;  %v1502_v39 = vmul.f32 %v6237_v32, %v6227_v30  ;;  %v8996_v32 = vld [vmem:[#allocation17_spill] sm:$0xff] }
 0x2bb   : > { %v6241_v59 = vpop.eup %6240  ;;  %v1503_v40 = vmul.f32 %v6239_v62, %v6229_v3  ;;  %v8997_v62 = vld [vmem:[#allocation18_spill] sm:$0xff] }
 0x2bc   : > { %v6243_v4 = vpop.eup %6242  ;;  %v1504_v48 = vmul.f32 %v6241_v59, %v6231_v0  ;;  %1510 = vst [vmem:[%s7265_s17 + $0x1] sm:$0x1] %v1502_v39  ;;  %v8993_v0 = vld [vmem:[#allocation14_spill] sm:$0xff]  ;;  %v8999_v59 = vld [vmem:[#allocation20_spill] sm:$0xff] }
 0x2bd   : > { %v6245_v42 = vpop.eup %6244  ;;  %v1505_v36 = vmul.f32 %v6243_v4, %v6233_v44  ;;  %1511 = vst [vmem:[%s7265_s17 + $0x9] sm:$0x1] %v1503_v40  ;;  %v1542_v46 = vcombine.low %v1502_v39, %v1503_v40  ;;  %v8994_v44 = vld [vmem:[#allocation15_spill] sm:$0xff]  ;;  %v9000_v40 = vld [vmem:[#allocation21_spill] sm:$0xff]  ;;  %v9001_v4 = vld [vmem:[#allocation22_spill] sm:$0xff] }
 0x2be   : > { %v6247_v45 = vpop.eup %6246  ;;  %v1506_v57 = vmul.f32 %v6245_v42, %v6235_v24  ;;  %1512 = vst [vmem:[%s7265_s17 + $0x11] sm:$0x1] %v1504_v48  ;;  %v8995_v24 = vld [vmem:[#allocation16_spill] sm:$0xff]  ;;  %v8998_v39 = vld [vmem:[#allocation19_spill] sm:$0xff] }
 0x2bf   : > { %v6249_v17 = vpop.eup %6248  ;;  %1513 = vst [vmem:[%s7265_s17 + $0x19] sm:$0x1] %v1505_v36  ;;  %v1543_v7 = vcombine.low %v1504_v48, %v1505_v36  ;;  %v1552_v49 = vrot.slane %v1542_v46, %v7600_v29  ;;  %v9002_v48 = vld [vmem:[#allocation23_spill] sm:$0xff]  ;;  %v9003_v42 = vld [vmem:[#allocation24_spill] sm:$0xff]  ;;  %v9005_v46 = vld [vmem:[#allocation13_spill] sm:$0xff] }
 0x2c0   : > { %v6251_v18 = vpop.eup %6250  ;;  %1514 = vst [vmem:[%s7265_s17 + $0x21] sm:$0x1] %v1506_v57  ;;  %v9004_v36 = vld [vmem:[#allocation12_spill] sm:$0xff] }
 0x2c1   : > { %v6253_v6 = vpop.eup %6252  ;;  %v1559_v16 = vrot.slane %v1543_v7, %v7600_v29 }
 0x2c2   : > { %v6255_v38 = vpop.eup %6254  ;;  %v1507_v8 = vmul.f32 %v6253_v6, %v6247_v45 }
 0x2c3   : > { %v6257_v2 = vpop.eup %6256  ;;  %v1508_v31 = vmul.f32 %v6255_v38, %v6249_v17  ;;  %v1574_v15 = vcombine.low %v1552_v49, %v1559_v16 }
 0x2c4   : > { %v1509_v11 = vmul.f32 %v6257_v2, %v6251_v18  ;;  %1515 = vst [vmem:[%s7265_s17 + $0x29] sm:$0x1] %v1507_v8  ;;  %v1544_v19 = vcombine.low %v1506_v57, %v1507_v8 }
 0x2c5   : > { %1516 = vst [vmem:[%s7265_s17 + $0x31] sm:$0x1] %v1508_v31  ;;  %v1582_v30 = vrot.slane %v1574_v15, %v7600_v29 }
 0x2c6   : > { %1517 = vst [vmem:[%s7265_s17 + $0x39] sm:$0x1] %v1509_v11  ;;  %v1545_v54 = vcombine.low %v1508_v31, %v1509_v11  ;;  %v1566_v12 = vrot.slane %v1544_v19, %v7600_v29 }
 0x2c8   : > { %v1573_v58 = vrot.slane %v1545_v54, %v7600_v29 }
 0x2ca   : > { %v1575_v26 = vcombine.low %v1566_v12, %v1573_v58  ;;  %v5247_v12 = vld [vmem:[%s7263_s16 + $0x2] ss:$8 sm:$0xf] }
 0x2cb   : > { %v5248_v58 = vld [vmem:[%s7263_s16 + $0x22] ss:$8 sm:$0xf] }
 0x2cc   : > { %v1589_v53 = vrot.slane %v1575_v26, %v7600_v29  ;;  %v5249_v26 = vld [vmem:[%s7263_s16 + $0x42] ss:$8 sm:$0xf] }
 0x2ce   : > { %v1590_v3 = vcombine.low %v1582_v30, %v1589_v53  ;;  %v5251_v30 = vld [vmem:[%s7263_s16 + $0x82] ss:$8 sm:$0xf] }
 0x2d0   : > { %1657 = vmatmul.mubr.f32.vlgmr.msra.gmra.mrb[4].mxu0 %v1590_v3  ;;  %1728 = vmatmul.mubr.f32.vlgmr.msra.gmra.mrb[4].mxu1 %v1590_v3 }
 0x2d1   : > { %5644 = vmatpush1.bf16.msra.mxu0 %v7298_v43  ;;  %5676 = vmatpush1.bf16.msra.mxu1 %v7310_v47 }
 0x2d2   : > { %5646 = vmatprep.subr.bf16.mxu0 %v7323_v51  ;;  %5678 = vmatprep.subr.bf16.mxu1 %v7325_v52 }
 0x2d3   : > { %2216 = vmatprep.mubr.f32.mxu0 %v8981_v25  ;;  %2287 = vmatprep.mubr.f32.mxu1 %v8981_v25 }
 0x2d5   : > { %5648 = vmatpush1.bf16.msra.mxu0 %v7337_v56  ;;  %5680 = vmatpush1.bf16.msra.mxu1 %v7350_v60 }
 0x2d6   : > { %5650 = vmatprep.subr.bf16.mxu0 %v7352_v61  ;;  %5682 = vmatprep.subr.bf16.mxu1 %v7363_v1 }
 0x2d9   : > { %5652 = vmatpush1.bf16.msra.mxu0 %v7375_v5  ;;  %5684 = vmatpush1.bf16.msra.mxu1 %v7388_v9 }
 0x2da   : > { %5654 = vmatprep.subr.bf16.mxu0 %v7390_v10  ;;  %5686 = vmatprep.subr.bf16.mxu1 %v7402_v14 }
 0x2dd   : > { %5656 = vmatpush1.bf16.msra.mxu0 %v7423_v21  ;;  %5688 = vmatpush1.bf16.msra.mxu1 %v7427_v22 }
 0x2de   : > { %5658 = vmatprep.subr.bf16.mxu0 %v7429_v23  ;;  %5690 = vmatprep.subr.bf16.mxu1 %v7441_v27 }
 0x2e1   : > { %5660 = vmatpush1.bf16.msra.mxu0 %v7459_v33  ;;  %5692 = vmatpush1.bf16.msra.mxu1 %v7463_v34 }
 0x2e2   : > { %5662 = vmatprep.subr.bf16.mxu0 %v7465_v35  ;;  %5694 = vmatprep.subr.bf16.mxu1 %v8993_v0 }
 0x2e5   : > { %5664 = vmatpush1.bf16.msra.mxu0 %v8994_v44  ;;  %5696 = vmatpush1.bf16.msra.mxu1 %v8995_v24 }
 0x2e6   : > { %5666 = vmatprep.subr.bf16.mxu0 %v8996_v32  ;;  %5698 = vmatprep.subr.bf16.mxu1 %v8997_v62 }
 0x2e9   : > { %5668 = vmatpush1.bf16.msra.mxu0 %v8998_v39  ;;  %5700 = vmatpush1.bf16.msra.mxu1 %v8999_v59 }
 0x2ea   : > { %5670 = vmatprep.subr.bf16.mxu0 %v9000_v40  ;;  %5702 = vmatprep.subr.bf16.mxu1 %v9001_v4 }
 0x2ed   : > { %5672 = vmatpush1.bf16.msra.mxu0 %v9002_v48  ;;  %5704 = vmatpush1.bf16.msra.mxu1 %v9003_v42 }
 0x2ee   : > { %5706 = vmatprep.subr.bf16.mxu0 %v9004_v36  ;;  %5738 = vmatprep.subr.bf16.mxu1 %v9005_v46 }
 0x3a3   : > { %v1658_v45 = vpop.f32.mrb[4].mxu0  ;;  %v1729_v57 = vpop.f32.mrb[4].mxu1 }
 0x3a4   : > { %v1660_v17 = vpop.f32.mrb[5].mxu0  ;;  %v1731_v7 = vpop.f32.mrb[5].mxu1 }
 0x3a5   : > { %v1738_v18 = vcombine.low %v1658_v45, %v1660_v17  ;;  %v1739_v6 = vcombine.high %v1658_v45, %v1660_v17  ;;  %v1740_v49 = vcombine.low %v1729_v57, %v1731_v7  ;;  %v1741_v16 = vcombine.high %v1729_v57, %v1731_v7  ;;  %v5250_v17 = vld [vmem:[%s7263_s16 + $0x62] ss:$8 sm:$0xf] }
 0x3a6   : > { %v5252_v7 = vld [vmem:[%s7263_s16 + $0xa2] ss:$8 sm:$0xf] }
 0x3a7   : > { %v1748_v38 = vrot.slane %v1738_v18, %v7600_v29  ;;  %v1755_v8 = vrot.slane %v1739_v6, %v7600_v29  ;;  %v1762_v2 = vrot.slane %v1740_v49, %v7600_v29  ;;  %v1769_v31 = vrot.slane %v1741_v16, %v7600_v29  ;;  %v5253_v18 = vld [vmem:[%s7263_s16 + $0xc2] ss:$8 sm:$0xf] }
 0x3a9   : > { %v1770_v15 = vcombine.low %v1748_v38, %v1762_v2  ;;  %v1771_v11 = vcombine.high %v1748_v38, %v1762_v2  ;;  %v1772_v19 = vcombine.low %v1755_v8, %v1769_v31  ;;  %v1773_v54 = vcombine.high %v1755_v8, %v1769_v31  ;;  %v5254_v8 = vld [vmem:[%s7263_s16 + $0xe2] ss:$8 sm:$0xf] }
 0x3ab   : > { %v1780_v53 = vrot.slane %v1770_v15, %v7600_v29  ;;  %v1787_v3 = vrot.slane %v1772_v19, %v7600_v29  ;;  %v1794_v45 = vrot.slane %v1771_v11, %v7600_v29  ;;  %v1801_v57 = vrot.slane %v1773_v54, %v7600_v29 }
 0x3ad   : > { %v1802_v6 = vcombine.high %v1780_v53, %v1780_v53  ;;  %v1803_v49 = vcombine.high %v1787_v3, %v1787_v3  ;;  %v1804_v16 = vcombine.high %v1794_v45, %v1794_v45  ;;  %v1805_v38 = vcombine.high %v1801_v57, %v1801_v57 }
 0x3ae   : > { %v7952_v2 = vadd.f32 %v5247_v12, %v1780_v53  ;;  %v7954_v31 = vadd.f32 %v5248_v58, %v1794_v45  ;;  %v7956_v46 = vadd.f32 %v5251_v30, %v1787_v3  ;;  %v7962_v11 = vadd.f32 %v5252_v7, %v1801_v57 }
 0x3af   : > { %v7958_v15 = vadd.f32 %v5249_v26, %v1802_v6  ;;  %v7960_v19 = vadd.f32 %v5250_v17, %v1804_v16  ;;  %v7964_v54 = vadd.f32 %v5253_v18, %v1803_v49  ;;  %v7968_v48 = vadd.f32 %v5254_v8, %v1805_v38 }
 0x3b0   : > { %v5255_v36 = vmul.f32 -1.442695, %v7952_v2  ;;  %v5256_v42 = vmul.f32 -1.442695, %v7954_v31  ;;  %v5259_v26 = vmul.f32 -1.442695, %v7956_v46 }
 0x3b1   : > { %v5257_v12 = vmul.f32 -1.442695, %v7958_v15  ;;  %v5258_v58 = vmul.f32 -1.442695, %v7960_v19  ;;  %v1878_v30 = vrot.slane %v7952_v2, 1  ;;  %v1879_v3 = vrot.slane %v7954_v31, 1 }
 0x3b2   : > { %6258 = vpow2.f32 %v5255_v36  ;;  %v5260_v53 = vmul.f32 -1.442695, %v7962_v11  ;;  %v5261_v45 = vmul.f32 -1.442695, %v7964_v54  ;;  %v1880_v57 = vrot.slane %v7958_v15, 1 }
 0x3b3   : > { %6260 = vpow2.f32 %v5256_v42  ;;  %v5262_v17 = vmul.f32 -1.442695, %v7968_v48  ;;  %v1881_v7 = vrot.slane %v7960_v19, 1  ;;  %v1882_v36 = vrot.slane %v7956_v46, 1 }
 0x3b4   : > { %6262 = vpow2.f32 %v5257_v12  ;;  %v5263_v18 = vmul.f32 -1.442695, %v1878_v30  ;;  %v5264_v42 = vmul.f32 -1.442695, %v1879_v3  ;;  %v5265_v6 = vmul.f32 -1.442695, %v1880_v57 }
 0x3b5   : > { %6264 = vpow2.f32 %v5258_v58  ;;  %v5266_v49 = vmul.f32 -1.442695, %v1881_v7  ;;  %v5267_v16 = vmul.f32 -1.442695, %v1882_v36  ;;  %v1883_v30 = vrot.slane %v7962_v11, 1 }
 0x3b6   : > { %6266 = vpow2.f32 %v5259_v26  ;;  %v1885_v7 = vrot.slane %v7968_v48, 1  ;;  %v1973_v44 = vrot.slane %v7968_v48, 3 }
 0x3b7   : > { %6268 = vpow2.f32 %v5260_v53 }
 0x3b8   : > { %6270 = vpow2.f32 %v5261_v45  ;;  %v1884_v45 = vrot.slane %v7964_v54, 1 }
 0x3b9   : > { %6272 = vpow2.f32 %v5262_v17 }
 0x3ba   : > { %6274 = vpow2.f32 %v5263_v18 }
 0x3bb   : > { %6276 = vpow2.f32 %v5264_v42 }
 0x3bc   : > { %v6259_v38 = vpop.eup %6258  ;;  %6278 = vpow2.f32 %v5265_v6 }
 0x3bd   : > { %v6261_v8 = vpop.eup %6260  ;;  %v1846_v12 = vadd.f32 1.0, %v6259_v38  ;;  %6280 = vpow2.f32 %v5266_v49  ;;  %v5268_v49 = vmul.f32 -1.442695, %v1883_v30 }
 0x3be   : > { %v6263_v58 = vpop.eup %6262  ;;  %v1847_v4 = vadd.f32 1.0, %v6261_v8  ;;  %6282 = vpow2.f32 %v5267_v16  ;;  %v5269_v8 = vmul.f32 -1.442695, %v1884_v45 }
 0x3bf   : > { %v6265_v26 = vpop.eup %6264  ;;  %v1848_v40 = vadd.f32 1.0, %v6263_v58  ;;  %6284 = vrcp.f32 %v1846_v12 }
 0x3c0   : > { %v6267_v53 = vpop.eup %6266  ;;  %v1849_v3 = vadd.f32 1.0, %v6265_v26  ;;  %6286 = vrcp.f32 %v1847_v4  ;;  %v5270_v4 = vmul.f32 -1.442695, %v1885_v7  ;;  %v1942_v7 = vrot.slane %v7952_v2, 2 }
 0x3c1   : > { %v6269_v57 = vpop.eup %6268  ;;  %v1850_v17 = vadd.f32 1.0, %v6267_v53  ;;  %6288 = vrcp.f32 %v1848_v40 }
 0x3c2   : > { %v6271_v36 = vpop.eup %6270  ;;  %v1851_v18 = vadd.f32 1.0, %v6269_v57  ;;  %6290 = vrcp.f32 %v1849_v3 }
 0x3c3   : > { %v6273_v42 = vpop.eup %6272  ;;  %v1852_v6 = vadd.f32 1.0, %v6271_v36  ;;  %6292 = vrcp.f32 %v1850_v17 }
 0x3c4   : > { %v6275_v16 = vpop.eup %6274  ;;  %v1853_v38 = vadd.f32 1.0, %v6273_v42  ;;  %6294 = vrcp.f32 %v1851_v18  ;;  %v1943_v42 = vrot.slane %v7954_v31, 2 }
 0x3c5   : > { %v6277_v12 = vpop.eup %6276  ;;  %6296 = vrcp.f32 %v1852_v6  ;;  %v1918_v26 = vadd.f32 1.0, %v6275_v16 }
 0x3c6   : > { %v6279_v58 = vpop.eup %6278  ;;  %6298 = vrcp.f32 %v1853_v38  ;;  %v1919_v53 = vadd.f32 1.0, %v6277_v12 }
 0x3c7   : > { %v6281_v40 = vpop.eup %6280  ;;  %6300 = vpow2.f32 %v5268_v49  ;;  %v1920_v3 = vadd.f32 1.0, %v6279_v58  ;;  %v1944_v49 = vrot.slane %v7958_v15, 2 }
 0x3c8   : > { %v6283_v59 = vpop.eup %6282  ;;  %6302 = vpow2.f32 %v5269_v8  ;;  %v1921_v30 = vadd.f32 1.0, %v6281_v40  ;;  %v1946_v8 = vrot.slane %v7956_v46, 2  ;;  %v1966_v40 = vrot.slane %v7952_v2, 3 }
 0x3c9   : > { %v7984_v57 = vpop.eup %6284  ;;  %6304 = vpow2.f32 %v5270_v4  ;;  %v1922_v36 = vadd.f32 1.0, %v6283_v59  ;;  %v1945_v59 = vrot.slane %v7960_v19, 2  ;;  %v1969_v2 = vrot.slane %v7960_v19, 3 }
 0x3ca   : > { %v7986_v17 = vpop.eup %6286  ;;  %6306 = vrcp.f32 %v1918_v26 }
 0x3cb   : > { %v7988_v45 = vpop.eup %6288  ;;  %6308 = vrcp.f32 %v1919_v53  ;;  %v5274_v19 = vmul.f32 -1.442695, %v1969_v2 }
 0x3cc   : > { %v7991_v18 = vpop.eup %6290  ;;  %6310 = vrcp.f32 %v1920_v3 }
 0x3cd   : > { %v7994_v6 = vpop.eup %6292  ;;  %6312 = vrcp.f32 %v1921_v30  ;;  %v1947_v30 = vrot.slane %v7962_v11, 2 }
 0x3ce   : > { %v7997_v16 = vpop.eup %6294  ;;  %6314 = vrcp.f32 %v1922_v36  ;;  %v1967_v36 = vrot.slane %v7954_v31, 3  ;;  %v1971_v31 = vrot.slane %v7962_v11, 3 }
 0x3cf   : > { %v8000_v38 = vpop.eup %6296  ;;  %6316 = vtanh.f32 %v1942_v7  ;;  %v1948_v7 = vrot.slane %v7964_v54, 2 }
 0x3d0   : > { %v8003_v12 = vpop.eup %6298  ;;  %6318 = vtanh.f32 %v1943_v42  ;;  %v1968_v42 = vrot.slane %v7958_v15, 3  ;;  %v1972_v15 = vrot.slane %v7964_v54, 3 }
 0x3d1   : > { %v6301_v4 = vpop.eup %6300  ;;  %6320 = vtanh.f32 %v1944_v49 }
 0x3d2   : > { %v6303_v58 = vpop.eup %6302  ;;  %v1923_v26 = vadd.f32 1.0, %v6301_v4  ;;  %6322 = vtanh.f32 %v1945_v59  ;;  %v1949_v59 = vrot.slane %v7968_v48, 2  ;;  %v5273_v24 = vmul.f32 -1.442695, %v1968_v42 }
 0x3d3   : > { %v6305_v53 = vpop.eup %6304  ;;  %v1924_v3 = vadd.f32 1.0, %v6303_v58  ;;  %6324 = vtanh.f32 %v1946_v8  ;;  %v1970_v58 = vrot.slane %v7956_v46, 3  ;;  %v5271_v8 = vmul.f32 -1.442695, %v1966_v40 }
 0x3d4   : > { %v6307_v39 = vpop.eup %6306  ;;  %v1925_v62 = vadd.f32 1.0, %v6305_v53  ;;  %6326 = vrcp.f32 %v1923_v26  ;;  %v5272_v26 = vmul.f32 -1.442695, %v1967_v36  ;;  %v5278_v48 = vmul.f32 -1.442695, %v1973_v44 }
 0x3d5   : > { %v6309_v49 = vpop.eup %6308  ;;  %6328 = vrcp.f32 %v1924_v3  ;;  %v2030_v46 = vmul.f32 %v6307_v39, %v7856_v37 }
 0x3d6   : > { %v6311_v4 = vpop.eup %6310  ;;  %6330 = vrcp.f32 %v1925_v62  ;;  %v5275_v62 = vmul.f32 -1.442695, %v1970_v58  ;;  %v2031_v11 = vmul.f32 %v6309_v49, %v7859_v55 }
 0x3d7   : > { %v6313_v32 = vpop.eup %6312  ;;  %6332 = vtanh.f32 %v1947_v30  ;;  %v5276_v30 = vmul.f32 -1.442695, %v1971_v31  ;;  %v2032_v42 = vmul.f32 %v6311_v4, %v7862_v50 }
 0x3d8   : > { %v6315_v53 = vpop.eup %6314  ;;  %6334 = vtanh.f32 %v1948_v7  ;;  %v5277_v7 = vmul.f32 -1.442695, %v1972_v15  ;;  %v2033_v58 = vmul.f32 %v6313_v32, %v7864_v28 }
 0x3d9   : > { %v6317_v3 = vpop.eup %6316  ;;  %6336 = vtanh.f32 %v1949_v59  ;;  %v2034_v55 = vmul.f32 %v6315_v53, %v7866_v63 }
 0x3da   : > { %v6319_v0 = vpop.eup %6318  ;;  %6338 = vpow2.f32 %v5271_v8  ;;  %v2038_v54 = vmul.f32 %v6317_v3, %v7984_v57 }
 0x3db   : > { %v6321_v40 = vpop.eup %6320  ;;  %6340 = vpow2.f32 %v5272_v26  ;;  %v2039_v2 = vmul.f32 %v6319_v0, %v7986_v17 }
 0x3dc   : > { %v6323_v36 = vpop.eup %6322  ;;  %6342 = vpow2.f32 %v5273_v24  ;;  %v2040_v39 = vmul.f32 %v6321_v40, %v7988_v45  ;;  %v8024_v49 = vadd.f32 %v2038_v54, %v2030_v46 }
 0x3dd   : > { %v6325_v59 = vpop.eup %6324  ;;  %6344 = vpow2.f32 %v5274_v19  ;;  %v2041_v57 = vmul.f32 %v6323_v36, %v7991_v18  ;;  %v8027_v50 = vadd.f32 %v2039_v2, %v2031_v11 }
 0x3de   : > { %v6327_v37 = vpop.eup %6326  ;;  %6346 = vpow2.f32 %v5275_v62  ;;  %v2042_v0 = vmul.f32 %v6325_v59, %v7994_v6  ;;  %v8030_v44 = vadd.f32 %v2040_v39, %v2032_v42 }
 0x3df   : > { %v6329_v24 = vpop.eup %6328  ;;  %6348 = vpow2.f32 %v5276_v30  ;;  %v8032_v32 = vadd.f32 %v2041_v57, %v2033_v58  ;;  %v2035_v3 = vmul.f32 %v6327_v37, %v7879_v13 }
 0x3e0   : > { %v6331_v4 = vpop.eup %6330  ;;  %6350 = vpow2.f32 %v5277_v7  ;;  %v8034_v63 = vadd.f32 %v2042_v0, %v2034_v55  ;;  %v2036_v46 = vmul.f32 %v6329_v24, %v7881_v41 }
 0x3e1   : > { %v6333_v28 = vpop.eup %6332  ;;  %6352 = vpow2.f32 %v5278_v48  ;;  %v2037_v36 = vmul.f32 %v6331_v4, %v7883_v20 }
 0x3e2   : > { %v6335_v17 = vpop.eup %6334  ;;  %6354 = vtanh.f32 %v8024_v49  ;;  %v2043_v11 = vmul.f32 %v6333_v28, %v7997_v16 }
 0x3e3   : > { %v6337_v45 = vpop.eup %6336  ;;  %6356 = vtanh.f32 %v8027_v50  ;;  %v2044_v42 = vmul.f32 %v6335_v17, %v8000_v38 }
 0x3e4   : > { %v6339_v18 = vpop.eup %6338  ;;  %6358 = vtanh.f32 %v8030_v44  ;;  %v2045_v13 = vmul.f32 %v6337_v45, %v8003_v12  ;;  %v8047_v2 = vadd.f32 %v2043_v11, %v2035_v3 }
 0x3e5   : > { %v6341_v8 = vpop.eup %6340  ;;  %v2006_v31 = vadd.f32 1.0, %v6339_v18  ;;  %6360 = vtanh.f32 %v8032_v32  ;;  %v8049_v37 = vadd.f32 %v2044_v42, %v2036_v46 }
 0x3e6   : > { %v6343_v6 = vpop.eup %6342  ;;  %v2007_v26 = vadd.f32 1.0, %v6341_v8  ;;  %6362 = vtanh.f32 %v8034_v63  ;;  %v8051_v20 = vadd.f32 %v2045_v13, %v2037_v36 }
 0x3e7   : > { %v6345_v53 = vpop.eup %6344  ;;  %v2008_v15 = vadd.f32 1.0, %v6343_v6  ;;  %6364 = vrcp.f32 %v2006_v31 }
 0x3e8   : > { %v6347_v19 = vpop.eup %6346  ;;  %v2009_v62 = vadd.f32 1.0, %v6345_v53  ;;  %6366 = vrcp.f32 %v2007_v26 }
 0x3e9   : > { %v6349_v40 = vpop.eup %6348  ;;  %v2010_v30 = vadd.f32 1.0, %v6347_v19  ;;  %6368 = vrcp.f32 %v2008_v15 }
 0x3ea   : > { %v6351_v7 = vpop.eup %6350  ;;  %v2011_v54 = vadd.f32 1.0, %v6349_v40  ;;  %6370 = vrcp.f32 %v2009_v62 }
 0x3eb   : > { %v6353_v59 = vpop.eup %6352  ;;  %v2012_v48 = vadd.f32 1.0, %v6351_v7  ;;  %6372 = vrcp.f32 %v2010_v30 }
 0x3ec   : > { %v6355_v41 = vpop.eup %6354  ;;  %v2013_v58 = vadd.f32 1.0, %v6353_v59  ;;  %6374 = vrcp.f32 %v2011_v54 }
 0x3ed   : > { %v6357_v16 = vpop.eup %6356  ;;  %6376 = vrcp.f32 %v2012_v48 }
 0x3ee   : > { %v6359_v39 = vpop.eup %6358  ;;  %6378 = vrcp.f32 %v2013_v58 }
 0x3ef   : > { %v6361_v38 = vpop.eup %6360  ;;  %6380 = vtanh.f32 %v8047_v2 }
 0x3f0   : > { %v6363_v55 = vpop.eup %6362  ;;  %6382 = vtanh.f32 %v8049_v37 }
 0x3f1   : > { %v6365_v12 = vpop.eup %6364  ;;  %6384 = vtanh.f32 %v8051_v20 }
 0x3f2   : > { %v6367_v24 = vpop.eup %6366  ;;  %v2062_v57 = vmul.f32 %v6365_v12, %v6355_v41  ;;  %v9009_v12 = vld [vmem:[#allocation17_spill] sm:$0xff] }
 0x3f3   : > { %v6369_v4 = vpop.eup %6368  ;;  %v2063_v0 = vmul.f32 %v6367_v24, %v6357_v16  ;;  %v9010_v24 = vld [vmem:[#allocation18_spill] sm:$0xff] }
 0x3f4   : > { %v6371_v28 = vpop.eup %6370  ;;  %v2064_v17 = vmul.f32 %v6369_v4, %v6359_v39  ;;  %2070 = vst [vmem:[%s7265_s17 + $0x2] sm:$0x1] %v2062_v57  ;;  %v9006_v39 = vld [vmem:[#allocation14_spill] sm:$0xff]  ;;  %v9012_v4 = vld [vmem:[#allocation20_spill] sm:$0xff] }
 0x3f5   : > { %v6373_v45 = vpop.eup %6372  ;;  %v2065_v18 = vmul.f32 %v6371_v28, %v6361_v38  ;;  %2071 = vst [vmem:[%s7265_s17 + $0xa] sm:$0x1] %v2063_v0  ;;  %v2102_v8 = vcombine.low %v2062_v57, %v2063_v0  ;;  %v9007_v38 = vld [vmem:[#allocation15_spill] sm:$0xff]  ;;  %v9013_v0 = vld [vmem:[#allocation21_spill] sm:$0xff]  ;;  %v9014_v28 = vld [vmem:[#allocation22_spill] sm:$0xff] }
 0x3f6   : > { %v6375_v31 = vpop.eup %6374  ;;  %v2066_v6 = vmul.f32 %v6373_v45, %v6363_v55  ;;  %2072 = vst [vmem:[%s7265_s17 + $0x12] sm:$0x1] %v2064_v17  ;;  %v9008_v55 = vld [vmem:[#allocation16_spill] sm:$0xff]  ;;  %v9011_v57 = vld [vmem:[#allocation19_spill] sm:$0xff] }
 0x3f7   : > { %v6377_v26 = vpop.eup %6376  ;;  %2073 = vst [vmem:[%s7265_s17 + $0x1a] sm:$0x1] %v2065_v18  ;;  %v2103_v53 = vcombine.low %v2064_v17, %v2065_v18  ;;  %v2112_v19 = vrot.slane %v2102_v8, %v7600_v29  ;;  %v9015_v17 = vld [vmem:[#allocation23_spill] sm:$0xff]  ;;  %v9016_v45 = vld [vmem:[#allocation24_spill] sm:$0xff]  ;;  %v9018_v8 = vld [vmem:[#allocation13_spill] sm:$0xff] }
 0x3f8   : > { %v6379_v15 = vpop.eup %6378  ;;  %2074 = vst [vmem:[%s7265_s17 + $0x22] sm:$0x1] %v2066_v6  ;;  %v9017_v18 = vld [vmem:[#allocation12_spill] sm:$0xff] }
 0x3f9   : > { %v6381_v3 = vpop.eup %6380  ;;  %v2119_v62 = vrot.slane %v2103_v53, %v7600_v29 }
 0x3fa   : > { %v6383_v46 = vpop.eup %6382  ;;  %v2067_v40 = vmul.f32 %v6381_v3, %v6375_v31 }
 0x3fb   : > { %v6385_v30 = vpop.eup %6384  ;;  %v2068_v11 = vmul.f32 %v6383_v46, %v6377_v26  ;;  %v2134_v36 = vcombine.low %v2112_v19, %v2119_v62 }
 0x3fc   : > { %v2069_v7 = vmul.f32 %v6385_v30, %v6379_v15  ;;  %2075 = vst [vmem:[%s7265_s17 + $0x2a] sm:$0x1] %v2067_v40  ;;  %v2104_v54 = vcombine.low %v2066_v6, %v2067_v40 }
 0x3fd   : > { %2076 = vst [vmem:[%s7265_s17 + $0x32] sm:$0x1] %v2068_v11  ;;  %v2142_v41 = vrot.slane %v2134_v36, %v7600_v29 }
 0x3fe   : > { %2077 = vst [vmem:[%s7265_s17 + $0x3a] sm:$0x1] %v2069_v7  ;;  %v2105_v42 = vcombine.low %v2068_v11, %v2069_v7  ;;  %v2126_v59 = vrot.slane %v2104_v54, %v7600_v29 }
 0x400   : > { %v2133_v48 = vrot.slane %v2105_v42, %v7600_v29 }
 0x402   : > { %v2135_v13 = vcombine.low %v2126_v59, %v2133_v48  ;;  %v5279_v59 = vld [vmem:[%s7263_s16 + $0x3] ss:$8 sm:$0xf] }
 0x403   : > { %v5280_v48 = vld [vmem:[%s7263_s16 + $0x23] ss:$8 sm:$0xf] }
 0x404   : > { %v2149_v58 = vrot.slane %v2135_v13, %v7600_v29  ;;  %v5281_v13 = vld [vmem:[%s7263_s16 + $0x43] ss:$8 sm:$0xf] }
 0x406   : > { %v2150_v16 = vcombine.low %v2142_v41, %v2149_v58  ;;  %v5283_v41 = vld [vmem:[%s7263_s16 + $0x83] ss:$8 sm:$0xf] }
 0x408   : > { %2217 = vmatmul.mubr.f32.vlgmr.msra.gmra.mrb[6].mxu0 %v2150_v16  ;;  %2288 = vmatmul.mubr.f32.vlgmr.msra.gmra.mrb[6].mxu1 %v2150_v16 }
 0x409   : > { %5708 = vmatpush1.bf16.msra.mxu0 %v7298_v43  ;;  %5740 = vmatpush1.bf16.msra.mxu1 %v7310_v47 }
 0x40a   : > { %5710 = vmatprep.subr.bf16.mxu0 %v7323_v51  ;;  %5742 = vmatprep.subr.bf16.mxu1 %v7325_v52 }
 0x40b   : > { %2776 = vmatprep.mubr.f32.mxu0 %v8981_v25  ;;  %2847 = vmatprep.mubr.f32.mxu1 %v8981_v25 }
 0x40d   : > { %5712 = vmatpush1.bf16.msra.mxu0 %v7337_v56  ;;  %5744 = vmatpush1.bf16.msra.mxu1 %v7350_v60 }
 0x40e   : > { %5714 = vmatprep.subr.bf16.mxu0 %v7352_v61  ;;  %5746 = vmatprep.subr.bf16.mxu1 %v7363_v1 }
 0x411   : > { %5716 = vmatpush1.bf16.msra.mxu0 %v7375_v5  ;;  %5748 = vmatpush1.bf16.msra.mxu1 %v7388_v9 }
 0x412   : > { %5718 = vmatprep.subr.bf16.mxu0 %v7390_v10  ;;  %5750 = vmatprep.subr.bf16.mxu1 %v7402_v14 }
 0x415   : > { %5720 = vmatpush1.bf16.msra.mxu0 %v7423_v21  ;;  %5752 = vmatpush1.bf16.msra.mxu1 %v7427_v22 }
 0x416   : > { %5722 = vmatprep.subr.bf16.mxu0 %v7429_v23  ;;  %5754 = vmatprep.subr.bf16.mxu1 %v7441_v27 }
 0x419   : > { %5724 = vmatpush1.bf16.msra.mxu0 %v7459_v33  ;;  %5756 = vmatpush1.bf16.msra.mxu1 %v7463_v34 }
 0x41a   : > { %5726 = vmatprep.subr.bf16.mxu0 %v7465_v35  ;;  %5758 = vmatprep.subr.bf16.mxu1 %v9006_v39 }
 0x41d   : > { %5728 = vmatpush1.bf16.msra.mxu0 %v9007_v38  ;;  %5760 = vmatpush1.bf16.msra.mxu1 %v9008_v55 }
 0x41e   : > { %5730 = vmatprep.subr.bf16.mxu0 %v9009_v12  ;;  %5762 = vmatprep.subr.bf16.mxu1 %v9010_v24 }
 0x421   : > { %5732 = vmatpush1.bf16.msra.mxu0 %v9011_v57  ;;  %5764 = vmatpush1.bf16.msra.mxu1 %v9012_v4 }
 0x422   : > { %5734 = vmatprep.subr.bf16.mxu0 %v9013_v0  ;;  %5766 = vmatprep.subr.bf16.mxu1 %v9014_v28 }
 0x425   : > { %5736 = vmatpush1.bf16.msra.mxu0 %v9015_v17  ;;  %5768 = vmatpush1.bf16.msra.mxu1 %v9016_v45 }
 0x426   : > { %5770 = vmatprep.subr.bf16.mxu0 %v9017_v18  ;;  %5802 = vmatprep.subr.bf16.mxu1 %v9018_v8 }
 0x4db   : > { %v2218_v31 = vpop.f32.mrb[6].mxu0  ;;  %v2289_v6 = vpop.f32.mrb[6].mxu1 }
 0x4dc   : > { %v2220_v26 = vpop.f32.mrb[7].mxu0  ;;  %v2291_v53 = vpop.f32.mrb[7].mxu1 }
 0x4dd   : > { %v2298_v15 = vcombine.low %v2218_v31, %v2220_v26  ;;  %v2299_v3 = vcombine.high %v2218_v31, %v2220_v26  ;;  %v2300_v19 = vcombine.low %v2289_v6, %v2291_v53  ;;  %v2301_v62 = vcombine.high %v2289_v6, %v2291_v53  ;;  %v5282_v26 = vld [vmem:[%s7263_s16 + $0x63] ss:$8 sm:$0xf] }
 0x4de   : > { %v5284_v53 = vld [vmem:[%s7263_s16 + $0xa3] ss:$8 sm:$0xf] }
 0x4df   : > { %v2308_v46 = vrot.slane %v2298_v15, %v7600_v29  ;;  %v2315_v40 = vrot.slane %v2299_v3, %v7600_v29  ;;  %v2322_v30 = vrot.slane %v2300_v19, %v7600_v29  ;;  %v2329_v11 = vrot.slane %v2301_v62, %v7600_v29  ;;  %v5285_v15 = vld [vmem:[%s7263_s16 + $0xc3] ss:$8 sm:$0xf] }
 0x4e1   : > { %v2330_v36 = vcombine.low %v2308_v46, %v2322_v30  ;;  %v2331_v7 = vcombine.high %v2308_v46, %v2322_v30  ;;  %v2332_v54 = vcombine.low %v2315_v40, %v2329_v11  ;;  %v2333_v42 = vcombine.high %v2315_v40, %v2329_v11  ;;  %v5286_v40 = vld [vmem:[%s7263_s16 + $0xe3] ss:$8 sm:$0xf] }
 0x4e3   : > { %v2340_v58 = vrot.slane %v2330_v36, %v7600_v29  ;;  %v2347_v16 = vrot.slane %v2332_v54, %v7600_v29  ;;  %v2354_v31 = vrot.slane %v2331_v7, %v7600_v29  ;;  %v2361_v6 = vrot.slane %v2333_v42, %v7600_v29 }
 0x4e5   : > { %v2362_v3 = vcombine.high %v2340_v58, %v2340_v58  ;;  %v2363_v19 = vcombine.high %v2347_v16, %v2347_v16  ;;  %v2364_v62 = vcombine.high %v2354_v31, %v2354_v31  ;;  %v2365_v46 = vcombine.high %v2361_v6, %v2361_v6 }
 0x4e6   : > { %v8120_v30 = vadd.f32 %v5279_v59, %v2340_v58  ;;  %v8122_v11 = vadd.f32 %v5280_v48, %v2354_v31  ;;  %v8124_v8 = vadd.f32 %v5283_v41, %v2347_v16  ;;  %v8130_v7 = vadd.f32 %v5284_v53, %v2361_v6 }
 0x4e7   : > { %v8126_v36 = vadd.f32 %v5281_v13, %v2362_v3  ;;  %v8128_v54 = vadd.f32 %v5282_v26, %v2364_v62  ;;  %v8132_v42 = vadd.f32 %v5285_v15, %v2363_v19  ;;  %v8136_v17 = vadd.f32 %v5286_v40, %v2365_v46 }
 0x4e8   : > { %v5287_v18 = vmul.f32 -1.442695, %v8120_v30  ;;  %v5288_v45 = vmul.f32 -1.442695, %v8122_v11  ;;  %v5291_v13 = vmul.f32 -1.442695, %v8124_v8 }
 0x4e9   : > { %v5289_v59 = vmul.f32 -1.442695, %v8126_v36  ;;  %v5290_v48 = vmul.f32 -1.442695, %v8128_v54  ;;  %v2438_v41 = vrot.slane %v8120_v30, 1  ;;  %v2439_v16 = vrot.slane %v8122_v11, 1 }
 0x4ea   : > { %6386 = vpow2.f32 %v5287_v18  ;;  %v5292_v58 = vmul.f32 -1.442695, %v8130_v7  ;;  %v5293_v31 = vmul.f32 -1.442695, %v8132_v42  ;;  %v2440_v6 = vrot.slane %v8126_v36, 1 }
 0x4eb   : > { %6388 = vpow2.f32 %v5288_v45  ;;  %v5294_v26 = vmul.f32 -1.442695, %v8136_v17  ;;  %v2441_v53 = vrot.slane %v8128_v54, 1  ;;  %v2442_v18 = vrot.slane %v8124_v8, 1 }
 0x4ec   : > { %6390 = vpow2.f32 %v5289_v59  ;;  %v5295_v15 = vmul.f32 -1.442695, %v2438_v41  ;;  %v5296_v45 = vmul.f32 -1.442695, %v2439_v16  ;;  %v5297_v3 = vmul.f32 -1.442695, %v2440_v6 }
 0x4ed   : > { %6392 = vpow2.f32 %v5290_v48  ;;  %v5298_v19 = vmul.f32 -1.442695, %v2441_v53  ;;  %v5299_v62 = vmul.f32 -1.442695, %v2442_v18  ;;  %v2443_v41 = vrot.slane %v8130_v7, 1 }
 0x4ee   : > { %6394 = vpow2.f32 %v5291_v13  ;;  %v2445_v53 = vrot.slane %v8136_v17, 1  ;;  %v2533_v38 = vrot.slane %v8136_v17, 3 }
 0x4ef   : > { %6396 = vpow2.f32 %v5292_v58 }
 0x4f0   : > { %6398 = vpow2.f32 %v5293_v31  ;;  %v2444_v31 = vrot.slane %v8132_v42, 1 }
 0x4f1   : > { %6400 = vpow2.f32 %v5294_v26 }
 0x4f2   : > { %6402 = vpow2.f32 %v5295_v15 }
 0x4f3   : > { %6404 = vpow2.f32 %v5296_v45 }
 0x4f4   : > { %v6387_v46 = vpop.eup %6386  ;;  %6406 = vpow2.f32 %v5297_v3 }
 0x4f5   : > { %v6389_v40 = vpop.eup %6388  ;;  %v2406_v59 = vadd.f32 1.0, %v6387_v46  ;;  %6408 = vpow2.f32 %v5298_v19  ;;  %v5300_v19 = vmul.f32 -1.442695, %v2443_v41 }
 0x4f6   : > { %v6391_v48 = vpop.eup %6390  ;;  %v2407_v28 = vadd.f32 1.0, %v6389_v40  ;;  %6410 = vpow2.f32 %v5299_v62  ;;  %v5301_v40 = vmul.f32 -1.442695, %v2444_v31 }
 0x4f7   : > { %v6393_v13 = vpop.eup %6392  ;;  %v2408_v0 = vadd.f32 1.0, %v6391_v48  ;;  %6412 = vrcp.f32 %v2406_v59 }
 0x4f8   : > { %v6395_v58 = vpop.eup %6394  ;;  %v2409_v16 = vadd.f32 1.0, %v6393_v13  ;;  %6414 = vrcp.f32 %v2407_v28  ;;  %v5302_v28 = vmul.f32 -1.442695, %v2445_v53  ;;  %v2502_v53 = vrot.slane %v8120_v30, 2 }
 0x4f9   : > { %v6397_v6 = vpop.eup %6396  ;;  %v2410_v26 = vadd.f32 1.0, %v6395_v58  ;;  %6416 = vrcp.f32 %v2408_v0 }
 0x4fa   : > { %v6399_v18 = vpop.eup %6398  ;;  %v2411_v15 = vadd.f32 1.0, %v6397_v6  ;;  %6418 = vrcp.f32 %v2409_v16 }
 0x4fb   : > { %v6401_v45 = vpop.eup %6400  ;;  %v2412_v3 = vadd.f32 1.0, %v6399_v18  ;;  %6420 = vrcp.f32 %v2410_v26 }
 0x4fc   : > { %v6403_v62 = vpop.eup %6402  ;;  %v2413_v46 = vadd.f32 1.0, %v6401_v45  ;;  %6422 = vrcp.f32 %v2411_v15  ;;  %v2503_v45 = vrot.slane %v8122_v11, 2 }
 0x4fd   : > { %v6405_v59 = vpop.eup %6404  ;;  %6424 = vrcp.f32 %v2412_v3  ;;  %v2478_v13 = vadd.f32 1.0, %v6403_v62 }
 0x4fe   : > { %v6407_v48 = vpop.eup %6406  ;;  %6426 = vrcp.f32 %v2413_v46  ;;  %v2479_v58 = vadd.f32 1.0, %v6405_v59 }
 0x4ff   : > { %v6409_v0 = vpop.eup %6408  ;;  %6428 = vpow2.f32 %v5300_v19  ;;  %v2480_v16 = vadd.f32 1.0, %v6407_v48  ;;  %v2504_v19 = vrot.slane %v8126_v36, 2 }
 0x500   : > { %v6411_v4 = vpop.eup %6410  ;;  %6430 = vpow2.f32 %v5301_v40  ;;  %v2481_v41 = vadd.f32 1.0, %v6409_v0  ;;  %v2506_v40 = vrot.slane %v8124_v8, 2  ;;  %v2526_v0 = vrot.slane %v8120_v30, 3 }
 0x501   : > { %v8152_v6 = vpop.eup %6412  ;;  %6432 = vpow2.f32 %v5302_v28  ;;  %v2482_v18 = vadd.f32 1.0, %v6411_v4  ;;  %v2505_v4 = vrot.slane %v8128_v54, 2  ;;  %v2529_v30 = vrot.slane %v8128_v54, 3 }
 0x502   : > { %v8154_v26 = vpop.eup %6414  ;;  %6434 = vrcp.f32 %v2478_v13 }
 0x503   : > { %v8156_v31 = vpop.eup %6416  ;;  %6436 = vrcp.f32 %v2479_v58  ;;  %v5306_v54 = vmul.f32 -1.442695, %v2529_v30 }
 0x504   : > { %v8159_v15 = vpop.eup %6418  ;;  %6438 = vrcp.f32 %v2480_v16 }
 0x505   : > { %v8162_v3 = vpop.eup %6420  ;;  %6440 = vrcp.f32 %v2481_v41  ;;  %v2507_v41 = vrot.slane %v8130_v7, 2 }
 0x506   : > { %v8165_v62 = vpop.eup %6422  ;;  %6442 = vrcp.f32 %v2482_v18  ;;  %v2527_v18 = vrot.slane %v8122_v11, 3  ;;  %v2531_v11 = vrot.slane %v8130_v7, 3 }
 0x507   : > { %v8168_v46 = vpop.eup %6424  ;;  %6444 = vtanh.f32 %v2502_v53  ;;  %v2508_v53 = vrot.slane %v8132_v42, 2 }
 0x508   : > { %v8171_v59 = vpop.eup %6426  ;;  %6446 = vtanh.f32 %v2503_v45  ;;  %v2528_v45 = vrot.slane %v8126_v36, 3  ;;  %v2532_v36 = vrot.slane %v8132_v42, 3 }
 0x509   : > { %v6429_v28 = vpop.eup %6428  ;;  %6448 = vtanh.f32 %v2504_v19 }
 0x50a   : > { %v6431_v48 = vpop.eup %6430  ;;  %v2483_v13 = vadd.f32 1.0, %v6429_v28  ;;  %6450 = vtanh.f32 %v2505_v4  ;;  %v2509_v4 = vrot.slane %v8136_v17, 2  ;;  %v5305_v55 = vmul.f32 -1.442695, %v2528_v45 }
 0x50b   : > { %v6433_v58 = vpop.eup %6432  ;;  %v2484_v16 = vadd.f32 1.0, %v6431_v48  ;;  %6452 = vtanh.f32 %v2506_v40  ;;  %v2530_v48 = vrot.slane %v8124_v8, 3  ;;  %v5303_v40 = vmul.f32 -1.442695, %v2526_v0 }
 0x50c   : > { %v6435_v57 = vpop.eup %6434  ;;  %v2485_v24 = vadd.f32 1.0, %v6433_v58  ;;  %6454 = vrcp.f32 %v2483_v13  ;;  %v5304_v13 = vmul.f32 -1.442695, %v2527_v18  ;;  %v5310_v17 = vmul.f32 -1.442695, %v2533_v38 }
 0x50d   : > { %v6437_v19 = vpop.eup %6436  ;;  %6456 = vrcp.f32 %v2484_v16  ;;  %v2590_v8 = vmul.f32 %v6435_v57, %v8024_v49 }
 0x50e   : > { %v6439_v28 = vpop.eup %6438  ;;  %6458 = vrcp.f32 %v2485_v24  ;;  %v5307_v24 = vmul.f32 -1.442695, %v2530_v48  ;;  %v2591_v7 = vmul.f32 %v6437_v19, %v8027_v50 }
 0x50f   : > { %v6441_v12 = vpop.eup %6440  ;;  %6460 = vtanh.f32 %v2507_v41  ;;  %v5308_v41 = vmul.f32 -1.442695, %v2531_v11  ;;  %v2592_v45 = vmul.f32 %v6439_v28, %v8030_v44 }
 0x510   : > { %v6443_v58 = vpop.eup %6442  ;;  %6462 = vtanh.f32 %v2508_v53  ;;  %v5309_v53 = vmul.f32 -1.442695, %v2532_v36  ;;  %v2593_v48 = vmul.f32 %v6441_v12, %v8032_v32 }
 0x511   : > { %v6445_v16 = vpop.eup %6444  ;;  %6464 = vtanh.f32 %v2509_v4  ;;  %v2594_v50 = vmul.f32 %v6443_v58, %v8034_v63 }
 0x512   : > { %v6447_v39 = vpop.eup %6446  ;;  %6466 = vpow2.f32 %v5303_v40  ;;  %v2598_v42 = vmul.f32 %v6445_v16, %v8152_v6 }
 0x513   : > { %v6449_v0 = vpop.eup %6448  ;;  %6468 = vpow2.f32 %v5304_v13  ;;  %v2599_v30 = vmul.f32 %v6447_v39, %v8154_v26 }
 0x514   : > { %v6451_v18 = vpop.eup %6450  ;;  %6470 = vpow2.f32 %v5305_v55  ;;  %v2600_v57 = vmul.f32 %v6449_v0, %v8156_v31  ;;  %v8192_v19 = vadd.f32 %v2598_v42, %v2590_v8 }
 0x515   : > { %v6453_v4 = vpop.eup %6452  ;;  %6472 = vpow2.f32 %v5306_v54  ;;  %v2601_v6 = vmul.f32 %v6451_v18, %v8159_v15  ;;  %v8195_v44 = vadd.f32 %v2599_v30, %v2591_v7 }
 0x516   : > { %v6455_v49 = vpop.eup %6454  ;;  %6474 = vpow2.f32 %v5307_v24  ;;  %v2602_v39 = vmul.f32 %v6453_v4, %v8162_v3  ;;  %v8198_v38 = vadd.f32 %v2600_v57, %v2592_v45 }
 0x517   : > { %v6457_v55 = vpop.eup %6456  ;;  %6476 = vpow2.f32 %v5308_v41  ;;  %v8200_v12 = vadd.f32 %v2601_v6, %v2593_v48  ;;  %v2595_v16 = vmul.f32 %v6455_v49, %v8047_v2 }
 0x518   : > { %v6459_v28 = vpop.eup %6458  ;;  %6478 = vpow2.f32 %v5309_v53  ;;  %v8202_v63 = vadd.f32 %v2602_v39, %v2594_v50  ;;  %v2596_v8 = vmul.f32 %v6457_v55, %v8049_v37 }
 0x519   : > { %v6461_v32 = vpop.eup %6460  ;;  %6480 = vpow2.f32 %v5310_v17  ;;  %v2597_v18 = vmul.f32 %v6459_v28, %v8051_v20 }
 0x51a   : > { %v6463_v26 = vpop.eup %6462  ;;  %6482 = vtanh.f32 %v8192_v19  ;;  %v2603_v7 = vmul.f32 %v6461_v32, %v8165_v62 }
 0x51b   : > { %v6465_v31 = vpop.eup %6464  ;;  %6484 = vtanh.f32 %v8195_v44  ;;  %v2604_v45 = vmul.f32 %v6463_v26, %v8168_v46 }
 0x51c   : > { %v6467_v15 = vpop.eup %6466  ;;  %6486 = vtanh.f32 %v8198_v38  ;;  %v2605_v2 = vmul.f32 %v6465_v31, %v8171_v59  ;;  %v8215_v30 = vadd.f32 %v2603_v7, %v2595_v16 }
 0x51d   : > { %v6469_v40 = vpop.eup %6468  ;;  %v2566_v11 = vadd.f32 1.0, %v6467_v15  ;;  %6488 = vtanh.f32 %v8200_v12  ;;  %v8217_v49 = vadd.f32 %v2604_v45, %v2596_v8 }
 0x51e   : > { %v6471_v3 = vpop.eup %6470  ;;  %v2567_v13 = vadd.f32 1.0, %v6469_v40  ;;  %6490 = vtanh.f32 %v8202_v63  ;;  %v8219_v20 = vadd.f32 %v2605_v2, %v2597_v18 }
 0x51f   : > { %v6473_v58 = vpop.eup %6472  ;;  %v2568_v36 = vadd.f32 1.0, %v6471_v3  ;;  %6492 = vrcp.f32 %v2566_v11 }
 0x520   : > { %v6475_v54 = vpop.eup %6474  ;;  %v2569_v24 = vadd.f32 1.0, %v6473_v58  ;;  %6494 = vrcp.f32 %v2567_v13 }
 0x521   : > { %v6477_v0 = vpop.eup %6476  ;;  %v2570_v41 = vadd.f32 1.0, %v6475_v54  ;;  %6496 = vrcp.f32 %v2568_v36 }
 0x522   : > { %v6479_v53 = vpop.eup %6478  ;;  %v2571_v42 = vadd.f32 1.0, %v6477_v0  ;;  %6498 = vrcp.f32 %v2569_v24 }
 0x523   : > { %v6481_v4 = vpop.eup %6480  ;;  %v2572_v17 = vadd.f32 1.0, %v6479_v53  ;;  %6500 = vrcp.f32 %v2570_v41 }
 0x524   : > { %v6483_v37 = vpop.eup %6482  ;;  %v2573_v48 = vadd.f32 1.0, %v6481_v4  ;;  %6502 = vrcp.f32 %v2571_v42 }
 0x525   : > { %v6485_v62 = vpop.eup %6484  ;;  %6504 = vrcp.f32 %v2572_v17 }
 0x526   : > { %v6487_v57 = vpop.eup %6486  ;;  %6506 = vrcp.f32 %v2573_v48 }
 0x527   : > { %v6489_v46 = vpop.eup %6488  ;;  %6508 = vtanh.f32 %v8215_v30 }
 0x528   : > { %v6491_v50 = vpop.eup %6490  ;;  %6510 = vtanh.f32 %v8217_v49 }
 0x529   : > { %v6493_v59 = vpop.eup %6492  ;;  %6512 = vtanh.f32 %v8219_v20 }
 0x52a   : > { %v6495_v55 = vpop.eup %6494  ;;  %v2622_v6 = vmul.f32 %v6493_v59, %v6483_v37  ;;  %v9022_v59 = vld [vmem:[#allocation17_spill] sm:$0xff] }
 0x52b   : > { %v6497_v28 = vpop.eup %6496  ;;  %v2623_v39 = vmul.f32 %v6495_v55, %v6485_v62  ;;  %v9023_v55 = vld [vmem:[#allocation18_spill] sm:$0xff] }
 0x52c   : > { %v6499_v32 = vpop.eup %6498  ;;  %v2624_v26 = vmul.f32 %v6497_v28, %v6487_v57  ;;  %2630 = vst [vmem:[%s7265_s17 + $0x3] sm:$0x1] %v2622_v6  ;;  %v9019_v57 = vld [vmem:[#allocation14_spill] sm:$0xff]  ;;  %v9025_v28 = vld [vmem:[#allocation20_spill] sm:$0xff] }
 0x52d   : > { %v6501_v31 = vpop.eup %6500  ;;  %v2625_v15 = vmul.f32 %v6499_v32, %v6489_v46  ;;  %2631 = vst [vmem:[%s7265_s17 + $0xb] sm:$0x1] %v2623_v39  ;;  %v2662_v40 = vcombine.low %v2622_v6, %v2623_v39  ;;  %v9020_v46 = vld [vmem:[#allocation15_spill] sm:$0xff]  ;;  %v9026_v39 = vld [vmem:[#allocation21_spill] sm:$0xff]  ;;  %v9027_v32 = vld [vmem:[#allocation22_spill] sm:$0xff] }
 0x52e   : > { %v6503_v11 = vpop.eup %6502  ;;  %v2626_v3 = vmul.f32 %v6501_v31, %v6491_v50  ;;  %2632 = vst [vmem:[%s7265_s17 + $0x13] sm:$0x1] %v2624_v26  ;;  %v9021_v50 = vld [vmem:[#allocation16_spill] sm:$0xff]  ;;  %v9024_v6 = vld [vmem:[#allocation19_spill] sm:$0xff] }
 0x52f   : > { %v6505_v13 = vpop.eup %6504  ;;  %2633 = vst [vmem:[%s7265_s17 + $0x1b] sm:$0x1] %v2625_v15  ;;  %v2663_v58 = vcombine.low %v2624_v26, %v2625_v15  ;;  %v2672_v54 = vrot.slane %v2662_v40, %v7600_v29  ;;  %v9028_v26 = vld [vmem:[#allocation23_spill] sm:$0xff]  ;;  %v9029_v31 = vld [vmem:[#allocation24_spill] sm:$0xff]  ;;  %v9031_v40 = vld [vmem:[#allocation13_spill] sm:$0xff] }
 0x530   : > { %v6507_v36 = vpop.eup %6506  ;;  %2634 = vst [vmem:[%s7265_s17 + $0x23] sm:$0x1] %v2626_v3  ;;  %v9030_v15 = vld [vmem:[#allocation12_spill] sm:$0xff] }
 0x531   : > { %v6509_v16 = vpop.eup %6508  ;;  %v2679_v24 = vrot.slane %v2663_v58, %v7600_v29 }
 0x532   : > { %v6511_v8 = vpop.eup %6510  ;;  %v2627_v0 = vmul.f32 %v6509_v16, %v6503_v11 }
 0x533   : > { %v6513_v41 = vpop.eup %6512  ;;  %v2628_v7 = vmul.f32 %v6511_v8, %v6505_v13  ;;  %v2694_v18 = vcombine.low %v2672_v54, %v2679_v24 }
 0x534   : > { %v2629_v53 = vmul.f32 %v6513_v41, %v6507_v36  ;;  %2635 = vst [vmem:[%s7265_s17 + $0x2b] sm:$0x1] %v2627_v0  ;;  %v2664_v42 = vcombine.low %v2626_v3, %v2627_v0 }
 0x535   : > { %2636 = vst [vmem:[%s7265_s17 + $0x33] sm:$0x1] %v2628_v7  ;;  %v2702_v37 = vrot.slane %v2694_v18, %v7600_v29 }
 0x536   : > { %2637 = vst [vmem:[%s7265_s17 + $0x3b] sm:$0x1] %v2629_v53  ;;  %v2665_v45 = vcombine.low %v2628_v7, %v2629_v53  ;;  %v2686_v4 = vrot.slane %v2664_v42, %v7600_v29 }
 0x538   : > { %v2693_v17 = vrot.slane %v2665_v45, %v7600_v29 }
 0x53a   : > { %v2695_v2 = vcombine.low %v2686_v4, %v2693_v17  ;;  %v5311_v4 = vld [vmem:[%s7263_s16 + $0x4] ss:$8 sm:$0xf] }
 0x53b   : > { %v5312_v17 = vld [vmem:[%s7263_s16 + $0x24] ss:$8 sm:$0xf] }
 0x53c   : > { %v2709_v48 = vrot.slane %v2695_v2, %v7600_v29  ;;  %v5313_v2 = vld [vmem:[%s7263_s16 + $0x44] ss:$8 sm:$0xf] }
 0x53e   : > { %v2710_v62 = vcombine.low %v2702_v37, %v2709_v48  ;;  %v5315_v37 = vld [vmem:[%s7263_s16 + $0x84] ss:$8 sm:$0xf] }
 0x540   : > { %2777 = vmatmul.mubr.f32.vlgmr.msra.gmra.mrb[8].mxu0 %v2710_v62  ;;  %2848 = vmatmul.mubr.f32.vlgmr.msra.gmra.mrb[8].mxu1 %v2710_v62 }
 0x541   : > { %5772 = vmatpush1.bf16.msra.mxu0 %v7298_v43  ;;  %5804 = vmatpush1.bf16.msra.mxu1 %v7310_v47 }
 0x542   : > { %5774 = vmatprep.subr.bf16.mxu0 %v7323_v51  ;;  %5806 = vmatprep.subr.bf16.mxu1 %v7325_v52 }
 0x543   : > { %3336 = vmatprep.mubr.f32.mxu0 %v8981_v25  ;;  %3407 = vmatprep.mubr.f32.mxu1 %v8981_v25 }
 0x545   : > { %5776 = vmatpush1.bf16.msra.mxu0 %v7337_v56  ;;  %5808 = vmatpush1.bf16.msra.mxu1 %v7350_v60 }
 0x546   : > { %5778 = vmatprep.subr.bf16.mxu0 %v7352_v61  ;;  %5810 = vmatprep.subr.bf16.mxu1 %v7363_v1 }
 0x549   : > { %5780 = vmatpush1.bf16.msra.mxu0 %v7375_v5  ;;  %5812 = vmatpush1.bf16.msra.mxu1 %v7388_v9 }
 0x54a   : > { %5782 = vmatprep.subr.bf16.mxu0 %v7390_v10  ;;  %5814 = vmatprep.subr.bf16.mxu1 %v7402_v14 }
 0x54d   : > { %5784 = vmatpush1.bf16.msra.mxu0 %v7423_v21  ;;  %5816 = vmatpush1.bf16.msra.mxu1 %v7427_v22 }
 0x54e   : > { %5786 = vmatprep.subr.bf16.mxu0 %v7429_v23  ;;  %5818 = vmatprep.subr.bf16.mxu1 %v7441_v27 }
 0x551   : > { %5788 = vmatpush1.bf16.msra.mxu0 %v7459_v33  ;;  %5820 = vmatpush1.bf16.msra.mxu1 %v7463_v34 }
 0x552   : > { %5790 = vmatprep.subr.bf16.mxu0 %v7465_v35  ;;  %5822 = vmatprep.subr.bf16.mxu1 %v9019_v57 }
 0x555   : > { %5792 = vmatpush1.bf16.msra.mxu0 %v9020_v46  ;;  %5824 = vmatpush1.bf16.msra.mxu1 %v9021_v50 }
 0x556   : > { %5794 = vmatprep.subr.bf16.mxu0 %v9022_v59  ;;  %5826 = vmatprep.subr.bf16.mxu1 %v9023_v55 }
 0x559   : > { %5796 = vmatpush1.bf16.msra.mxu0 %v9024_v6  ;;  %5828 = vmatpush1.bf16.msra.mxu1 %v9025_v28 }
 0x55a   : > { %5798 = vmatprep.subr.bf16.mxu0 %v9026_v39  ;;  %5830 = vmatprep.subr.bf16.mxu1 %v9027_v32 }
 0x55d   : > { %5800 = vmatpush1.bf16.msra.mxu0 %v9028_v26  ;;  %5832 = vmatpush1.bf16.msra.mxu1 %v9029_v31 }
 0x55e   : > { %5834 = vmatprep.subr.bf16.mxu0 %v9030_v15  ;;  %5866 = vmatprep.subr.bf16.mxu1 %v9031_v40 }
 0x613   : > { %v2778_v11 = vpop.f32.mrb[8].mxu0  ;;  %v2849_v3 = vpop.f32.mrb[8].mxu1 }
 0x614   : > { %v2780_v13 = vpop.f32.mrb[9].mxu0  ;;  %v2851_v58 = vpop.f32.mrb[9].mxu1 }
 0x615   : > { %v2858_v36 = vcombine.low %v2778_v11, %v2780_v13  ;;  %v2859_v16 = vcombine.high %v2778_v11, %v2780_v13  ;;  %v2860_v54 = vcombine.low %v2849_v3, %v2851_v58  ;;  %v2861_v24 = vcombine.high %v2849_v3, %v2851_v58  ;;  %v5314_v13 = vld [vmem:[%s7263_s16 + $0x64] ss:$8 sm:$0xf] }
 0x616   : > { %v5316_v58 = vld [vmem:[%s7263_s16 + $0xa4] ss:$8 sm:$0xf] }
 0x617   : > { %v2868_v8 = vrot.slane %v2858_v36, %v7600_v29  ;;  %v2875_v0 = vrot.slane %v2859_v16, %v7600_v29  ;;  %v2882_v41 = vrot.slane %v2860_v54, %v7600_v29  ;;  %v2889_v7 = vrot.slane %v2861_v24, %v7600_v29  ;;  %v5317_v36 = vld [vmem:[%s7263_s16 + $0xc4] ss:$8 sm:$0xf] }
 0x619   : > { %v2890_v18 = vcombine.low %v2868_v8, %v2882_v41  ;;  %v2891_v53 = vcombine.high %v2868_v8, %v2882_v41  ;;  %v2892_v42 = vcombine.low %v2875_v0, %v2889_v7  ;;  %v2893_v45 = vcombine.high %v2875_v0, %v2889_v7  ;;  %v5318_v0 = vld [vmem:[%s7263_s16 + $0xe4] ss:$8 sm:$0xf] }
 0x61b   : > { %v2900_v48 = vrot.slane %v2890_v18, %v7600_v29  ;;  %v2907_v62 = vrot.slane %v2892_v42, %v7600_v29  ;;  %v2914_v11 = vrot.slane %v2891_v53, %v7600_v29  ;;  %v2921_v3 = vrot.slane %v2893_v45, %v7600_v29 }
 0x61d   : > { %v2922_v16 = vcombine.high %v2900_v48, %v2900_v48  ;;  %v2923_v54 = vcombine.high %v2907_v62, %v2907_v62  ;;  %v2924_v24 = vcombine.high %v2914_v11, %v2914_v11  ;;  %v2925_v8 = vcombine.high %v2921_v3, %v2921_v3 }
 0x61e   : > { %v8288_v41 = vadd.f32 %v5311_v4, %v2900_v48  ;;  %v8290_v7 = vadd.f32 %v5312_v17, %v2914_v11  ;;  %v8292_v40 = vadd.f32 %v5315_v37, %v2907_v62  ;;  %v8298_v53 = vadd.f32 %v5316_v58, %v2921_v3 }
 0x61f   : > { %v8294_v18 = vadd.f32 %v5313_v2, %v2922_v16  ;;  %v8296_v42 = vadd.f32 %v5314_v13, %v2924_v24  ;;  %v8300_v45 = vadd.f32 %v5317_v36, %v2923_v54  ;;  %v8304_v26 = vadd.f32 %v5318_v0, %v2925_v8 }
 0x620   : > { %v5319_v15 = vmul.f32 -1.442695, %v8288_v41  ;;  %v5320_v31 = vmul.f32 -1.442695, %v8290_v7  ;;  %v5323_v2 = vmul.f32 -1.442695, %v8292_v40 }
 0x621   : > { %v5321_v4 = vmul.f32 -1.442695, %v8294_v18  ;;  %v5322_v17 = vmul.f32 -1.442695, %v8296_v42  ;;  %v2998_v37 = vrot.slane %v8288_v41, 1  ;;  %v2999_v62 = vrot.slane %v8290_v7, 1 }
 0x622   : > { %6514 = vpow2.f32 %v5319_v15  ;;  %v5324_v48 = vmul.f32 -1.442695, %v8298_v53  ;;  %v5325_v11 = vmul.f32 -1.442695, %v8300_v45  ;;  %v3000_v3 = vrot.slane %v8294_v18, 1 }
 0x623   : > { %6516 = vpow2.f32 %v5320_v31  ;;  %v5326_v13 = vmul.f32 -1.442695, %v8304_v26  ;;  %v3001_v58 = vrot.slane %v8296_v42, 1  ;;  %v3002_v15 = vrot.slane %v8292_v40, 1 }
 0x624   : > { %6518 = vpow2.f32 %v5321_v4  ;;  %v5327_v36 = vmul.f32 -1.442695, %v2998_v37  ;;  %v5328_v31 = vmul.f32 -1.442695, %v2999_v62  ;;  %v5329_v16 = vmul.f32 -1.442695, %v3000_v3 }
 0x625   : > { %6520 = vpow2.f32 %v5322_v17  ;;  %v5330_v54 = vmul.f32 -1.442695, %v3001_v58  ;;  %v5331_v24 = vmul.f32 -1.442695, %v3002_v15  ;;  %v3003_v37 = vrot.slane %v8298_v53, 1 }
 0x626   : > { %6522 = vpow2.f32 %v5323_v2  ;;  %v3005_v58 = vrot.slane %v8304_v26, 1  ;;  %v3093_v46 = vrot.slane %v8304_v26, 3 }
 0x627   : > { %6524 = vpow2.f32 %v5324_v48 }
 0x628   : > { %6526 = vpow2.f32 %v5325_v11  ;;  %v3004_v11 = vrot.slane %v8300_v45, 1 }
 0x629   : > { %6528 = vpow2.f32 %v5326_v13 }
 0x62a   : > { %6530 = vpow2.f32 %v5327_v36 }
 0x62b   : > { %6532 = vpow2.f32 %v5328_v31 }
 0x62c   : > { %v6515_v8 = vpop.eup %6514  ;;  %6534 = vpow2.f32 %v5329_v16 }
 0x62d   : > { %v6517_v0 = vpop.eup %6516  ;;  %v2966_v4 = vadd.f32 1.0, %v6515_v8  ;;  %6536 = vpow2.f32 %v5330_v54  ;;  %v5332_v54 = vmul.f32 -1.442695, %v3003_v37 }
 0x62e   : > { %v6519_v17 = vpop.eup %6518  ;;  %v2967_v32 = vadd.f32 1.0, %v6517_v0  ;;  %6538 = vpow2.f32 %v5331_v24  ;;  %v5333_v0 = vmul.f32 -1.442695, %v3004_v11 }
 0x62f   : > { %v6521_v2 = vpop.eup %6520  ;;  %v2968_v39 = vadd.f32 1.0, %v6519_v17  ;;  %6540 = vrcp.f32 %v2966_v4 }
 0x630   : > { %v6523_v48 = vpop.eup %6522  ;;  %v2969_v62 = vadd.f32 1.0, %v6521_v2  ;;  %6542 = vrcp.f32 %v2967_v32  ;;  %v5334_v32 = vmul.f32 -1.442695, %v3005_v58  ;;  %v3062_v58 = vrot.slane %v8288_v41, 2 }
 0x631   : > { %v6525_v3 = vpop.eup %6524  ;;  %v2970_v13 = vadd.f32 1.0, %v6523_v48  ;;  %6544 = vrcp.f32 %v2968_v39 }
 0x632   : > { %v6527_v15 = vpop.eup %6526  ;;  %v2971_v36 = vadd.f32 1.0, %v6525_v3  ;;  %6546 = vrcp.f32 %v2969_v62 }
 0x633   : > { %v6529_v31 = vpop.eup %6528  ;;  %v2972_v16 = vadd.f32 1.0, %v6527_v15  ;;  %6548 = vrcp.f32 %v2970_v13 }
 0x634   : > { %v6531_v24 = vpop.eup %6530  ;;  %v2973_v8 = vadd.f32 1.0, %v6529_v31  ;;  %6550 = vrcp.f32 %v2971_v36  ;;  %v3063_v31 = vrot.slane %v8290_v7, 2 }
 0x635   : > { %v6533_v4 = vpop.eup %6532  ;;  %6552 = vrcp.f32 %v2972_v16  ;;  %v3038_v2 = vadd.f32 1.0, %v6531_v24 }
 0x636   : > { %v6535_v17 = vpop.eup %6534  ;;  %6554 = vrcp.f32 %v2973_v8  ;;  %v3039_v48 = vadd.f32 1.0, %v6533_v4 }
 0x637   : > { %v6537_v39 = vpop.eup %6536  ;;  %6556 = vpow2.f32 %v5332_v54  ;;  %v3040_v62 = vadd.f32 1.0, %v6535_v17  ;;  %v3064_v54 = vrot.slane %v8294_v18, 2 }
 0x638   : > { %v6539_v28 = vpop.eup %6538  ;;  %6558 = vpow2.f32 %v5333_v0  ;;  %v3041_v37 = vadd.f32 1.0, %v6537_v39  ;;  %v3066_v0 = vrot.slane %v8292_v40, 2  ;;  %v3086_v39 = vrot.slane %v8288_v41, 3 }
 0x639   : > { %v8320_v3 = vpop.eup %6540  ;;  %6560 = vpow2.f32 %v5334_v32  ;;  %v3042_v15 = vadd.f32 1.0, %v6539_v28  ;;  %v3065_v28 = vrot.slane %v8296_v42, 2  ;;  %v3089_v41 = vrot.slane %v8296_v42, 3 }
 0x63a   : > { %v8322_v13 = vpop.eup %6542  ;;  %6562 = vrcp.f32 %v3038_v2 }
 0x63b   : > { %v8324_v11 = vpop.eup %6544  ;;  %6564 = vrcp.f32 %v3039_v48  ;;  %v5338_v42 = vmul.f32 -1.442695, %v3089_v41 }
 0x63c   : > { %v8327_v36 = vpop.eup %6546  ;;  %6566 = vrcp.f32 %v3040_v62 }
 0x63d   : > { %v8330_v16 = vpop.eup %6548  ;;  %6568 = vrcp.f32 %v3041_v37  ;;  %v3067_v37 = vrot.slane %v8298_v53, 2 }
 0x63e   : > { %v8333_v24 = vpop.eup %6550  ;;  %6570 = vrcp.f32 %v3042_v15  ;;  %v3087_v15 = vrot.slane %v8290_v7, 3  ;;  %v3091_v7 = vrot.slane %v8298_v53, 3 }
 0x63f   : > { %v8336_v8 = vpop.eup %6552  ;;  %6572 = vtanh.f32 %v3062_v58  ;;  %v3068_v58 = vrot.slane %v8300_v45, 2 }
 0x640   : > { %v8339_v4 = vpop.eup %6554  ;;  %6574 = vtanh.f32 %v3063_v31  ;;  %v3088_v31 = vrot.slane %v8294_v18, 3  ;;  %v3092_v18 = vrot.slane %v8300_v45, 3 }
 0x641   : > { %v6557_v32 = vpop.eup %6556  ;;  %6576 = vtanh.f32 %v3064_v54 }
 0x642   : > { %v6559_v17 = vpop.eup %6558  ;;  %v3043_v2 = vadd.f32 1.0, %v6557_v32  ;;  %6578 = vtanh.f32 %v3065_v28  ;;  %v3069_v28 = vrot.slane %v8304_v26, 2  ;;  %v5337_v50 = vmul.f32 -1.442695, %v3088_v31 }
 0x643   : > { %v6561_v48 = vpop.eup %6560  ;;  %v3044_v62 = vadd.f32 1.0, %v6559_v17  ;;  %6580 = vtanh.f32 %v3066_v0  ;;  %v3090_v17 = vrot.slane %v8292_v40, 3  ;;  %v5335_v0 = vmul.f32 -1.442695, %v3086_v39 }
 0x644   : > { %v6563_v6 = vpop.eup %6562  ;;  %v3045_v55 = vadd.f32 1.0, %v6561_v48  ;;  %6582 = vrcp.f32 %v3043_v2  ;;  %v5336_v2 = vmul.f32 -1.442695, %v3087_v15  ;;  %v5342_v26 = vmul.f32 -1.442695, %v3093_v46 }
 0x645   : > { %v6565_v54 = vpop.eup %6564  ;;  %6584 = vrcp.f32 %v3044_v62  ;;  %v3150_v40 = vmul.f32 %v6563_v6, %v8192_v19 }
 0x646   : > { %v6567_v32 = vpop.eup %6566  ;;  %6586 = vrcp.f32 %v3045_v55  ;;  %v5339_v55 = vmul.f32 -1.442695, %v3090_v17  ;;  %v3151_v53 = vmul.f32 %v6565_v54, %v8195_v44 }
 0x647   : > { %v6569_v59 = vpop.eup %6568  ;;  %6588 = vtanh.f32 %v3067_v37  ;;  %v5340_v37 = vmul.f32 -1.442695, %v3091_v7  ;;  %v3152_v31 = vmul.f32 %v6567_v32, %v8198_v38 }
 0x648   : > { %v6571_v48 = vpop.eup %6570  ;;  %6590 = vtanh.f32 %v3068_v58  ;;  %v5341_v58 = vmul.f32 -1.442695, %v3092_v18  ;;  %v3153_v17 = vmul.f32 %v6569_v59, %v8200_v12 }
 0x649   : > { %v6573_v62 = vpop.eup %6572  ;;  %6592 = vtanh.f32 %v3069_v28  ;;  %v3154_v44 = vmul.f32 %v6571_v48, %v8202_v63 }
 0x64a   : > { %v6575_v57 = vpop.eup %6574  ;;  %6594 = vpow2.f32 %v5335_v0  ;;  %v3158_v45 = vmul.f32 %v6573_v62, %v8320_v3 }
 0x64b   : > { %v6577_v39 = vpop.eup %6576  ;;  %6596 = vpow2.f32 %v5336_v2  ;;  %v3159_v41 = vmul.f32 %v6575_v57, %v8322_v13 }
 0x64c   : > { %v6579_v15 = vpop.eup %6578  ;;  %6598 = vpow2.f32 %v5337_v50  ;;  %v3160_v6 = vmul.f32 %v6577_v39, %v8324_v11  ;;  %v8360_v54 = vadd.f32 %v3158_v45, %v3150_v40 }
 0x64d   : > { %v6581_v28 = vpop.eup %6580  ;;  %6600 = vpow2.f32 %v5338_v42  ;;  %v3161_v3 = vmul.f32 %v6579_v15, %v8327_v36  ;;  %v8363_v38 = vadd.f32 %v3159_v41, %v3151_v53 }
 0x64e   : > { %v6583_v19 = vpop.eup %6582  ;;  %6602 = vpow2.f32 %v5339_v55  ;;  %v3162_v57 = vmul.f32 %v6581_v28, %v8330_v16  ;;  %v8366_v46 = vadd.f32 %v3160_v6, %v3152_v31 }
 0x64f   : > { %v6585_v50 = vpop.eup %6584  ;;  %6604 = vpow2.f32 %v5340_v37  ;;  %v8368_v59 = vadd.f32 %v3161_v3, %v3153_v17  ;;  %v3155_v62 = vmul.f32 %v6583_v19, %v8215_v30 }
 0x650   : > { %v6587_v32 = vpop.eup %6586  ;;  %6606 = vpow2.f32 %v5341_v58  ;;  %v8370_v63 = vadd.f32 %v3162_v57, %v3154_v44  ;;  %v3156_v40 = vmul.f32 %v6585_v50, %v8217_v49 }
 0x651   : > { %v6589_v12 = vpop.eup %6588  ;;  %6608 = vpow2.f32 %v5342_v26  ;;  %v3157_v15 = vmul.f32 %v6587_v32, %v8219_v20 }
 0x652   : > { %v6591_v13 = vpop.eup %6590  ;;  %6610 = vtanh.f32 %v8360_v54  ;;  %v3163_v53 = vmul.f32 %v6589_v12, %v8333_v24 }
 0x653   : > { %v6593_v11 = vpop.eup %6592  ;;  %6612 = vtanh.f32 %v8363_v38  ;;  %v3164_v31 = vmul.f32 %v6591_v13, %v8336_v8 }
 0x654   : > { %v6595_v36 = vpop.eup %6594  ;;  %6614 = vtanh.f32 %v8366_v46  ;;  %v3165_v30 = vmul.f32 %v6593_v11, %v8339_v4  ;;  %v8383_v41 = vadd.f32 %v3163_v53, %v3155_v62 }
 0x655   : > { %v6597_v0 = vpop.eup %6596  ;;  %v3126_v7 = vadd.f32 1.0, %v6595_v36  ;;  %6616 = vtanh.f32 %v8368_v59  ;;  %v8385_v19 = vadd.f32 %v3164_v31, %v3156_v40 }
 0x656   : > { %v6599_v16 = vpop.eup %6598  ;;  %v3127_v2 = vadd.f32 1.0, %v6597_v0  ;;  %6618 = vtanh.f32 %v8370_v63  ;;  %v8387_v20 = vadd.f32 %v3165_v30, %v3157_v15 }
 0x657   : > { %v6601_v48 = vpop.eup %6600  ;;  %v3128_v18 = vadd.f32 1.0, %v6599_v16  ;;  %6620 = vrcp.f32 %v3126_v7 }
 0x658   : > { %v6603_v42 = vpop.eup %6602  ;;  %v3129_v55 = vadd.f32 1.0, %v6601_v48  ;;  %6622 = vrcp.f32 %v3127_v2 }
 0x659   : > { %v6605_v39 = vpop.eup %6604  ;;  %v3130_v37 = vadd.f32 1.0, %v6603_v42  ;;  %6624 = vrcp.f32 %v3128_v18 }
 0x65a   : > { %v6607_v58 = vpop.eup %6606  ;;  %v3131_v45 = vadd.f32 1.0, %v6605_v39  ;;  %6626 = vrcp.f32 %v3129_v55 }
 0x65b   : > { %v6609_v28 = vpop.eup %6608  ;;  %v3132_v26 = vadd.f32 1.0, %v6607_v58  ;;  %6628 = vrcp.f32 %v3130_v37 }
 0x65c   : > { %v6611_v49 = vpop.eup %6610  ;;  %v3133_v17 = vadd.f32 1.0, %v6609_v28  ;;  %6630 = vrcp.f32 %v3131_v45 }
 0x65d   : > { %v6613_v24 = vpop.eup %6612  ;;  %6632 = vrcp.f32 %v3132_v26 }
 0x65e   : > { %v6615_v6 = vpop.eup %6614  ;;  %6634 = vrcp.f32 %v3133_v17 }
 0x65f   : > { %v6617_v8 = vpop.eup %6616  ;;  %6636 = vtanh.f32 %v8383_v41 }
 0x660   : > { %v6619_v44 = vpop.eup %6618  ;;  %6638 = vtanh.f32 %v8385_v19 }
 0x661   : > { %v6621_v4 = vpop.eup %6620  ;;  %6640 = vtanh.f32 %v8387_v20 }
 0x662   : > { %v6623_v50 = vpop.eup %6622  ;;  %v3182_v3 = vmul.f32 %v6621_v4, %v6611_v49  ;;  %v9035_v4 = vld [vmem:[#allocation17_spill] sm:$0xff] }
 0x663   : > { %v6625_v32 = vpop.eup %6624  ;;  %v3183_v57 = vmul.f32 %v6623_v50, %v6613_v24  ;;  %v9036_v50 = vld [vmem:[#allocation18_spill] sm:$0xff] }
 0x664   : > { %v6627_v12 = vpop.eup %6626  ;;  %v3184_v13 = vmul.f32 %v6625_v32, %v6615_v6  ;;  %3190 = vst [vmem:[%s7265_s17 + $0x4] sm:$0x1] %v3182_v3  ;;  %v9032_v6 = vld [vmem:[#allocation14_spill] sm:$0xff]  ;;  %v9038_v32 = vld [vmem:[#allocation20_spill] sm:$0xff] }
 0x665   : > { %v6629_v11 = vpop.eup %6628  ;;  %v3185_v36 = vmul.f32 %v6627_v12, %v6617_v8  ;;  %3191 = vst [vmem:[%s7265_s17 + $0xc] sm:$0x1] %v3183_v57  ;;  %v3222_v0 = vcombine.low %v3182_v3, %v3183_v57  ;;  %v9033_v8 = vld [vmem:[#allocation15_spill] sm:$0xff]  ;;  %v9039_v57 = vld [vmem:[#allocation21_spill] sm:$0xff]  ;;  %v9040_v12 = vld [vmem:[#allocation22_spill] sm:$0xff] }
 0x666   : > { %v6631_v7 = vpop.eup %6630  ;;  %v3186_v16 = vmul.f32 %v6629_v11, %v6619_v44  ;;  %3192 = vst [vmem:[%s7265_s17 + $0x14] sm:$0x1] %v3184_v13  ;;  %v9034_v44 = vld [vmem:[#allocation16_spill] sm:$0xff]  ;;  %v9037_v3 = vld [vmem:[#allocation19_spill] sm:$0xff] }
 0x667   : > { %v6633_v2 = vpop.eup %6632  ;;  %3193 = vst [vmem:[%s7265_s17 + $0x1c] sm:$0x1] %v3185_v36  ;;  %v3223_v48 = vcombine.low %v3184_v13, %v3185_v36  ;;  %v3232_v42 = vrot.slane %v3222_v0, %v7600_v29  ;;  %v9041_v13 = vld [vmem:[#allocation23_spill] sm:$0xff]  ;;  %v9042_v11 = vld [vmem:[#allocation24_spill] sm:$0xff]  ;;  %v9044_v0 = vld [vmem:[#allocation13_spill] sm:$0xff] }
 0x668   : > { %v6635_v18 = vpop.eup %6634  ;;  %3194 = vst [vmem:[%s7265_s17 + $0x24] sm:$0x1] %v3186_v16  ;;  %v9043_v36 = vld [vmem:[#allocation12_spill] sm:$0xff] }
 0x669   : > { %v6637_v62 = vpop.eup %6636  ;;  %v3239_v55 = vrot.slane %v3223_v48, %v7600_v29 }
 0x66a   : > { %v6639_v40 = vpop.eup %6638  ;;  %v3187_v39 = vmul.f32 %v6637_v62, %v6631_v7 }
 0x66b   : > { %v6641_v37 = vpop.eup %6640  ;;  %v3188_v53 = vmul.f32 %v6639_v40, %v6633_v2  ;;  %v3254_v15 = vcombine.low %v3232_v42, %v3239_v55 }
 0x66c   : > { %v3189_v58 = vmul.f32 %v6641_v37, %v6635_v18  ;;  %3195 = vst [vmem:[%s7265_s17 + $0x2c] sm:$0x1] %v3187_v39  ;;  %v3224_v45 = vcombine.low %v3186_v16, %v3187_v39 }
 0x66d   : > { %3196 = vst [vmem:[%s7265_s17 + $0x34] sm:$0x1] %v3188_v53  ;;  %v3262_v49 = vrot.slane %v3254_v15, %v7600_v29 }
 0x66e   : > { %3197 = vst [vmem:[%s7265_s17 + $0x3c] sm:$0x1] %v3189_v58  ;;  %v3225_v31 = vcombine.low %v3188_v53, %v3189_v58  ;;  %v3246_v28 = vrot.slane %v3224_v45, %v7600_v29 }
 0x670   : > { %v3253_v26 = vrot.slane %v3225_v31, %v7600_v29 }
 0x672   : > { %v3255_v30 = vcombine.low %v3246_v28, %v3253_v26  ;;  %v5343_v28 = vld [vmem:[%s7263_s16 + $0x5] ss:$8 sm:$0xf] }
 0x673   : > { %v5344_v26 = vld [vmem:[%s7263_s16 + $0x25] ss:$8 sm:$0xf] }
 0x674   : > { %v3269_v17 = vrot.slane %v3255_v30, %v7600_v29  ;;  %v5345_v30 = vld [vmem:[%s7263_s16 + $0x45] ss:$8 sm:$0xf] }
 0x676   : > { %v3270_v24 = vcombine.low %v3262_v49, %v3269_v17  ;;  %v5347_v49 = vld [vmem:[%s7263_s16 + $0x85] ss:$8 sm:$0xf] }
 0x678   : > { %3337 = vmatmul.mubr.f32.vlgmr.msra.gmra.mrb[10].mxu0 %v3270_v24  ;;  %3408 = vmatmul.mubr.f32.vlgmr.msra.gmra.mrb[10].mxu1 %v3270_v24 }
 0x679   : > { %5836 = vmatpush1.bf16.msra.mxu0 %v7298_v43  ;;  %5868 = vmatpush1.bf16.msra.mxu1 %v7310_v47 }
 0x67a   : > { %5838 = vmatprep.subr.bf16.mxu0 %v7323_v51  ;;  %5870 = vmatprep.subr.bf16.mxu1 %v7325_v52 }
 0x67b   : > { %3896 = vmatprep.mubr.f32.mxu0 %v8981_v25  ;;  %3967 = vmatprep.mubr.f32.mxu1 %v8981_v25 }
 0x67d   : > { %5840 = vmatpush1.bf16.msra.mxu0 %v7337_v56  ;;  %5872 = vmatpush1.bf16.msra.mxu1 %v7350_v60 }
 0x67e   : > { %5842 = vmatprep.subr.bf16.mxu0 %v7352_v61  ;;  %5874 = vmatprep.subr.bf16.mxu1 %v7363_v1 }
 0x681   : > { %5844 = vmatpush1.bf16.msra.mxu0 %v7375_v5  ;;  %5876 = vmatpush1.bf16.msra.mxu1 %v7388_v9 }
 0x682   : > { %5846 = vmatprep.subr.bf16.mxu0 %v7390_v10  ;;  %5878 = vmatprep.subr.bf16.mxu1 %v7402_v14 }
 0x685   : > { %5848 = vmatpush1.bf16.msra.mxu0 %v7423_v21  ;;  %5880 = vmatpush1.bf16.msra.mxu1 %v7427_v22 }
 0x686   : > { %5850 = vmatprep.subr.bf16.mxu0 %v7429_v23  ;;  %5882 = vmatprep.subr.bf16.mxu1 %v7441_v27 }
 0x689   : > { %5852 = vmatpush1.bf16.msra.mxu0 %v7459_v33  ;;  %5884 = vmatpush1.bf16.msra.mxu1 %v7463_v34 }
 0x68a   : > { %5854 = vmatprep.subr.bf16.mxu0 %v7465_v35  ;;  %5886 = vmatprep.subr.bf16.mxu1 %v9032_v6 }
 0x68d   : > { %5856 = vmatpush1.bf16.msra.mxu0 %v9033_v8  ;;  %5888 = vmatpush1.bf16.msra.mxu1 %v9034_v44 }
 0x68e   : > { %5858 = vmatprep.subr.bf16.mxu0 %v9035_v4  ;;  %5890 = vmatprep.subr.bf16.mxu1 %v9036_v50 }
 0x691   : > { %5860 = vmatpush1.bf16.msra.mxu0 %v9037_v3  ;;  %5892 = vmatpush1.bf16.msra.mxu1 %v9038_v32 }
 0x692   : > { %5862 = vmatprep.subr.bf16.mxu0 %v9039_v57  ;;  %5894 = vmatprep.subr.bf16.mxu1 %v9040_v12 }
 0x695   : > { %5864 = vmatpush1.bf16.msra.mxu0 %v9041_v13  ;;  %5896 = vmatpush1.bf16.msra.mxu1 %v9042_v11 }
 0x696   : > { %5898 = vmatprep.subr.bf16.mxu0 %v9043_v36  ;;  %5930 = vmatprep.subr.bf16.mxu1 %v9044_v0 }
 0x74b   : > { %v3338_v7 = vpop.f32.mrb[10].mxu0  ;;  %v3409_v16 = vpop.f32.mrb[10].mxu1 }
 0x74c   : > { %v3340_v2 = vpop.f32.mrb[11].mxu0  ;;  %v3411_v48 = vpop.f32.mrb[11].mxu1 }
 0x74d   : > { %v3418_v18 = vcombine.low %v3338_v7, %v3340_v2  ;;  %v3419_v62 = vcombine.high %v3338_v7, %v3340_v2  ;;  %v3420_v42 = vcombine.low %v3409_v16, %v3411_v48  ;;  %v3421_v55 = vcombine.high %v3409_v16, %v3411_v48  ;;  %v5346_v7 = vld [vmem:[%s7263_s16 + $0x65] ss:$8 sm:$0xf] }
 0x74e   : > { %v5348_v16 = vld [vmem:[%s7263_s16 + $0xa5] ss:$8 sm:$0xf] }
 0x74f   : > { %v3428_v40 = vrot.slane %v3418_v18, %v7600_v29  ;;  %v3435_v39 = vrot.slane %v3419_v62, %v7600_v29  ;;  %v3442_v37 = vrot.slane %v3420_v42, %v7600_v29  ;;  %v3449_v53 = vrot.slane %v3421_v55, %v7600_v29  ;;  %v5349_v2 = vld [vmem:[%s7263_s16 + $0xc5] ss:$8 sm:$0xf] }
 0x750   : > { %v5350_v55 = vld [vmem:[%s7263_s16 + $0xe5] ss:$8 sm:$0xf] }
 0x751   : > { %v3450_v15 = vcombine.low %v3428_v40, %v3442_v37  ;;  %v3451_v58 = vcombine.high %v3428_v40, %v3442_v37  ;;  %v3452_v45 = vcombine.low %v3435_v39, %v3449_v53  ;;  %v3453_v31 = vcombine.high %v3435_v39, %v3449_v53 }
 0x753   : > { %v3460_v17 = vrot.slane %v3450_v15, %v7600_v29  ;;  %v3467_v24 = vrot.slane %v3452_v45, %v7600_v29  ;;  %v3474_v36 = vrot.slane %v3451_v58, %v7600_v29  ;;  %v3481_v0 = vrot.slane %v3453_v31, %v7600_v29 }
 0x755   : > { %v3482_v48 = vcombine.high %v3460_v17, %v3460_v17  ;;  %v3483_v18 = vcombine.high %v3467_v24, %v3467_v24  ;;  %v3484_v62 = vcombine.high %v3474_v36, %v3474_v36  ;;  %v3485_v42 = vcombine.high %v3481_v0, %v3481_v0 }
 0x756   : > { %v8456_v40 = vadd.f32 %v5343_v28, %v3460_v17  ;;  %v8458_v39 = vadd.f32 %v5344_v26, %v3474_v36  ;;  %v8460_v37 = vadd.f32 %v5347_v49, %v3467_v24  ;;  %v8466_v58 = vadd.f32 %v5348_v16, %v3481_v0 }
 0x757   : > { %v8462_v53 = vadd.f32 %v5345_v30, %v3482_v48  ;;  %v8464_v15 = vadd.f32 %v5346_v7, %v3484_v62  ;;  %v8468_v45 = vadd.f32 %v5349_v2, %v3483_v18  ;;  %v8472_v13 = vadd.f32 %v5350_v55, %v3485_v42 }
 0x758   : > { %v5351_v31 = vmul.f32 -1.442695, %v8456_v40  ;;  %v5352_v11 = vmul.f32 -1.442695, %v8458_v39  ;;  %v5355_v30 = vmul.f32 -1.442695, %v8460_v37 }
 0x759   : > { %v5353_v28 = vmul.f32 -1.442695, %v8462_v53  ;;  %v5354_v26 = vmul.f32 -1.442695, %v8464_v15  ;;  %v3558_v49 = vrot.slane %v8456_v40, 1  ;;  %v3559_v24 = vrot.slane %v8458_v39, 1 }
 0x75a   : > { %6642 = vpow2.f32 %v5351_v31  ;;  %v5356_v17 = vmul.f32 -1.442695, %v8466_v58  ;;  %v5357_v36 = vmul.f32 -1.442695, %v8468_v45  ;;  %v3560_v0 = vrot.slane %v8462_v53, 1 }
 0x75b   : > { %6644 = vpow2.f32 %v5352_v11  ;;  %v5358_v7 = vmul.f32 -1.442695, %v8472_v13  ;;  %v3561_v16 = vrot.slane %v8464_v15, 1  ;;  %v3562_v2 = vrot.slane %v8460_v37, 1 }
 0x75c   : > { %6646 = vpow2.f32 %v5353_v28  ;;  %v5359_v48 = vmul.f32 -1.442695, %v3558_v49  ;;  %v5360_v11 = vmul.f32 -1.442695, %v3559_v24  ;;  %v5361_v18 = vmul.f32 -1.442695, %v3560_v0 }
 0x75d   : > { %6648 = vpow2.f32 %v5354_v26  ;;  %v5362_v62 = vmul.f32 -1.442695, %v3561_v16  ;;  %v5363_v42 = vmul.f32 -1.442695, %v3562_v2  ;;  %v3563_v49 = vrot.slane %v8466_v58, 1 }
 0x75e   : > { %6650 = vpow2.f32 %v5355_v30  ;;  %v3565_v16 = vrot.slane %v8472_v13, 1  ;;  %v3653_v8 = vrot.slane %v8472_v13, 3 }
 0x75f   : > { %6652 = vpow2.f32 %v5356_v17 }
 0x760   : > { %6654 = vpow2.f32 %v5357_v36  ;;  %v3564_v36 = vrot.slane %v8468_v45, 1 }
 0x761   : > { %6656 = vpow2.f32 %v5358_v7 }
 0x762   : > { %6658 = vpow2.f32 %v5359_v48 }
 0x763   : > { %6660 = vpow2.f32 %v5360_v11 }
 0x764   : > { %v6643_v55 = vpop.eup %6642  ;;  %6662 = vpow2.f32 %v5361_v18 }
 0x765   : > { %v6645_v31 = vpop.eup %6644  ;;  %v3526_v28 = vadd.f32 1.0, %v6643_v55  ;;  %6664 = vpow2.f32 %v5362_v62  ;;  %v5364_v62 = vmul.f32 -1.442695, %v3563_v49 }
 0x766   : > { %v6647_v26 = vpop.eup %6646  ;;  %v3527_v12 = vadd.f32 1.0, %v6645_v31  ;;  %6666 = vpow2.f32 %v5363_v42  ;;  %v5365_v31 = vmul.f32 -1.442695, %v3564_v36 }
 0x767   : > { %v6649_v30 = vpop.eup %6648  ;;  %v3528_v57 = vadd.f32 1.0, %v6647_v26  ;;  %6668 = vrcp.f32 %v3526_v28 }
 0x768   : > { %v6651_v17 = vpop.eup %6650  ;;  %v3529_v24 = vadd.f32 1.0, %v6649_v30  ;;  %6670 = vrcp.f32 %v3527_v12  ;;  %v5366_v12 = vmul.f32 -1.442695, %v3565_v16  ;;  %v3622_v16 = vrot.slane %v8456_v40, 2 }
 0x769   : > { %v6653_v0 = vpop.eup %6652  ;;  %v3530_v7 = vadd.f32 1.0, %v6651_v17  ;;  %6672 = vrcp.f32 %v3528_v57 }
 0x76a   : > { %v6655_v2 = vpop.eup %6654  ;;  %v3531_v48 = vadd.f32 1.0, %v6653_v0  ;;  %6674 = vrcp.f32 %v3529_v24 }
 0x76b   : > { %v6657_v11 = vpop.eup %6656  ;;  %v3532_v18 = vadd.f32 1.0, %v6655_v2  ;;  %6676 = vrcp.f32 %v3530_v7 }
 0x76c   : > { %v6659_v42 = vpop.eup %6658  ;;  %v3533_v55 = vadd.f32 1.0, %v6657_v11  ;;  %6678 = vrcp.f32 %v3531_v48  ;;  %v3623_v11 = vrot.slane %v8458_v39, 2 }
 0x76d   : > { %v6661_v28 = vpop.eup %6660  ;;  %6680 = vrcp.f32 %v3532_v18  ;;  %v3598_v30 = vadd.f32 1.0, %v6659_v42 }
 0x76e   : > { %v6663_v26 = vpop.eup %6662  ;;  %6682 = vrcp.f32 %v3533_v55  ;;  %v3599_v17 = vadd.f32 1.0, %v6661_v28 }
 0x76f   : > { %v6665_v57 = vpop.eup %6664  ;;  %6684 = vpow2.f32 %v5364_v62  ;;  %v3600_v24 = vadd.f32 1.0, %v6663_v26  ;;  %v3624_v62 = vrot.slane %v8462_v53, 2 }
 0x770   : > { %v6667_v32 = vpop.eup %6666  ;;  %6686 = vpow2.f32 %v5365_v31  ;;  %v3601_v49 = vadd.f32 1.0, %v6665_v57  ;;  %v3626_v31 = vrot.slane %v8460_v37, 2  ;;  %v3646_v57 = vrot.slane %v8456_v40, 3 }
 0x771   : > { %v8488_v0 = vpop.eup %6668  ;;  %6688 = vpow2.f32 %v5366_v12  ;;  %v3602_v2 = vadd.f32 1.0, %v6667_v32  ;;  %v3625_v32 = vrot.slane %v8464_v15, 2  ;;  %v3649_v40 = vrot.slane %v8464_v15, 3 }
 0x772   : > { %v8490_v7 = vpop.eup %6670  ;;  %6690 = vrcp.f32 %v3598_v30 }
 0x773   : > { %v8492_v36 = vpop.eup %6672  ;;  %6692 = vrcp.f32 %v3599_v17  ;;  %v5370_v15 = vmul.f32 -1.442695, %v3649_v40 }
 0x774   : > { %v8495_v48 = vpop.eup %6674  ;;  %6694 = vrcp.f32 %v3600_v24 }
 0x775   : > { %v8498_v18 = vpop.eup %6676  ;;  %6696 = vrcp.f32 %v3601_v49  ;;  %v3627_v49 = vrot.slane %v8466_v58, 2 }
 0x776   : > { %v8501_v42 = vpop.eup %6678  ;;  %6698 = vrcp.f32 %v3602_v2  ;;  %v3647_v2 = vrot.slane %v8458_v39, 3  ;;  %v3651_v39 = vrot.slane %v8466_v58, 3 }
 0x777   : > { %v8504_v55 = vpop.eup %6680  ;;  %6700 = vtanh.f32 %v3622_v16  ;;  %v3628_v16 = vrot.slane %v8468_v45, 2 }
 0x778   : > { %v8507_v28 = vpop.eup %6682  ;;  %6702 = vtanh.f32 %v3623_v11  ;;  %v3648_v11 = vrot.slane %v8462_v53, 3  ;;  %v3652_v53 = vrot.slane %v8468_v45, 3 }
 0x779   : > { %v6685_v12 = vpop.eup %6684  ;;  %6704 = vtanh.f32 %v3624_v62 }
 0x77a   : > { %v6687_v26 = vpop.eup %6686  ;;  %v3603_v30 = vadd.f32 1.0, %v6685_v12  ;;  %6706 = vtanh.f32 %v3625_v32  ;;  %v3629_v32 = vrot.slane %v8472_v13, 2  ;;  %v5369_v44 = vmul.f32 -1.442695, %v3648_v11 }
 0x77b   : > { %v6689_v17 = vpop.eup %6688  ;;  %v3604_v24 = vadd.f32 1.0, %v6687_v26  ;;  %6708 = vtanh.f32 %v3626_v31  ;;  %v3650_v26 = vrot.slane %v8460_v37, 3  ;;  %v5367_v31 = vmul.f32 -1.442695, %v3646_v57 }
 0x77c   : > { %v6691_v3 = vpop.eup %6690  ;;  %v3605_v50 = vadd.f32 1.0, %v6689_v17  ;;  %6710 = vrcp.f32 %v3603_v30  ;;  %v5368_v30 = vmul.f32 -1.442695, %v3647_v2  ;;  %v5374_v13 = vmul.f32 -1.442695, %v3653_v8 }
 0x77d   : > { %v6693_v62 = vpop.eup %6692  ;;  %6712 = vrcp.f32 %v3604_v24  ;;  %v3710_v37 = vmul.f32 %v6691_v3, %v8360_v54 }
 0x77e   : > { %v6695_v12 = vpop.eup %6694  ;;  %6714 = vrcp.f32 %v3605_v50  ;;  %v5371_v50 = vmul.f32 -1.442695, %v3650_v26  ;;  %v3711_v58 = vmul.f32 %v6693_v62, %v8363_v38 }
 0x77f   : > { %v6697_v4 = vpop.eup %6696  ;;  %6716 = vtanh.f32 %v3627_v49  ;;  %v5372_v49 = vmul.f32 -1.442695, %v3651_v39  ;;  %v3712_v11 = vmul.f32 %v6695_v12, %v8366_v46 }
 0x780   : > { %v6699_v17 = vpop.eup %6698  ;;  %6718 = vtanh.f32 %v3628_v16  ;;  %v5373_v16 = vmul.f32 -1.442695, %v3652_v53  ;;  %v3713_v26 = vmul.f32 %v6697_v4, %v8368_v59 }
 0x781   : > { %v6701_v24 = vpop.eup %6700  ;;  %6720 = vtanh.f32 %v3629_v32  ;;  %v3714_v38 = vmul.f32 %v6699_v17, %v8370_v63 }
 0x782   : > { %v6703_v6 = vpop.eup %6702  ;;  %6722 = vpow2.f32 %v5367_v31  ;;  %v3718_v45 = vmul.f32 %v6701_v24, %v8488_v0 }
 0x783   : > { %v6705_v57 = vpop.eup %6704  ;;  %6724 = vpow2.f32 %v5368_v30  ;;  %v3719_v40 = vmul.f32 %v6703_v6, %v8490_v7 }
 0x784   : > { %v6707_v2 = vpop.eup %6706  ;;  %6726 = vpow2.f32 %v5369_v44  ;;  %v3720_v3 = vmul.f32 %v6705_v57, %v8492_v36  ;;  %v8528_v62 = vadd.f32 %v3718_v45, %v3710_v37 }
 0x785   : > { %v6709_v32 = vpop.eup %6708  ;;  %6728 = vpow2.f32 %v5370_v15  ;;  %v3721_v0 = vmul.f32 %v6707_v2, %v8495_v48  ;;  %v8531_v46 = vadd.f32 %v3719_v40, %v3711_v58 }
 0x786   : > { %v6711_v54 = vpop.eup %6710  ;;  %6730 = vpow2.f32 %v5371_v50  ;;  %v3722_v6 = vmul.f32 %v6709_v32, %v8498_v18  ;;  %v8534_v8 = vadd.f32 %v3720_v3, %v3712_v11 }
 0x787   : > { %v6713_v44 = vpop.eup %6712  ;;  %6732 = vpow2.f32 %v5372_v49  ;;  %v8536_v4 = vadd.f32 %v3721_v0, %v3713_v26  ;;  %v3715_v24 = vmul.f32 %v6711_v54, %v8383_v41 }
 0x788   : > { %v6715_v12 = vpop.eup %6714  ;;  %6734 = vpow2.f32 %v5373_v16  ;;  %v8538_v63 = vadd.f32 %v3722_v6, %v3714_v38  ;;  %v3716_v37 = vmul.f32 %v6713_v44, %v8385_v19 }
 0x789   : > { %v6717_v59 = vpop.eup %6716  ;;  %6736 = vpow2.f32 %v5374_v13  ;;  %v3717_v2 = vmul.f32 %v6715_v12, %v8387_v20 }
 0x78a   : > { %v6719_v7 = vpop.eup %6718  ;;  %6738 = vtanh.f32 %v8528_v62  ;;  %v3723_v58 = vmul.f32 %v6717_v59, %v8501_v42 }
 0x78b   : > { %v6721_v36 = vpop.eup %6720  ;;  %6740 = vtanh.f32 %v8531_v46  ;;  %v3724_v11 = vmul.f32 %v6719_v7, %v8504_v55 }
 0x78c   : > { %v6723_v48 = vpop.eup %6722  ;;  %6742 = vtanh.f32 %v8534_v8  ;;  %v3725_v41 = vmul.f32 %v6721_v36, %v8507_v28  ;;  %v8551_v40 = vadd.f32 %v3723_v58, %v3715_v24 }
 0x78d   : > { %v6725_v31 = vpop.eup %6724  ;;  %v3686_v39 = vadd.f32 1.0, %v6723_v48  ;;  %6744 = vtanh.f32 %v8536_v4  ;;  %v8553_v54 = vadd.f32 %v3724_v11, %v3716_v37 }
 0x78e   : > { %v6727_v18 = vpop.eup %6726  ;;  %v3687_v30 = vadd.f32 1.0, %v6725_v31  ;;  %6746 = vtanh.f32 %v8538_v63  ;;  %v8555_v20 = vadd.f32 %v3725_v41, %v3717_v2 }
 0x78f   : > { %v6729_v17 = vpop.eup %6728  ;;  %v3688_v53 = vadd.f32 1.0, %v6727_v18  ;;  %6748 = vrcp.f32 %v3686_v39 }
 0x790   : > { %v6731_v15 = vpop.eup %6730  ;;  %v3689_v50 = vadd.f32 1.0, %v6729_v17  ;;  %6750 = vrcp.f32 %v3687_v30 }
 0x791   : > { %v6733_v57 = vpop.eup %6732  ;;  %v3690_v49 = vadd.f32 1.0, %v6731_v15  ;;  %6752 = vrcp.f32 %v3688_v53 }
 0x792   : > { %v6735_v16 = vpop.eup %6734  ;;  %v3691_v45 = vadd.f32 1.0, %v6733_v57  ;;  %6754 = vrcp.f32 %v3689_v50 }
 0x793   : > { %v6737_v32 = vpop.eup %6736  ;;  %v3692_v13 = vadd.f32 1.0, %v6735_v16  ;;  %6756 = vrcp.f32 %v3690_v49 }
 0x794   : > { %v6739_v19 = vpop.eup %6738  ;;  %v3693_v26 = vadd.f32 1.0, %v6737_v32  ;;  %6758 = vrcp.f32 %v3691_v45 }
 0x795   : > { %v6741_v42 = vpop.eup %6740  ;;  %6760 = vrcp.f32 %v3692_v13 }
 0x796   : > { %v6743_v3 = vpop.eup %6742  ;;  %6762 = vrcp.f32 %v3693_v26 }
 0x797   : > { %v6745_v55 = vpop.eup %6744  ;;  %6764 = vtanh.f32 %v8551_v40 }
 0x798   : > { %v6747_v38 = vpop.eup %6746  ;;  %6766 = vtanh.f32 %v8553_v54 }
 0x799   : > { %v6749_v28 = vpop.eup %6748  ;;  %6768 = vtanh.f32 %v8555_v20 }
 0x79a   : > { %v6751_v44 = vpop.eup %6750  ;;  %v3742_v0 = vmul.f32 %v6749_v28, %v6739_v19 }
 0x79b   : > { %v6753_v12 = vpop.eup %6752  ;;  %v3743_v6 = vmul.f32 %v6751_v44, %v6741_v42 }
 0x79c   : > { %v6755_v59 = vpop.eup %6754  ;;  %v3744_v7 = vmul.f32 %v6753_v12, %v6743_v3  ;;  %3750 = vst [vmem:[%s7265_s17 + $0x5] sm:$0x1] %v3742_v0 }
 0x79d   : > { %v6757_v36 = vpop.eup %6756  ;;  %v3745_v48 = vmul.f32 %v6755_v59, %v6745_v55  ;;  %3751 = vst [vmem:[%s7265_s17 + $0xd] sm:$0x1] %v3743_v6  ;;  %v3782_v31 = vcombine.low %v3742_v0, %v3743_v6  ;;  %v5375_v6 = vld [vmem:[%s7263_s16 + $0x6] ss:$8 sm:$0xf] }
 0x79e   : > { %v6759_v39 = vpop.eup %6758  ;;  %v3746_v18 = vmul.f32 %v6757_v36, %v6747_v38  ;;  %3752 = vst [vmem:[%s7265_s17 + $0x15] sm:$0x1] %v3744_v7  ;;  %v5376_v59 = vld [vmem:[%s7263_s16 + $0x26] ss:$8 sm:$0xf] }
 0x79f   : > { %v6761_v30 = vpop.eup %6760  ;;  %3753 = vst [vmem:[%s7265_s17 + $0x1d] sm:$0x1] %v3745_v48  ;;  %v3783_v17 = vcombine.low %v3744_v7, %v3745_v48  ;;  %v3792_v15 = vrot.slane %v3782_v31, %v7600_v29  ;;  %v5377_v7 = vld [vmem:[%s7263_s16 + $0x46] ss:$8 sm:$0xf] }
 0x7a0   : > { %v6763_v53 = vpop.eup %6762  ;;  %3754 = vst [vmem:[%s7265_s17 + $0x25] sm:$0x1] %v3746_v18  ;;  %v5379_v36 = vld [vmem:[%s7263_s16 + $0x86] ss:$8 sm:$0xf] }
 0x7a1   : > { %v6765_v24 = vpop.eup %6764  ;;  %v3799_v50 = vrot.slane %v3783_v17, %v7600_v29  ;;  %v5380_v17 = vld [vmem:[%s7263_s16 + $0xa6] ss:$8 sm:$0xf] }
 0x7a2   : > { %v6767_v37 = vpop.eup %6766  ;;  %v3747_v57 = vmul.f32 %v6765_v24, %v6759_v39 }
 0x7a3   : > { %v6769_v49 = vpop.eup %6768  ;;  %v3748_v58 = vmul.f32 %v6767_v37, %v6761_v30  ;;  %v3814_v2 = vcombine.low %v3792_v15, %v3799_v50  ;;  %v5378_v30 = vld [vmem:[%s7263_s16 + $0x66] ss:$8 sm:$0xf] }
 0x7a4   : > { %v3749_v16 = vmul.f32 %v6769_v49, %v6763_v53  ;;  %3755 = vst [vmem:[%s7265_s17 + $0x2d] sm:$0x1] %v3747_v57  ;;  %v3784_v45 = vcombine.low %v3746_v18, %v3747_v57  ;;  %v5381_v53 = vld [vmem:[%s7263_s16 + $0xc6] ss:$8 sm:$0xf] }
 0x7a5   : > { %3756 = vst [vmem:[%s7265_s17 + $0x35] sm:$0x1] %v3748_v58  ;;  %v3822_v19 = vrot.slane %v3814_v2, %v7600_v29  ;;  %v5382_v57 = vld [vmem:[%s7263_s16 + $0xe6] ss:$8 sm:$0xf] }
 0x7a6   : > { %3757 = vst [vmem:[%s7265_s17 + $0x3d] sm:$0x1] %v3749_v16  ;;  %v3785_v11 = vcombine.low %v3748_v58, %v3749_v16  ;;  %v3806_v32 = vrot.slane %v3784_v45, %v7600_v29 }
 0x7a8   : > { %v3813_v13 = vrot.slane %v3785_v11, %v7600_v29 }
 0x7aa   : > { %v3815_v41 = vcombine.low %v3806_v32, %v3813_v13 }
 0x7ac   : > { %v3829_v26 = vrot.slane %v3815_v41, %v7600_v29 }
 0x7ae   : > { %v3830_v42 = vcombine.low %v3822_v19, %v3829_v26 }
 0x7b0   : > { %3897 = vmatmul.mubr.f32.vlgmr.msra.gmra.mrb[12].mxu0 %v3830_v42  ;;  %3968 = vmatmul.mubr.f32.vlgmr.msra.gmra.mrb[12].mxu1 %v3830_v42 }
 0x7b1   : > { %5900 = vmatpush1.bf16.msra.mxu0 %v7298_v43  ;;  %5932 = vmatpush1.bf16.msra.mxu1 %v7310_v47  ;;  %v9045_v43 = vld [vmem:[#allocation14_spill] sm:$0xff]  ;;  %v9046_v47 = vld [vmem:[#allocation15_spill] sm:$0xff] }
 0x7b2   : > { %5902 = vmatprep.subr.bf16.mxu0 %v7323_v51  ;;  %5934 = vmatprep.subr.bf16.mxu1 %v7325_v52  ;;  %v9047_v51 = vld [vmem:[#allocation16_spill] sm:$0xff]  ;;  %v9048_v52 = vld [vmem:[#allocation17_spill] sm:$0xff] }
 0x7b3   : > { %4456 = vmatprep.mubr.f32.mxu0 %v8981_v25  ;;  %4527 = vmatprep.mubr.f32.mxu1 %v8981_v25 }
 0x7b5   : > { %5904 = vmatpush1.bf16.msra.mxu0 %v7337_v56  ;;  %5936 = vmatpush1.bf16.msra.mxu1 %v7350_v60  ;;  %v9049_v56 = vld [vmem:[#allocation18_spill] sm:$0xff]  ;;  %v9050_v60 = vld [vmem:[#allocation19_spill] sm:$0xff] }
 0x7b6   : > { %5906 = vmatprep.subr.bf16.mxu0 %v7352_v61  ;;  %5938 = vmatprep.subr.bf16.mxu1 %v7363_v1  ;;  %v9051_v61 = vld [vmem:[#allocation20_spill] sm:$0xff]  ;;  %v9052_v1 = vld [vmem:[#allocation21_spill] sm:$0xff] }
 0x7b9   : > { %5908 = vmatpush1.bf16.msra.mxu0 %v7375_v5  ;;  %5940 = vmatpush1.bf16.msra.mxu1 %v7388_v9  ;;  %v9053_v5 = vld [vmem:[#allocation22_spill] sm:$0xff]  ;;  %v9054_v9 = vld [vmem:[#allocation23_spill] sm:$0xff] }
 0x7ba   : > { %5910 = vmatprep.subr.bf16.mxu0 %v7390_v10  ;;  %5942 = vmatprep.subr.bf16.mxu1 %v7402_v14  ;;  %v9055_v10 = vld [vmem:[#allocation24_spill] sm:$0xff] }
 0x7bd   : > { %5912 = vmatpush1.bf16.msra.mxu0 %v7423_v21  ;;  %5944 = vmatpush1.bf16.msra.mxu1 %v7427_v22 }
 0x7be   : > { %5914 = vmatprep.subr.bf16.mxu0 %v7429_v23  ;;  %5946 = vmatprep.subr.bf16.mxu1 %v7441_v27 }
 0x7c1   : > { %5916 = vmatpush1.bf16.msra.mxu0 %v7459_v33  ;;  %5948 = vmatpush1.bf16.msra.mxu1 %v7463_v34 }
 0x7c2   : > { %5918 = vmatprep.subr.bf16.mxu0 %v7465_v35  ;;  %5950 = vmatprep.subr.bf16.mxu1 %v9045_v43 }
 0x7c5   : > { %5920 = vmatpush1.bf16.msra.mxu0 %v9046_v47  ;;  %5952 = vmatpush1.bf16.msra.mxu1 %v9047_v51 }
 0x7c6   : > { %5922 = vmatprep.subr.bf16.mxu0 %v9048_v52  ;;  %5954 = vmatprep.subr.bf16.mxu1 %v9049_v56 }
 0x7c9   : > { %5924 = vmatpush1.bf16.msra.mxu0 %v9050_v60  ;;  %5956 = vmatpush1.bf16.msra.mxu1 %v9051_v61 }
 0x7ca   : > { %5926 = vmatprep.subr.bf16.mxu0 %v9052_v1  ;;  %5958 = vmatprep.subr.bf16.mxu1 %v9053_v5 }
 0x7cd   : > { %5928 = vmatpush1.bf16.msra.mxu0 %v9054_v9  ;;  %5960 = vmatpush1.bf16.msra.mxu1 %v9055_v10 }
 0x883   : > { %v3898_v14 = vpop.f32.mrb[12].mxu0  ;;  %v3969_v21 = vpop.f32.mrb[12].mxu1 }
 0x884   : > { %v3900_v22 = vpop.f32.mrb[13].mxu0  ;;  %v3971_v23 = vpop.f32.mrb[13].mxu1 }
 0x885   : > { %v3978_v27 = vcombine.low %v3898_v14, %v3900_v22  ;;  %v3979_v33 = vcombine.high %v3898_v14, %v3900_v22  ;;  %v3980_v34 = vcombine.low %v3969_v21, %v3971_v23  ;;  %v3981_v35 = vcombine.high %v3969_v21, %v3971_v23 }
 0x887   : > { %v3988_v25 = vrot.slane %v3978_v27, %v7600_v29  ;;  %v3995_v3 = vrot.slane %v3979_v33, %v7600_v29  ;;  %v4002_v55 = vrot.slane %v3980_v34, %v7600_v29  ;;  %v4009_v38 = vrot.slane %v3981_v35, %v7600_v29 }
 0x889   : > { %v4010_v28 = vcombine.low %v3988_v25, %v4002_v55  ;;  %v4011_v44 = vcombine.high %v3988_v25, %v4002_v55  ;;  %v4012_v0 = vcombine.low %v3995_v3, %v4009_v38  ;;  %v4013_v12 = vcombine.high %v3995_v3, %v4009_v38 }
 0x88b   : > { %v4020_v48 = vrot.slane %v4010_v28, %v7600_v29  ;;  %v4027_v31 = vrot.slane %v4012_v0, %v7600_v29  ;;  %v4034_v39 = vrot.slane %v4011_v44, %v7600_v29  ;;  %v4041_v18 = vrot.slane %v4013_v12, %v7600_v29 }
 0x88d   : > { %v4042_v24 = vcombine.high %v4020_v48, %v4020_v48  ;;  %v4043_v15 = vcombine.high %v4027_v31, %v4027_v31  ;;  %v4044_v50 = vcombine.high %v4034_v39, %v4034_v39  ;;  %v4045_v37 = vcombine.high %v4041_v18, %v4041_v18 }
 0x88e   : > { %v8622_v49 = vadd.f32 %v5375_v6, %v4020_v48  ;;  %v8624_v58 = vadd.f32 %v5376_v59, %v4034_v39  ;;  %v8626_v2 = vadd.f32 %v5379_v36, %v4027_v31  ;;  %v8632_v11 = vadd.f32 %v5380_v17, %v4041_v18 }
 0x88f   : > { %v8628_v16 = vadd.f32 %v5377_v7, %v4042_v24  ;;  %v8630_v45 = vadd.f32 %v5378_v30, %v4044_v50  ;;  %v8634_v32 = vadd.f32 %v5381_v53, %v4043_v15  ;;  %v8638_v19 = vadd.f32 %v5382_v57, %v4045_v37 }
 0x890   : > { %v5383_v13 = vmul.f32 -1.442695, %v8622_v49  ;;  %v5384_v41 = vmul.f32 -1.442695, %v8624_v58  ;;  %v5387_v43 = vmul.f32 -1.442695, %v8626_v2 }
 0x891   : > { %v5385_v26 = vmul.f32 -1.442695, %v8628_v16  ;;  %v5386_v42 = vmul.f32 -1.442695, %v8630_v45  ;;  %v4118_v47 = vrot.slane %v8622_v49, 1  ;;  %v4119_v52 = vrot.slane %v8624_v58, 1 }
 0x892   : > { %6770 = vpow2.f32 %v5383_v13  ;;  %v5388_v51 = vmul.f32 -1.442695, %v8632_v11  ;;  %v5389_v56 = vmul.f32 -1.442695, %v8634_v32  ;;  %v4120_v60 = vrot.slane %v8628_v16, 1 }
 0x893   : > { %6772 = vpow2.f32 %v5384_v41  ;;  %v5390_v61 = vmul.f32 -1.442695, %v8638_v19  ;;  %v4121_v1 = vrot.slane %v8630_v45, 1  ;;  %v4122_v5 = vrot.slane %v8626_v2, 1 }
 0x894   : > { %6774 = vpow2.f32 %v5385_v26  ;;  %v5391_v9 = vmul.f32 -1.442695, %v4118_v47  ;;  %v5392_v10 = vmul.f32 -1.442695, %v4119_v52  ;;  %v5393_v14 = vmul.f32 -1.442695, %v4120_v60 }
 0x895   : > { %6776 = vpow2.f32 %v5386_v42  ;;  %v5394_v21 = vmul.f32 -1.442695, %v4121_v1  ;;  %v5395_v22 = vmul.f32 -1.442695, %v4122_v5  ;;  %v4123_v55 = vrot.slane %v8632_v11, 1 }
 0x896   : > { %6778 = vpow2.f32 %v5387_v43  ;;  %v4124_v44 = vrot.slane %v8634_v32, 1  ;;  %v4125_v6 = vrot.slane %v8638_v19, 1  ;;  %v4185_v5 = vrot.slane %v8630_v45, 2 }
 0x897   : > { %6780 = vpow2.f32 %v5388_v51  ;;  %v5396_v31 = vmul.f32 -1.442695, %v4123_v55  ;;  %v4182_v51 = vrot.slane %v8622_v49, 2 }
 0x898   : > { %6782 = vpow2.f32 %v5389_v56  ;;  %v5397_v30 = vmul.f32 -1.442695, %v4124_v44  ;;  %v5398_v53 = vmul.f32 -1.442695, %v4125_v6  ;;  %v4183_v56 = vrot.slane %v8624_v58, 2 }
 0x899   : > { %6784 = vpow2.f32 %v5390_v61  ;;  %v4184_v61 = vrot.slane %v8628_v16, 2  ;;  %v4210_v6 = vrot.slane %v8626_v2, 3 }
 0x89a   : > { %6786 = vpow2.f32 %v5391_v9 }
 0x89b   : > { %6788 = vpow2.f32 %v5392_v10  ;;  %v4186_v10 = vrot.slane %v8626_v2, 2 }
 0x89c   : > { %v6771_v23 = vpop.eup %6770  ;;  %6790 = vpow2.f32 %v5393_v14 }
 0x89d   : > { %v6773_v27 = vpop.eup %6772  ;;  %v4086_v33 = vadd.f32 1.0, %v6771_v23  ;;  %6792 = vpow2.f32 %v5394_v21 }
 0x89e   : > { %v6775_v34 = vpop.eup %6774  ;;  %v4087_v35 = vadd.f32 1.0, %v6773_v27  ;;  %6794 = vpow2.f32 %v5395_v22  ;;  %v4206_v27 = vrot.slane %v8622_v49, 3  ;;  %v4209_v49 = vrot.slane %v8630_v45, 3 }
 0x89f   : > { %v6777_v25 = vpop.eup %6776  ;;  %v4088_v3 = vadd.f32 1.0, %v6775_v34  ;;  %6796 = vrcp.f32 %v4086_v33 }
 0x8a0   : > { %v6779_v38 = vpop.eup %6778  ;;  %v4089_v28 = vadd.f32 1.0, %v6777_v25  ;;  %6798 = vrcp.f32 %v4087_v35  ;;  %v4187_v35 = vrot.slane %v8632_v11, 2  ;;  %v4207_v25 = vrot.slane %v8624_v58, 3 }
 0x8a1   : > { %v6781_v0 = vpop.eup %6780  ;;  %v4090_v12 = vadd.f32 1.0, %v6779_v38  ;;  %6800 = vrcp.f32 %v4088_v3  ;;  %v4188_v38 = vrot.slane %v8634_v32, 2  ;;  %v4211_v58 = vrot.slane %v8632_v11, 3 }
 0x8a2   : > { %v6783_v59 = vpop.eup %6782  ;;  %v4091_v7 = vadd.f32 1.0, %v6781_v0  ;;  %6802 = vrcp.f32 %v4089_v28  ;;  %v4208_v28 = vrot.slane %v8628_v16, 3  ;;  %v4189_v0 = vrot.slane %v8638_v19, 2 }
 0x8a3   : > { %v6785_v36 = vpop.eup %6784  ;;  %v4092_v48 = vadd.f32 1.0, %v6783_v59  ;;  %6804 = vrcp.f32 %v4090_v12  ;;  %v5399_v59 = vmul.f32 -1.442695, %v4206_v27  ;;  %v4212_v16 = vrot.slane %v8634_v32, 3 }
 0x8a4   : > { %v6787_v39 = vpop.eup %6786  ;;  %v4093_v18 = vadd.f32 1.0, %v6785_v36  ;;  %6806 = vrcp.f32 %v4091_v7  ;;  %v5400_v36 = vmul.f32 -1.442695, %v4207_v25  ;;  %v5402_v45 = vmul.f32 -1.442695, %v4209_v49 }
 0x8a5   : > { %v6789_v17 = vpop.eup %6788  ;;  %6808 = vrcp.f32 %v4092_v48  ;;  %v4158_v15 = vadd.f32 1.0, %v6787_v39 }
 0x8a6   : > { %v6791_v24 = vpop.eup %6790  ;;  %6810 = vrcp.f32 %v4093_v18  ;;  %v4159_v37 = vadd.f32 1.0, %v6789_v17  ;;  %v4213_v18 = vrot.slane %v8638_v19, 3  ;;  %v5403_v17 = vmul.f32 -1.442695, %v4210_v6 }
 0x8a7   : > { %v6793_v50 = vpop.eup %6792  ;;  %6812 = vpow2.f32 %v5396_v31  ;;  %v4160_v13 = vadd.f32 1.0, %v6791_v24  ;;  %v5401_v31 = vmul.f32 -1.442695, %v4208_v28  ;;  %v5404_v24 = vmul.f32 -1.442695, %v4211_v58 }
 0x8a8   : > { %v6795_v57 = vpop.eup %6794  ;;  %6814 = vpow2.f32 %v5397_v30  ;;  %v4161_v26 = vadd.f32 1.0, %v6793_v50  ;;  %v5405_v50 = vmul.f32 -1.442695, %v4212_v16  ;;  %v5406_v19 = vmul.f32 -1.442695, %v4213_v18 }
 0x8a9   : > { %v8654_v41 = vpop.eup %6796  ;;  %6816 = vpow2.f32 %v5398_v53  ;;  %v4162_v43 = vadd.f32 1.0, %v6795_v57 }
 0x8aa   : > { %v8656_v42 = vpop.eup %6798  ;;  %6818 = vrcp.f32 %v4158_v15 }
 0x8ab   : > { %v8658_v47 = vpop.eup %6800  ;;  %6820 = vrcp.f32 %v4159_v37 }
 0x8ac   : > { %v8661_v52 = vpop.eup %6802  ;;  %6822 = vrcp.f32 %v4160_v13 }
 0x8ad   : > { %v8664_v60 = vpop.eup %6804  ;;  %6824 = vrcp.f32 %v4161_v26 }
 0x8ae   : > { %v8667_v1 = vpop.eup %6806  ;;  %6826 = vrcp.f32 %v4162_v43 }
 0x8af   : > { %v8670_v9 = vpop.eup %6808  ;;  %6828 = vtanh.f32 %v4182_v51 }
 0x8b0   : > { %v8673_v14 = vpop.eup %6810  ;;  %6830 = vtanh.f32 %v4183_v56 }
 0x8b1   : > { %v6813_v21 = vpop.eup %6812  ;;  %6832 = vtanh.f32 %v4184_v61 }
 0x8b2   : > { %v6815_v22 = vpop.eup %6814  ;;  %v4163_v23 = vadd.f32 1.0, %v6813_v21  ;;  %6834 = vtanh.f32 %v4185_v5 }
 0x8b3   : > { %v6817_v33 = vpop.eup %6816  ;;  %v4164_v34 = vadd.f32 1.0, %v6815_v22  ;;  %6836 = vtanh.f32 %v4186_v10 }
 0x8b4   : > { %v6819_v3 = vpop.eup %6818  ;;  %v4165_v55 = vadd.f32 1.0, %v6817_v33  ;;  %6838 = vrcp.f32 %v4163_v23 }
 0x8b5   : > { %v6821_v44 = vpop.eup %6820  ;;  %6840 = vrcp.f32 %v4164_v34  ;;  %v4270_v2 = vmul.f32 %v6819_v3, %v8528_v62 }
 0x8b6   : > { %v6823_v12 = vpop.eup %6822  ;;  %6842 = vrcp.f32 %v4165_v55  ;;  %v4271_v11 = vmul.f32 %v6821_v44, %v8531_v46 }
 0x8b7   : > { %v6825_v7 = vpop.eup %6824  ;;  %6844 = vtanh.f32 %v4187_v35  ;;  %v4272_v37 = vmul.f32 %v6823_v12, %v8534_v8 }
 0x8b8   : > { %v6827_v48 = vpop.eup %6826  ;;  %6846 = vtanh.f32 %v4188_v38  ;;  %v4273_v26 = vmul.f32 %v6825_v7, %v8536_v4 }
 0x8b9   : > { %v6829_v39 = vpop.eup %6828  ;;  %6848 = vtanh.f32 %v4189_v0  ;;  %v4274_v46 = vmul.f32 %v6827_v48, %v8538_v63 }
 0x8ba   : > { %v6831_v30 = vpop.eup %6830  ;;  %6850 = vpow2.f32 %v5399_v59  ;;  %v4278_v32 = vmul.f32 %v6829_v39, %v8654_v41 }
 0x8bb   : > { %v6833_v53 = vpop.eup %6832  ;;  %6852 = vpow2.f32 %v5400_v36  ;;  %v4279_v13 = vmul.f32 %v6831_v30, %v8656_v42 }
 0x8bc   : > { %v6835_v15 = vpop.eup %6834  ;;  %6854 = vpow2.f32 %v5401_v31  ;;  %v4280_v43 = vmul.f32 %v6833_v53, %v8658_v47  ;;  %v8694_v51 = vadd.f32 %v4278_v32, %v4270_v2 }
 0x8bd   : > { %v6837_v57 = vpop.eup %6836  ;;  %6856 = vpow2.f32 %v5402_v45  ;;  %v4281_v41 = vmul.f32 %v6835_v15, %v8661_v52  ;;  %v8697_v8 = vadd.f32 %v4279_v13, %v4271_v11 }
 0x8be   : > { %v6839_v62 = vpop.eup %6838  ;;  %6858 = vpow2.f32 %v5403_v17  ;;  %v4282_v42 = vmul.f32 %v6837_v57, %v8664_v60  ;;  %v8700_v5 = vadd.f32 %v4280_v43, %v4272_v37 }
 0x8bf   : > { %v6841_v56 = vpop.eup %6840  ;;  %6860 = vpow2.f32 %v5404_v24  ;;  %v8702_v10 = vadd.f32 %v4281_v41, %v4273_v26  ;;  %v4275_v35 = vmul.f32 %v6839_v62, %v8551_v40 }
 0x8c0   : > { %v6843_v61 = vpop.eup %6842  ;;  %6862 = vpow2.f32 %v5405_v50  ;;  %v8704_v63 = vadd.f32 %v4282_v42, %v4274_v46  ;;  %v4276_v55 = vmul.f32 %v6841_v56, %v8553_v54 }
 0x8c1   : > { %v6845_v4 = vpop.eup %6844  ;;  %6864 = vpow2.f32 %v5406_v19  ;;  %v4277_v0 = vmul.f32 %v6843_v61, %v8555_v20 }
 0x8c2   : > { %v6847_v47 = vpop.eup %6846  ;;  %6866 = vtanh.f32 %v8694_v51  ;;  %v4283_v44 = vmul.f32 %v6845_v4, %v8667_v1 }
 0x8c3   : > { %v6849_v21 = vpop.eup %6848  ;;  %6868 = vtanh.f32 %v8697_v8  ;;  %v4284_v6 = vmul.f32 %v6847_v47, %v8670_v9 }
 0x8c4   : > { %v6851_v52 = vpop.eup %6850  ;;  %6870 = vtanh.f32 %v8700_v5  ;;  %v4285_v40 = vmul.f32 %v6849_v21, %v8673_v14  ;;  %v8717_v58 = vadd.f32 %v4283_v44, %v4275_v35 }
 0x8c5   : > { %v6853_v22 = vpop.eup %6852  ;;  %v4246_v23 = vadd.f32 1.0, %v6851_v52  ;;  %6872 = vtanh.f32 %v8702_v10  ;;  %v8719_v48 = vadd.f32 %v4284_v6, %v4276_v55 }
 0x8c6   : > { %v6855_v60 = vpop.eup %6854  ;;  %v4247_v27 = vadd.f32 1.0, %v6853_v22  ;;  %6874 = vtanh.f32 %v8704_v63  ;;  %v8721_v20 = vadd.f32 %v4285_v40, %v4277_v0  ;;  %v5407_v40 = vld [vmem:[%s7263_s16 + $0x7] ss:$8 sm:$0xf] }
 0x8c7   : > { %v6857_v33 = vpop.eup %6856  ;;  %v4248_v34 = vadd.f32 1.0, %v6855_v60  ;;  %6876 = vrcp.f32 %v4246_v23 }
 0x8c8   : > { %v6859_v25 = vpop.eup %6858  ;;  %v4249_v3 = vadd.f32 1.0, %v6857_v33  ;;  %6878 = vrcp.f32 %v4247_v27 }
 0x8c9   : > { %v6861_v38 = vpop.eup %6860  ;;  %v4250_v28 = vadd.f32 1.0, %v6859_v25  ;;  %6880 = vrcp.f32 %v4248_v34 }
 0x8ca   : > { %v6863_v49 = vpop.eup %6862  ;;  %v4251_v12 = vadd.f32 1.0, %v6861_v38  ;;  %6882 = vrcp.f32 %v4249_v3 }
 0x8cb   : > { %v6865_v59 = vpop.eup %6864  ;;  %v4252_v7 = vadd.f32 1.0, %v6863_v49  ;;  %6884 = vrcp.f32 %v4250_v28 }
 0x8cc   : > { %v6867_v54 = vpop.eup %6866  ;;  %v4253_v36 = vadd.f32 1.0, %v6865_v59  ;;  %6886 = vrcp.f32 %v4251_v12 }
 0x8cd   : > { %v6869_v1 = vpop.eup %6868  ;;  %6888 = vrcp.f32 %v4252_v7 }
 0x8ce   : > { %v6871_v16 = vpop.eup %6870  ;;  %6890 = vrcp.f32 %v4253_v36  ;;  %v5409_v36 = vld [vmem:[%s7263_s16 + $0x47] ss:$8 sm:$0xf] }
 0x8cf   : > { %v6873_v9 = vpop.eup %6872  ;;  %6892 = vtanh.f32 %v8717_v58 }
 0x8d0   : > { %v6875_v31 = vpop.eup %6874  ;;  %6894 = vtanh.f32 %v8719_v48 }
 0x8d1   : > { %v6877_v14 = vpop.eup %6876  ;;  %6896 = vtanh.f32 %v8721_v20 }
 0x8d2   : > { %v6879_v39 = vpop.eup %6878  ;;  %v4302_v18 = vmul.f32 %v6877_v14, %v6867_v54  ;;  %v5408_v54 = vld [vmem:[%s7263_s16 + $0x27] ss:$8 sm:$0xf] }
 0x8d3   : > { %v6881_v45 = vpop.eup %6880  ;;  %v4303_v30 = vmul.f32 %v6879_v39, %v6869_v1  ;;  %v5411_v1 = vld [vmem:[%s7263_s16 + $0x87] ss:$8 sm:$0xf] }
 0x8d4   : > { %v6883_v17 = vpop.eup %6882  ;;  %v4304_v2 = vmul.f32 %v6881_v45, %v6871_v16  ;;  %4310 = vst [vmem:[%s7265_s17 + $0x6] sm:$0x1] %v4302_v18  ;;  %v5410_v39 = vld [vmem:[%s7263_s16 + $0x67] ss:$8 sm:$0xf] }
 0x8d5   : > { %v6885_v53 = vpop.eup %6884  ;;  %v4305_v24 = vmul.f32 %v6883_v17, %v6873_v9  ;;  %4311 = vst [vmem:[%s7265_s17 + $0xe] sm:$0x1] %v4303_v30  ;;  %v4342_v11 = vcombine.low %v4302_v18, %v4303_v30  ;;  %v5412_v18 = vld [vmem:[%s7263_s16 + $0xa7] ss:$8 sm:$0xf] }
 0x8d6   : > { %v6887_v15 = vpop.eup %6886  ;;  %v4306_v50 = vmul.f32 %v6885_v53, %v6875_v31  ;;  %4312 = vst [vmem:[%s7265_s17 + $0x16] sm:$0x1] %v4304_v2  ;;  %v5413_v45 = vld [vmem:[%s7263_s16 + $0xc7] ss:$8 sm:$0xf] }
 0x8d7   : > { %v6889_v32 = vpop.eup %6888  ;;  %4313 = vst [vmem:[%s7265_s17 + $0x1e] sm:$0x1] %v4305_v24  ;;  %v4343_v37 = vcombine.low %v4304_v2, %v4305_v24  ;;  %v4352_v13 = vrot.slane %v4342_v11, %v7600_v29  ;;  %v5414_v24 = vld [vmem:[%s7263_s16 + $0xe7] ss:$8 sm:$0xf] }
 0x8d8   : > { %v6891_v57 = vpop.eup %6890  ;;  %4314 = vst [vmem:[%s7265_s17 + $0x26] sm:$0x1] %v4306_v50 }
 0x8d9   : > { %v6893_v19 = vpop.eup %6892  ;;  %v4359_v26 = vrot.slane %v4343_v37, %v7600_v29 }
 0x8da   : > { %v6895_v62 = vpop.eup %6894  ;;  %v4307_v43 = vmul.f32 %v6893_v19, %v6887_v15 }
 0x8db   : > { %v6897_v46 = vpop.eup %6896  ;;  %v4308_v56 = vmul.f32 %v6895_v62, %v6889_v32  ;;  %v4374_v41 = vcombine.low %v4352_v13, %v4359_v26 }
 0x8dc   : > { %v4309_v61 = vmul.f32 %v6897_v46, %v6891_v57  ;;  %4315 = vst [vmem:[%s7265_s17 + $0x2e] sm:$0x1] %v4307_v43  ;;  %v4344_v42 = vcombine.low %v4306_v50, %v4307_v43 }
 0x8dd   : > { %4316 = vst [vmem:[%s7265_s17 + $0x36] sm:$0x1] %v4308_v56  ;;  %v4382_v22 = vrot.slane %v4374_v41, %v7600_v29 }
 0x8de   : > { %4317 = vst [vmem:[%s7265_s17 + $0x3e] sm:$0x1] %v4309_v61  ;;  %v4345_v4 = vcombine.low %v4308_v56, %v4309_v61  ;;  %v4366_v47 = vrot.slane %v4344_v42, %v7600_v29 }
 0x8e0   : > { %v4373_v21 = vrot.slane %v4345_v4, %v7600_v29 }
 0x8e2   : > { %v4375_v52 = vcombine.low %v4366_v47, %v4373_v21 }
 0x8e4   : > { %v4389_v23 = vrot.slane %v4375_v52, %v7600_v29 }
 0x8e6   : > { %v4390_v60 = vcombine.low %v4382_v22, %v4389_v23 }
 0x8e8   : > { %4457 = vmatmul.mubr.f32.vlgmr.msra.gmra.mrb[14].mxu0 %v4390_v60  ;;  %4528 = vmatmul.mubr.f32.vlgmr.msra.gmra.mrb[14].mxu1 %v4390_v60 }
 0x9bb   : > { %v4458_v27 = vpop.f32.mrb[14].mxu0  ;;  %v4529_v33 = vpop.f32.mrb[14].mxu1 }
 0x9bc   : > { %v4460_v34 = vpop.f32.mrb[15].mxu0  ;;  %v4531_v35 = vpop.f32.mrb[15].mxu1 }
 0x9bd   : > { %v4538_v25 = vcombine.low %v4458_v27, %v4460_v34  ;;  %v4539_v3 = vcombine.high %v4458_v27, %v4460_v34  ;;  %v4540_v55 = vcombine.low %v4529_v33, %v4531_v35  ;;  %v4541_v38 = vcombine.high %v4529_v33, %v4531_v35 }
 0x9bf   : > { %v4548_v28 = vrot.slane %v4538_v25, %v7600_v29  ;;  %v4555_v44 = vrot.slane %v4539_v3, %v7600_v29  ;;  %v4562_v0 = vrot.slane %v4540_v55, %v7600_v29  ;;  %v4569_v49 = vrot.slane %v4541_v38, %v7600_v29 }
 0x9c1   : > { %v4570_v12 = vcombine.low %v4548_v28, %v4562_v0  ;;  %v4571_v6 = vcombine.high %v4548_v28, %v4562_v0  ;;  %v4572_v59 = vcombine.low %v4555_v44, %v4569_v49  ;;  %v4573_v7 = vcombine.high %v4555_v44, %v4569_v49 }
 0x9c3   : > { %v4580_v16 = vrot.slane %v4570_v12, %v7600_v29  ;;  %v4587_v9 = vrot.slane %v4572_v59, %v7600_v29  ;;  %v4594_v31 = vrot.slane %v4571_v6, %v7600_v29  ;;  %v4601_v14 = vrot.slane %v4573_v7, %v7600_v29 }
 0x9c5   : > { %v4602_v30 = vcombine.high %v4580_v16, %v4580_v16  ;;  %v4603_v17 = vcombine.high %v4587_v9, %v4587_v9  ;;  %v4604_v2 = vcombine.high %v4594_v31, %v4594_v31  ;;  %v4605_v53 = vcombine.high %v4601_v14, %v4601_v14 }
 0x9c6   : > { %v8756_v11 = vadd.f32 %v5407_v40, %v4580_v16  ;;  %v8758_v15 = vadd.f32 %v5408_v54, %v4594_v31  ;;  %v8760_v50 = vadd.f32 %v5411_v1, %v4587_v9  ;;  %v8766_v57 = vadd.f32 %v5412_v18, %v4601_v14 }
 0x9c7   : > { %v8762_v32 = vadd.f32 %v5409_v36, %v4602_v30  ;;  %v8764_v37 = vadd.f32 %v5410_v39, %v4604_v2  ;;  %v8768_v19 = vadd.f32 %v5413_v45, %v4603_v17  ;;  %v8772_v62 = vadd.f32 %v5414_v24, %v4605_v53 }
 0x9c8   : > { %v5415_v13 = vmul.f32 -1.442695, %v8756_v11  ;;  %v5416_v26 = vmul.f32 -1.442695, %v8758_v15  ;;  %v5419_v56 = vmul.f32 -1.442695, %v8760_v50 }
 0x9c9   : > { %v5417_v43 = vmul.f32 -1.442695, %v8762_v32  ;;  %v5418_v46 = vmul.f32 -1.442695, %v8764_v37  ;;  %v4678_v41 = vrot.slane %v8756_v11, 1  ;;  %v4679_v42 = vrot.slane %v8758_v15, 1 }
 0x9ca   : > { %6898 = vpow2.f32 %v5415_v13  ;;  %v5420_v61 = vmul.f32 -1.442695, %v8766_v57  ;;  %v5421_v4 = vmul.f32 -1.442695, %v8768_v19  ;;  %v4680_v47 = vrot.slane %v8762_v32, 1 }
 0x9cb   : > { %6900 = vpow2.f32 %v5416_v26  ;;  %v5422_v21 = vmul.f32 -1.442695, %v8772_v62  ;;  %v4681_v52 = vrot.slane %v8764_v37, 1  ;;  %v4682_v22 = vrot.slane %v8760_v50, 1 }
 0x9cc   : > { %6902 = vpow2.f32 %v5417_v43  ;;  %v5423_v23 = vmul.f32 -1.442695, %v4678_v41  ;;  %v5424_v60 = vmul.f32 -1.442695, %v4679_v42  ;;  %v5425_v27 = vmul.f32 -1.442695, %v4680_v47 }
 0x9cd   : > { %6904 = vpow2.f32 %v5418_v46  ;;  %v5426_v33 = vmul.f32 -1.442695, %v4681_v52  ;;  %v5427_v34 = vmul.f32 -1.442695, %v4682_v22  ;;  %v4683_v0 = vrot.slane %v8766_v57, 1 }
 0x9ce   : > { %6906 = vpow2.f32 %v5419_v56  ;;  %v4684_v6 = vrot.slane %v8768_v19, 1  ;;  %v4685_v40 = vrot.slane %v8772_v62, 1  ;;  %v4745_v22 = vrot.slane %v8764_v37, 2 }
 0x9cf   : > { %6908 = vpow2.f32 %v5420_v61  ;;  %v5428_v9 = vmul.f32 -1.442695, %v4683_v0  ;;  %v4742_v61 = vrot.slane %v8756_v11, 2 }
 0x9d0   : > { %6910 = vpow2.f32 %v5421_v4  ;;  %v5429_v39 = vmul.f32 -1.442695, %v4684_v6  ;;  %v5430_v45 = vmul.f32 -1.442695, %v4685_v40  ;;  %v4743_v4 = vrot.slane %v8758_v15, 2 }
 0x9d1   : > { %6912 = vpow2.f32 %v5422_v21  ;;  %v4744_v21 = vrot.slane %v8762_v32, 2  ;;  %v4770_v40 = vrot.slane %v8760_v50, 3 }
 0x9d2   : > { %6914 = vpow2.f32 %v5423_v23 }
 0x9d3   : > { %6916 = vpow2.f32 %v5424_v60  ;;  %v4746_v60 = vrot.slane %v8760_v50, 2 }
 0x9d4   : > { %v6899_v35 = vpop.eup %6898  ;;  %6918 = vpow2.f32 %v5425_v27 }
 0x9d5   : > { %v6901_v25 = vpop.eup %6900  ;;  %v4646_v3 = vadd.f32 1.0, %v6899_v35  ;;  %6920 = vpow2.f32 %v5426_v33 }
 0x9d6   : > { %v6903_v55 = vpop.eup %6902  ;;  %v4647_v38 = vadd.f32 1.0, %v6901_v25  ;;  %6922 = vpow2.f32 %v5427_v34  ;;  %v4766_v25 = vrot.slane %v8756_v11, 3  ;;  %v4769_v11 = vrot.slane %v8764_v37, 3 }
 0x9d7   : > { %v6905_v28 = vpop.eup %6904  ;;  %v4648_v44 = vadd.f32 1.0, %v6903_v55  ;;  %6924 = vrcp.f32 %v4646_v3  ;;  %v4773_v37 = vrot.slane %v8772_v62, 3 }
 0x9d8   : > { %v6907_v49 = vpop.eup %6906  ;;  %v4649_v12 = vadd.f32 1.0, %v6905_v28  ;;  %6926 = vrcp.f32 %v4647_v38  ;;  %v4747_v38 = vrot.slane %v8766_v57, 2  ;;  %v4767_v28 = vrot.slane %v8758_v15, 3 }
 0x9d9   : > { %v6909_v59 = vpop.eup %6908  ;;  %v4650_v7 = vadd.f32 1.0, %v6907_v49  ;;  %6928 = vrcp.f32 %v4648_v44  ;;  %v4748_v49 = vrot.slane %v8768_v19, 2  ;;  %v4771_v15 = vrot.slane %v8766_v57, 3 }
 0x9da   : > { %v6911_v54 = vpop.eup %6910  ;;  %v4651_v36 = vadd.f32 1.0, %v6909_v59  ;;  %6930 = vrcp.f32 %v4649_v12  ;;  %v4768_v12 = vrot.slane %v8762_v32, 3  ;;  %v4749_v59 = vrot.slane %v8772_v62, 2 }
 0x9db   : > { %v6913_v1 = vpop.eup %6912  ;;  %v4652_v16 = vadd.f32 1.0, %v6911_v54  ;;  %6932 = vrcp.f32 %v4650_v7  ;;  %v5431_v54 = vmul.f32 -1.442695, %v4766_v25  ;;  %v4772_v32 = vrot.slane %v8768_v19, 3 }
 0x9dc   : > { %v6915_v31 = vpop.eup %6914  ;;  %v4653_v14 = vadd.f32 1.0, %v6913_v1  ;;  %6934 = vrcp.f32 %v4651_v36  ;;  %v5432_v1 = vmul.f32 -1.442695, %v4767_v28  ;;  %v5436_v19 = vmul.f32 -1.442695, %v4771_v15 }
 0x9dd   : > { %v6917_v18 = vpop.eup %6916  ;;  %6936 = vrcp.f32 %v4652_v16  ;;  %v4718_v17 = vadd.f32 1.0, %v6915_v31  ;;  %v5437_v62 = vmul.f32 -1.442695, %v4772_v32 }
 0x9de   : > { %v6919_v30 = vpop.eup %6918  ;;  %6938 = vrcp.f32 %v4653_v14  ;;  %v4719_v53 = vadd.f32 1.0, %v6917_v18 }
 0x9df   : > { %v6921_v2 = vpop.eup %6920  ;;  %6940 = vpow2.f32 %v5428_v9  ;;  %v4720_v13 = vadd.f32 1.0, %v6919_v30  ;;  %v5433_v9 = vmul.f32 -1.442695, %v4768_v12 }
 0x9e0   : > { %v6923_v24 = vpop.eup %6922  ;;  %6942 = vpow2.f32 %v5429_v39  ;;  %v4721_v43 = vadd.f32 1.0, %v6921_v2  ;;  %v5434_v39 = vmul.f32 -1.442695, %v4769_v11 }
 0x9e1   : > { %v8788_v26 = vpop.eup %6924  ;;  %6944 = vpow2.f32 %v5430_v45  ;;  %v4722_v56 = vadd.f32 1.0, %v6923_v24  ;;  %v5435_v45 = vmul.f32 -1.442695, %v4770_v40 }
 0x9e2   : > { %v8790_v46 = vpop.eup %6926  ;;  %6946 = vrcp.f32 %v4718_v17 }
 0x9e3   : > { %v8792_v41 = vpop.eup %6928  ;;  %6948 = vrcp.f32 %v4719_v53 }
 0x9e4   : > { %v8795_v42 = vpop.eup %6930  ;;  %6950 = vrcp.f32 %v4720_v13 }
 0x9e5   : > { %v8798_v47 = vpop.eup %6932  ;;  %6952 = vrcp.f32 %v4721_v43  ;;  %v5438_v43 = vmul.f32 -1.442695, %v4773_v37 }
 0x9e6   : > { %v8801_v52 = vpop.eup %6934  ;;  %6954 = vrcp.f32 %v4722_v56 }
 0x9e7   : > { %v8804_v23 = vpop.eup %6936  ;;  %6956 = vtanh.f32 %v4742_v61 }
 0x9e8   : > { %v8807_v27 = vpop.eup %6938  ;;  %6958 = vtanh.f32 %v4743_v4 }
 0x9e9   : > { %v6941_v33 = vpop.eup %6940  ;;  %6960 = vtanh.f32 %v4744_v21 }
 0x9ea   : > { %v6943_v34 = vpop.eup %6942  ;;  %v4723_v35 = vadd.f32 1.0, %v6941_v33  ;;  %6962 = vtanh.f32 %v4745_v22 }
 0x9eb   : > { %v6945_v3 = vpop.eup %6944  ;;  %v4724_v55 = vadd.f32 1.0, %v6943_v34  ;;  %6964 = vtanh.f32 %v4746_v60 }
 0x9ec   : > { %v6947_v44 = vpop.eup %6946  ;;  %v4725_v0 = vadd.f32 1.0, %v6945_v3  ;;  %6966 = vrcp.f32 %v4723_v35 }
 0x9ed   : > { %v6949_v6 = vpop.eup %6948  ;;  %6968 = vrcp.f32 %v4724_v55  ;;  %v4830_v31 = vmul.f32 %v6947_v44, %v8694_v51 }
 0x9ee   : > { %v6951_v7 = vpop.eup %6950  ;;  %6970 = vrcp.f32 %v4725_v0  ;;  %v4831_v50 = vmul.f32 %v6949_v6, %v8697_v8 }
 0x9ef   : > { %v6953_v36 = vpop.eup %6952  ;;  %6972 = vtanh.f32 %v4747_v38  ;;  %v4832_v57 = vmul.f32 %v6951_v7, %v8700_v5 }
 0x9f0   : > { %v6955_v16 = vpop.eup %6954  ;;  %6974 = vtanh.f32 %v4748_v49  ;;  %v4833_v2 = vmul.f32 %v6953_v36, %v8702_v10 }
 0x9f1   : > { %v6957_v14 = vpop.eup %6956  ;;  %6976 = vtanh.f32 %v4749_v59  ;;  %v4834_v61 = vmul.f32 %v6955_v16, %v8704_v63 }
 0x9f2   : > { %v6959_v18 = vpop.eup %6958  ;;  %6978 = vpow2.f32 %v5431_v54  ;;  %v4838_v30 = vmul.f32 %v6957_v14, %v8788_v26 }
 0x9f3   : > { %v6961_v17 = vpop.eup %6960  ;;  %6980 = vpow2.f32 %v5432_v1  ;;  %v4839_v51 = vmul.f32 %v6959_v18, %v8790_v46 }
 0x9f4   : > { %v6963_v53 = vpop.eup %6962  ;;  %6982 = vpow2.f32 %v5433_v9  ;;  %v4840_v24 = vmul.f32 %v6961_v17, %v8792_v41  ;;  %v4846_v8 = vadd.f32 %v4838_v30, %v4830_v31 }
 0x9f5   : > { %v6965_v13 = vpop.eup %6964  ;;  %6984 = vpow2.f32 %v5434_v39  ;;  %v4841_v5 = vmul.f32 %v6963_v53, %v8795_v42  ;;  %v4847_v56 = vadd.f32 %v4839_v51, %v4831_v50 }
 0x9f6   : > { %v6967_v26 = vpop.eup %6966  ;;  %6986 = vpow2.f32 %v5435_v45  ;;  %v4848_v4 = vadd.f32 %v4840_v24, %v4832_v57  ;;  %v4842_v60 = vmul.f32 %v6965_v13, %v8798_v47 }
 0x9f7   : > { %v6969_v10 = vpop.eup %6968  ;;  %6988 = vpow2.f32 %v5436_v19  ;;  %v4849_v46 = vadd.f32 %v4841_v5, %v4833_v2  ;;  %v4945_v21 = vcombine.low %v4846_v8, %v4847_v56  ;;  %v4835_v41 = vmul.f32 %v6967_v26, %v8717_v58 }
 0x9f8   : > { %v6971_v22 = vpop.eup %6970  ;;  %6990 = vpow2.f32 %v5437_v62  ;;  %v4836_v42 = vmul.f32 %v6969_v10, %v8719_v48  ;;  %v4850_v3 = vadd.f32 %v4842_v60, %v4834_v61 }
 0x9f9   : > { %v6973_v33 = vpop.eup %6972  ;;  %6992 = vpow2.f32 %v5438_v43  ;;  %v4946_v34 = vcombine.low %v4848_v4, %v4849_v46  ;;  %v4837_v25 = vmul.f32 %v6971_v22, %v8721_v20  ;;  %v4955_v58 = vrot.slane %v4945_v21, %v7600_v29 }
 0x9fa   : > { %v6975_v35 = vpop.eup %6974  ;;  %v4843_v63 = vmul.f32 %v6973_v33, %v8801_v52  ;;  %6994 = vtanh.f32 %v4846_v8 }
 0x9fb   : > { %v6977_v55 = vpop.eup %6976  ;;  %v4844_v38 = vmul.f32 %v6975_v35, %v8804_v23  ;;  %6996 = vtanh.f32 %v4847_v56  ;;  %v4962_v47 = vrot.slane %v4946_v34, %v7600_v29 }
 0x9fc   : > { %v6979_v28 = vpop.eup %6978  ;;  %v4845_v44 = vmul.f32 %v6977_v55, %v8807_v27  ;;  %v4851_v48 = vadd.f32 %v4843_v63, %v4835_v41  ;;  %6998 = vtanh.f32 %v4848_v4 }
 0x9fd   : > { %v6981_v0 = vpop.eup %6980  ;;  %v4806_v49 = vadd.f32 1.0, %v6979_v28  ;;  %v4852_v20 = vadd.f32 %v4844_v38, %v4836_v42  ;;  %7000 = vtanh.f32 %v4849_v46  ;;  %v4977_v52 = vcombine.low %v4955_v58, %v4962_v47 }
 0x9fe   : > { %v6983_v12 = vpop.eup %6982  ;;  %v4807_v6 = vadd.f32 1.0, %v6981_v0  ;;  %v4853_v59 = vadd.f32 %v4845_v44, %v4837_v25  ;;  %7002 = vtanh.f32 %v4850_v3  ;;  %v4947_v23 = vcombine.low %v4850_v3, %v4851_v48 }
 0x9ff   : > { %v6985_v11 = vpop.eup %6984  ;;  %v4808_v7 = vadd.f32 1.0, %v6983_v12  ;;  %7004 = vrcp.f32 %v4806_v49  ;;  %v4985_v18 = vrot.slane %v4977_v52, %v7600_v29 }
 0xa00   : > { %v6987_v40 = vpop.eup %6986  ;;  %v4809_v54 = vadd.f32 1.0, %v6985_v11  ;;  %7006 = vrcp.f32 %v4807_v6  ;;  %v4948_v36 = vcombine.low %v4852_v20, %v4853_v59  ;;  %v4969_v32 = vrot.slane %v4947_v23, %v7600_v29 }
 0xa01   : > { %v6989_v27 = vpop.eup %6988  ;;  %v4810_v15 = vadd.f32 1.0, %v6987_v40  ;;  %7008 = vrcp.f32 %v4808_v7 }
 0xa02   : > { %v6991_v1 = vpop.eup %6990  ;;  %v4811_v16 = vadd.f32 1.0, %v6989_v27  ;;  %7010 = vrcp.f32 %v4809_v54  ;;  %v4976_v9 = vrot.slane %v4948_v36, %v7600_v29 }
 0xa03   : > { %v6993_v31 = vpop.eup %6992  ;;  %v4812_v14 = vadd.f32 1.0, %v6991_v1  ;;  %7012 = vrcp.f32 %v4810_v15 }
 0xa04   : > { %v6995_v37 = vpop.eup %6994  ;;  %v4813_v39 = vadd.f32 1.0, %v6993_v31  ;;  %7014 = vrcp.f32 %v4811_v16  ;;  %v4978_v50 = vcombine.low %v4969_v32, %v4976_v9 }
 0xa05   : > { %v6997_v45 = vpop.eup %6996  ;;  %7016 = vrcp.f32 %v4812_v14 }
 0xa06   : > { %v6999_v57 = vpop.eup %6998  ;;  %7018 = vrcp.f32 %v4813_v39  ;;  %v4992_v30 = vrot.slane %v4978_v50, %v7600_v29 }
 0xa07   : > { %v7001_v17 = vpop.eup %7000  ;;  %7020 = vtanh.f32 %v4851_v48 }
 0xa08   : > { %v7003_v19 = vpop.eup %7002  ;;  %7022 = vtanh.f32 %v4852_v20  ;;  %v4993_v2 = vcombine.low %v4985_v18, %v4992_v30 }
 0xa09   : > { %v7005_v51 = vpop.eup %7004  ;;  %7024 = vtanh.f32 %v4853_v59 }
 0xa0a   : > { %v7007_v53 = vpop.eup %7006  ;;  %v4862_v62 = vmul.f32 %v7005_v51, %v6995_v37  ;;  %4995 = vst [vmem:[#allocation3] sm:$0xff] %v4993_v2  ;;  %5001 = vst [vmem:[#allocation8] sm:$0xff] (!%p5439_p11), %v4993_v2 }
 0xa0b   : > { %v7009_v24 = vpop.eup %7008  ;;  %v4863_v8 = vmul.f32 %v7007_v53, %v6997_v45 }
 0xa0c   : > { %v7011_v13 = vpop.eup %7010  ;;  %v4864_v43 = vmul.f32 %v7009_v24, %v6999_v57  ;;  %4870 = vst [vmem:[%s7265_s17 + $0x7] sm:$0x1] %v4862_v62 }
 0xa0d   : > { %v7013_v5 = vpop.eup %7012  ;;  %v4865_v56 = vmul.f32 %v7011_v13, %v7001_v17  ;;  %4871 = vst [vmem:[%s7265_s17 + $0xf] sm:$0x1] %v4863_v8  ;;  %v4886_v26 = vcombine.low %v4862_v62, %v4863_v8 }
 0xa0e   : > { %v7015_v61 = vpop.eup %7014  ;;  %v4866_v4 = vmul.f32 %v7013_v5, %v7003_v19  ;;  %4872 = vst [vmem:[%s7265_s17 + $0x17] sm:$0x1] %v4864_v43 }
 0xa0f   : > { %v7017_v10 = vpop.eup %7016  ;;  %4873 = vst [vmem:[%s7265_s17 + $0x1f] sm:$0x1] %v4865_v56  ;;  %v4887_v46 = vcombine.low %v4864_v43, %v4865_v56  ;;  %v4896_v41 = vrot.slane %v4886_v26, %v7600_v29 }
 0xa10   : > { %v7019_v21 = vpop.eup %7018  ;;  %4874 = vst [vmem:[%s7265_s17 + $0x27] sm:$0x1] %v4866_v4 }
 0xa11   : > { %v7021_v22 = vpop.eup %7020  ;;  %v4903_v60 = vrot.slane %v4887_v46, %v7600_v29 }
 0xa12   : > { %v7023_v33 = vpop.eup %7022  ;;  %v4867_v42 = vmul.f32 %v7021_v22, %v7015_v61 }
 0xa13   : > { %v7025_v34 = vpop.eup %7024  ;;  %v4868_v35 = vmul.f32 %v7023_v33, %v7017_v10  ;;  %v4918_v25 = vcombine.low %v4896_v41, %v4903_v60 }
 0xa14   : > { %v4869_v63 = vmul.f32 %v7025_v34, %v7019_v21  ;;  %4875 = vst [vmem:[%s7265_s17 + $0x2f] sm:$0x1] %v4867_v42  ;;  %v4888_v3 = vcombine.low %v4866_v4, %v4867_v42 }
 0xa15   : > { %4876 = vst [vmem:[%s7265_s17 + $0x37] sm:$0x1] %v4868_v35  ;;  %v4926_v28 = vrot.slane %v4918_v25, %v7600_v29 }
 0xa16   : > { %4877 = vst [vmem:[%s7265_s17 + $0x3f] sm:$0x1] %v4869_v63  ;;  %v4889_v55 = vcombine.low %v4868_v35, %v4869_v63  ;;  %v4910_v38 = vrot.slane %v4888_v3, %v7600_v29 }
 0xa18   : > { %v4917_v58 = vrot.slane %v4889_v55, %v7600_v29 }
 0xa1a   : > { %v4919_v47 = vcombine.low %v4910_v38, %v4917_v58  ;;  %4999 = sbr.rel (%p5439_p11) target bundleno = 2593 (0xa21), region = 67 }
 0xa1c   : > { %v4933_v44 = vrot.slane %v4919_v47, %v7600_v29 }
 0xa1e   : > { %v4934_v48 = vcombine.low %v4926_v28, %v4933_v44 }
 0xa20   : > { %4936 = vst [vmem:[#allocation2] sm:$0xff] %v4934_v48  ;;  %5000 = vst [vmem:[#allocation6] sm:$0xff] (!%p5439_p11), %v4934_v48 }
 0xa21 PF: > { %5008 = sbr.rel (!%p7182_p5) target bundleno = 2600 (0xa28), region = 71  ;;  %s5441_s16 = sshll.u32 (%p7182_p5), %s7165_s24, 3  ;;  %v5052_v29 = vld [vmem:[%s7265_s17] sm:$0xff] (%p7182_p5)  ;;  %v5054_v0 = vld [vmem:[%s7265_s17 + $0x8] sm:$0xff] (%p7182_p5)  ;;  %v5056_v49 = vld [vmem:[%s7265_s17 + $0x10] sm:$0xff] (%p7182_p5) }
 0xa22   : > { %s5010_s14 = scalar_lea.vmem (%p7182_p5), %s8936_s4, %s5441_s16  ;;  %v5058_v20 = vld [vmem:[%s7265_s17 + $0x18] sm:$0xff] (%p7182_p5)  ;;  %v5060_v52 = vld [vmem:[%s7265_s17 + $0x20] sm:$0xff] (%p7182_p5)  ;;  %v5062_v12 = vld [vmem:[%s7265_s17 + $0x28] sm:$0xff] (%p7182_p5) }
 0xa23   : > { %5053 = vst [vmem:[%s5010_s14] sm:$0xff] (%p7182_p5), %v5052_v29  ;;  %5055 = vst [vmem:[%s5010_s14 + $0x10] sm:$0xff] (%p7182_p5), %v5054_v0  ;;  %v5064_v6 = vld [vmem:[%s7265_s17 + $0x30] sm:$0xff] (%p7182_p5)  ;;  %v5066_v59 = vld [vmem:[%s7265_s17 + $0x38] sm:$0xff] (%p7182_p5) }
 0xa24   : > { %5057 = vst [vmem:[%s5010_s14 + $0x20] sm:$0xff] (%p7182_p5), %v5056_v49  ;;  %5059 = vst [vmem:[%s5010_s14 + $0x30] sm:$0xff] (%p7182_p5), %v5058_v20 }
 0xa25   : > { %5061 = vst [vmem:[%s5010_s14 + $0x40] sm:$0xff] (%p7182_p5), %v5060_v52  ;;  %5063 = vst [vmem:[%s5010_s14 + $0x50] sm:$0xff] (%p7182_p5), %v5062_v12 }
 0xa26   : > { %5065 = vst [vmem:[%s5010_s14 + $0x60] sm:$0xff] (%p7182_p5), %v5064_v6  ;;  %5067 = vst [vmem:[%s5010_s14 + $0x70] sm:$0xff] (%p7182_p5), %v5066_v59 }
 0xa28 PF: > { %s7112_s29 = smov [#allocation6]   ;;  %s7113_s18 = smov [#allocation8]  }
 0xa29   : > { %s5078_s15 = sshll.u32 %s7112_s29, 4  ;;  %s5089_s19 = sshll.u32 %s7113_s18, 4  ;;  %s5079_s15 = int_to_ptr.vmem [resolvable:$true] %s5078_s15  ;;  %s8871_s19 = int_to_ptr.vmem [resolvable:$true] %s5089_s19 }
 0xa2a   : > { %s7026_s20 = scalar_lea.vmem %s5079_s15, 128  ;;  %p7033_p1 = scmp.lt.s32.totalorder %s5079_s15, %s5079_s15 }
 0xa2b   : > { %p7027_p12 = scmp.ne.s32.totalorder %s5079_s15, %s7026_s20  ;;  %p7034_p2 = scmp.lt.s32.totalorder %s7026_s20, %s7026_s20 }
 0xa2d   : > { %p7028_p13 = pnand %p7027_p12, %p126_p3  ;;  %p7035_p4 = por %p7034_p2, %p7033_p1 }
 0xa2f   : > { %p7029_p0 = pneg %p7028_p13 }
 0xa31   : > { %p7036_p5 = pnand %p7035_p4, %p7029_p0 }
 0xa33   : > { %7039 = shalt.err (!%p7036_p5)
}
 0xa34   : > { %s7040_s21 = scalar_lea.hbm %s8937_s5, 128 }
 0xa35   : > { %p7041_p6 = scmp.ne.s32.totalorder %s8937_s5, %s7040_s21  ;;  %p7046_p9 = scmp.lt.u32.totalorder %s7040_s21, %s8937_s5 }
 0xa37   : > { %p7042_p7 = pnand %p7041_p6, %p126_p3 }
 0xa39   : > { %p7043_p8 = pneg %p7042_p7 }
 0xa3b   : > { %p7048_p10 = pnand %p7046_p9, %p7043_p8 }
 0xa3d   : > { %7051 = shalt.err (!%p7048_p10)
}
 0xa3e   : > { %5962 = dma.vmem_to_hbm [thread:$0]  (%p126_p3), %s5079_s15, 128, %s8937_s5, [#allocation7]  }
 0xa3f   : > { %s7052_s10 = scalar_lea.vmem %s8871_s19, 128  ;;  %p7059_p0 = scmp.lt.s32.totalorder %s8871_s19, %s8871_s19 }
 0xa40   : > { %p7053_p11 = scmp.ne.s32.totalorder %s8871_s19, %s7052_s10  ;;  %p7060_p1 = scmp.lt.s32.totalorder %s7052_s10, %s7052_s10 }
 0xa42   : > { %p7054_p12 = pnand %p7053_p11, %p126_p3  ;;  %p7061_p2 = por %p7060_p1, %p7059_p0 }
 0xa44   : > { %p7055_p13 = pneg %p7054_p12 }
 0xa46   : > { %p7062_p4 = pnand %p7061_p2, %p7055_p13 }
 0xa48   : > { %7065 = shalt.err (!%p7062_p4)
}
 0xa49   : > { %s7066_s12 = scalar_lea.hbm %s8938_s6, 128 }
 0xa4a   : > { %p7067_p5 = scmp.ne.s32.totalorder %s8938_s6, %s7066_s12  ;;  %p7072_p8 = scmp.lt.u32.totalorder %s7066_s12, %s8938_s6 }
 0xa4c   : > { %p7068_p6 = pnand %p7067_p5, %p126_p3 }
 0xa4e   : > { %p7069_p7 = pneg %p7068_p6 }
 0xa50   : > { %p7074_p9 = pnand %p7072_p8, %p7069_p7 }
 0xa52   : > { %7077 = shalt.err (!%p7074_p9)
}
 0xa53   : > { %5964 = dma.vmem_to_hbm [thread:$0]  (%p126_p3), %s8871_s19, 128, %s8938_s6, [#allocation9]  }
 0xa54   : > { %7091 = dma.done.wait (%p126_p3), [#allocation7], 128  }
 0xa55   : > { %7093 = vsyncadd (%p126_p3), [#allocation7], 4294967168 }
 0xa56   : > { %7095 = dma.done.wait (%p126_p3), [#allocation9], 128  }
 0xa57   : > { %7097 = vsyncadd (%p126_p3), [#allocation9], 4294967168 }
 0xa58 PF: > { %p16_p10 = scmp.ge.s32.totalorder %s7168_s25, 4   ;;  %s9056_s21 = smov %s7104_s22 }
 0xa59   : > { %s9057_s22 = smov %s7178_s28  ;;  %s9058_s23 = smov %s7168_s25 }
 0xa5a   :  { %18 = sbr.rel (!%p16_p10) target bundleno = 3 (0x3), region = 220 }
 0xa61   :  { %5113 = vsyncpa [#allocation7], 1 }
 0xa62   :  { %5115 = vsyncpa [#allocation7 + $0x1], 1 }
 0xa63   :  { %5116 = vsyncpa [#allocation9], 1 }

</bundles_post_ra>
